<compile_context>
chip_gen: v7x
topology: tpu7x:2x2x1
jax: 0.10.0
libtpu: 0.0.40
codegen_flags: <defaults>
</compile_context>

<pallas_src>
import functools

import jax
import jax.numpy as jnp
from jax import lax
from jax.experimental import pallas as pl
from jax.experimental.pallas import tpu as pltpu


IN_FEATURES = 32 * 32 * 3      # 3072 (flattened CIFAR image, as nn.Linear implies)
HIDDEN = 512
OUT_FEATURES = 3
OUT_PADDED = 128               # lane-dense padded output width (multiple of 128)
BATCH_PAD = 16                 # bf16 packs 16 rows per sublane group
TB_DEFAULT = 256               # batch tile (multiple of 256 / 128 for MXU rows)


def _round_up(v, m):
    return ((v + m - 1) // m) * m


def _act(v, activation):
    if activation == "relu":
        return jnp.maximum(v, 0.0)
    return jax.nn.sigmoid(v)   # activation == "sigmoid"


# ---------------------------------------------------------------------------
# Fused kernel: y = fc3( act(fc2(...act(fc1(x))...)) ) per batch tile.
# Weights are VMEM-resident across all grid steps (constant index_maps).
# ---------------------------------------------------------------------------
def _fcnet_fused_kernel(x_ref, w1_ref, b1_ref, w2_ref, b2_ref, w3_ref, b3_ref,
                        o_ref, h_ref, *, hidden_num, activation):
    # fc1: bf16 x @ bf16 w1 on the MXU, f32 accumulate; bias + act on VPU/EUP.
    h1 = jnp.dot(x_ref[...], w1_ref[...],
                 preferred_element_type=jnp.float32) + b1_ref[...]
    h_ref[...] = _act(h1, activation).astype(jnp.bfloat16)

    # fc2 chain: w2 stays resident in VMEM, hidden activation stays bf16 in VMEM.
    # b2 is a (1, 512) broadcast-add (no materialized (TB, 512) broadcast).
    def body(_, carry):
        h = jnp.dot(h_ref[...], w2_ref[...],
                    preferred_element_type=jnp.float32) + b2_ref[...]
        h_ref[...] = _act(h, activation).astype(jnp.bfloat16)
        return carry

    if hidden_num > 1:  # hidden_num is a static Python int
        lax.fori_loop(0, hidden_num - 1, body, 0, unroll=True)

    # fc3: output columns zero-padded to 128 -> unmasked, lane-dense stores.
    y = jnp.dot(h_ref[...], w3_ref[...],
                preferred_element_type=jnp.float32) + b3_ref[...]
    o_ref[...] = y.astype(o_ref.dtype)


# hidden_num == 0 path: single padded linear (fc0), same batch tiling.
def _fc0_kernel(x_ref, w0_ref, b0_ref, o_ref):
    y = jnp.dot(x_ref[...], w0_ref[...],
                preferred_element_type=jnp.float32) + b0_ref[...]
    o_ref[...] = y.astype(o_ref.dtype)


def _const_spec(shape):
    """Full-array block, constant index map: fetched once, VMEM-resident."""
    nd = len(shape)
    return pl.BlockSpec(shape, lambda i, _nd=nd: (0,) * _nd)


def _batch_spec(tb, cols):
    """Batch-tiled block: one (tb, cols) tile per grid step."""
    return pl.BlockSpec((tb, cols), lambda i: (i, 0))


# ---------------------------------------------------------------------------
# Parameters (PyTorch-style init) + packing for the kernel
# ---------------------------------------------------------------------------
def init_fcnet_params(key):
    """uniform(-1/sqrt(fan_in), 1/sqrt(fan_in)) init, weights stored (in, out)."""

    def linear_params(key, fan_in, fan_out):
        kw, kb = jax.random.split(key)
        bound = 1.0 / jnp.sqrt(jnp.float32(fan_in))
        w = jax.random.uniform(kw, (fan_in, fan_out), jnp.float32, -bound, bound)
        b = jax.random.uniform(kb, (fan_out,), jnp.float32, -bound, bound)
        return w, b

    k0, k1, k2, k3 = jax.random.split(key, 4)
    return {
        "fc0": linear_params(k0, IN_FEATURES, OUT_FEATURES),
        "fc1": linear_params(k1, IN_FEATURES, HIDDEN),
        "fc2": linear_params(k2, HIDDEN, HIDDEN),
        "fc3": linear_params(k3, HIDDEN, OUT_FEATURES),
    }


def prepare_params(params_f32):
    """bf16 weights, f32 (1, N) biases; pad fc0/fc3 output width to 128 lanes."""

    def prep(wb, pad_to=None):
        w, b = wb
        if pad_to is not None and w.shape[1] < pad_to:
            w = jnp.pad(w, ((0, 0), (0, pad_to - w.shape[1])))
            b = jnp.pad(b, ((0, pad_to - b.shape[0]),))
        return w.astype(jnp.bfloat16), b.astype(jnp.float32).reshape(1, -1)

    return {
        "fc0": prep(params_f32["fc0"], pad_to=OUT_PADDED),
        "fc1": prep(params_f32["fc1"]),
        "fc2": prep(params_f32["fc2"]),
        "fc3": prep(params_f32["fc3"], pad_to=OUT_PADDED),
    }


# ---------------------------------------------------------------------------
# Pallas-backed forward (mirrors FCNet.forward control flow)
# ---------------------------------------------------------------------------
def fcnet_forward(kparams, x, hidden_num, activation="relu", tb=TB_DEFAULT):
    if activation not in ("relu", "sigmoid"):
        return None  # matches the PyTorch module returning None

    B, K = x.shape
    # bf16 activations halve the x HBM stream feeding fc1.  Ideally the caller
    # supplies bf16 directly; this cast fuses into whatever produced x.
    x = x.astype(jnp.bfloat16)

    bp16 = _round_up(B, BATCH_PAD)
    tb = _round_up(min(tb, bp16), BATCH_PAD)
    Bp = _round_up(B, tb)
    if Bp != B:
        x = jnp.pad(x, ((0, Bp - B), (0, 0)))
    grid = (Bp // tb,)

    cparams = pltpu.CompilerParams(
        dimension_semantics=("parallel",),        # megacore batch sharding on v7x
        vmem_limit_bytes=32 * 1024 * 1024,        # headroom on v5e; default on v6e/v7x
    )

    if hidden_num == 0:
        w0, b0 = kparams["fc0"]
        out_p = pl.pallas_call(
            _fc0_kernel,
            grid=grid,
            in_specs=[_batch_spec(tb, K),
                      _const_spec(w0.shape), _const_spec(b0.shape)],
            out_specs=_batch_spec(tb, OUT_PADDED),
            out_shape=jax.ShapeDtypeStruct((Bp, OUT_PADDED), jnp.float32),
            compiler_params=cparams,
        )(x, w0, b0)
        return out_p[:B, :OUT_FEATURES]

    w1, b1 = kparams["fc1"]
    w2, b2 = kparams["fc2"]
    w3, b3 = kparams["fc3"]
    kernel = functools.partial(
        _fcnet_fused_kernel, hidden_num=hidden_num, activation=activation)
    out_p = pl.pallas_call(
        kernel,
        grid=grid,
        in_specs=[_batch_spec(tb, K),
                  _const_spec(w1.shape), _const_spec(b1.shape),
                  _const_spec(w2.shape), _const_spec(b2.shape),
                  _const_spec(w3.shape), _const_spec(b3.shape)],
        out_specs=_batch_spec(tb, OUT_PADDED),
        out_shape=jax.ShapeDtypeStruct((Bp, OUT_PADDED), jnp.float32),
        scratch_shapes=[pltpu.VMEM((tb, HIDDEN), jnp.bfloat16)],
        compiler_params=cparams,
    )(x, w1, b1, w2, b2, w3, b3)
    return out_p[:B, :OUT_FEATURES]


# ---------------------------------------------------------------------------
# Pure-JAX reference (same bf16 weight/activation precision, f32 accumulate)
# ---------------------------------------------------------------------------
def fcnet_forward_ref(params_f32, x, hidden_num, activation="relu"):
    if activation not in ("relu", "sigmoid"):
        return None

    def act(v):
        return jnp.maximum(v, 0.0) if activation == "relu" else jax.nn.sigmoid(v)

    def lin(h, wb):
        w, b = wb
        return jnp.dot(h.astype(jnp.bfloat16), w.astype(jnp.bfloat16),
                       preferred_element_type=jnp.float32) + b

    if hidden_num == 0:
        return lin(x, params_f32["fc0"])
    h = act(lin(x, params_f32["fc1"]))
    for _ in range(hidden_num - 1):
        h = act(lin(h, params_f32["fc2"]))
    return lin(h, params_f32["fc3"])


if __name__ == "__main__":
    key = jax.random.PRNGKey(0)
    kp, kx = jax.random.split(key)

    params_f32 = init_fcnet_params(kp)
    kparams = prepare_params(params_f32)

    B = 2
    x = jax.random.normal(kx, (B, IN_FEATURES), jnp.float32)

    # relu path, 1 extra hidden layer (fc1 -> fc2 -> fc3)
    out = jax.block_until_ready(fcnet_forward(kparams, x, 2, "relu"))
    assert out.shape == (B, OUT_FEATURES), out.shape
    ref = fcnet_forward_ref(params_f32, x, 2, "relu")
    assert jnp.allclose(out, ref, atol=5e-3, rtol=5e-3), (out, ref)

    # hidden_num == 0 (fc0-only) path
    out0 = jax.block_until_ready(fcnet_forward(kparams, x, 0, "relu"))
    ref0 = fcnet_forward_ref(params_f32, x, 0, "relu")
    assert out0.shape == (B, OUT_FEATURES)
    assert jnp.allclose(out0, ref0, atol=5e-3, rtol=5e-3), (out0, ref0)

    # sigmoid path with deeper hidden loop (fc2 repeated 3x inside the kernel)
    outs = jax.block_until_ready(fcnet_forward(kparams, x, 4, "sigmoid"))
    refs = fcnet_forward_ref(params_f32, x, 4, "sigmoid")
    assert jnp.allclose(outs, refs, atol=5e-3, rtol=5e-3), (outs, refs)

    # multi-tile path: small batch tile forces grid > 1 (pipelined batch tiles,
    # weights pinned in VMEM via constant index_maps)
    x2 = jax.random.normal(jax.random.PRNGKey(1), (34, IN_FEATURES), jnp.float32)
    outt = jax.block_until_ready(fcnet_forward(kparams, x2, 3, "relu", tb=16))
    reft = fcnet_forward_ref(params_f32, x2, 3, "relu")
    assert outt.shape == (34, OUT_FEATURES)
    assert jnp.allclose(outt, reft, atol=5e-3, rtol=5e-3), (outt, reft)

    # unknown activation -> None (matches the PyTorch module)
    assert fcnet_forward(kparams, x, 2, "tanh") is None

    print("KERNEL_OK")
</pallas_src>

<mosaic_0001>
module attributes {stable_mosaic.version = 11 : i64} {
  func.func @_fcnet_fused_kernel(%arg0: i32, %arg1: memref<16x3072xbf16, #tpu.memory_space<vmem>>, %arg2: memref<3072x512xbf16, #tpu.memory_space<vmem>>, %arg3: memref<1x512xf32, #tpu.memory_space<vmem>>, %arg4: memref<512x512xbf16, #tpu.memory_space<vmem>>, %arg5: memref<1x512xf32, #tpu.memory_space<vmem>>, %arg6: memref<512x128xbf16, #tpu.memory_space<vmem>>, %arg7: memref<1x128xf32, #tpu.memory_space<vmem>>, %arg8: memref<16x128xf32, #tpu.memory_space<vmem>>, %arg9: memref<16x512xbf16, #tpu.memory_space<vmem>>) attributes {dimension_semantics = [#tpu.dimension_semantics<parallel>], iteration_bounds = array<i64: 1>, scalar_prefetch = 0 : i64, scratch_operands = 1 : i64, tpu.core_type = #tpu.core_type<tc>, window_params = [{transform_indices = @transform_0, window_bounds = array<i64: 16, 3072>}, {pipeline_mode = #tpu.pipeline_mode<synchronous>, transform_indices = @transform_1, window_bounds = array<i64: 3072, 512>}, {pipeline_mode = #tpu.pipeline_mode<synchronous>, transform_indices = @transform_2, window_bounds = array<i64: 1, 512>}, {pipeline_mode = #tpu.pipeline_mode<synchronous>, transform_indices = @transform_3, window_bounds = array<i64: 512, 512>}, {pipeline_mode = #tpu.pipeline_mode<synchronous>, transform_indices = @transform_4, window_bounds = array<i64: 1, 512>}, {pipeline_mode = #tpu.pipeline_mode<synchronous>, transform_indices = @transform_5, window_bounds = array<i64: 512, 128>}, {pipeline_mode = #tpu.pipeline_mode<synchronous>, transform_indices = @transform_6, window_bounds = array<i64: 1, 128>}, {transform_indices = @transform_7, window_bounds = array<i64: 16, 128>}]} {
    %c0 = arith.constant 0 : index
    %c0_0 = arith.constant 0 : index
    %0 = vector.load %arg1[%c0, %c0_0] : memref<16x3072xbf16, #tpu.memory_space<vmem>>, vector<16x3072xbf16>
    %c0_1 = arith.constant 0 : index
    %c0_2 = arith.constant 0 : index
    %1 = vector.load %arg2[%c0_1, %c0_2] : memref<3072x512xbf16, #tpu.memory_space<vmem>>, vector<3072x512xbf16>
    %cst = arith.constant dense<0.000000e+00> : vector<16x512xf32>
    %2 = tpu.matmul %0, %1, %cst {dimension_numbers = #tpu.dot_dimension_numbers<[1], [0], [0], [1], [0, 0, 1, 1], [], []>} : vector<16x3072xbf16>, vector<3072x512xbf16>, vector<16x512xf32> -> vector<16x512xf32>
    %c0_3 = arith.constant 0 : index
    %c0_4 = arith.constant 0 : index
    %3 = vector.load %arg3[%c0_3, %c0_4] : memref<1x512xf32, #tpu.memory_space<vmem>>, vector<1x512xf32>
    %4 = vector.broadcast %3 : vector<1x512xf32> to vector<16x512xf32>
    %5 = arith.addf %2, %4 : vector<16x512xf32>
    %cst_5 = arith.constant 0.000000e+00 : f32
    %6 = vector.broadcast %cst_5 : f32 to vector<16x512xf32>
    %7 = arith.maximumf %5, %6 : vector<16x512xf32>
    %8 = arith.truncf %7 : vector<16x512xf32> to vector<16x512xbf16>
    %c0_6 = arith.constant 0 : index
    %c0_7 = arith.constant 0 : index
    %9 = vector.load %arg9[%c0_6, %c0_7] : memref<16x512xbf16, #tpu.memory_space<vmem>>, vector<16x512xbf16>
    tpu.vector_store %arg9[%c0_6, %c0_7], %8 {strides = array<i32>} : memref<16x512xbf16, #tpu.memory_space<vmem>>, vector<16x512xbf16>,
    %c0_i32 = arith.constant 0 : i32
    %c0_8 = arith.constant 0 : index
    %c0_9 = arith.constant 0 : index
    %10 = vector.load %arg9[%c0_8, %c0_9] : memref<16x512xbf16, #tpu.memory_space<vmem>>, vector<16x512xbf16>
    %c0_10 = arith.constant 0 : index
    %c0_11 = arith.constant 0 : index
    %11 = vector.load %arg4[%c0_10, %c0_11] : memref<512x512xbf16, #tpu.memory_space<vmem>>, vector<512x512xbf16>
    %cst_12 = arith.constant dense<0.000000e+00> : vector<16x512xf32>
    %12 = tpu.matmul %10, %11, %cst_12 {dimension_numbers = #tpu.dot_dimension_numbers<[1], [0], [0], [1], [0, 0, 1, 1], [], []>} : vector<16x512xbf16>, vector<512x512xbf16>, vector<16x512xf32> -> vector<16x512xf32>
    %c0_13 = arith.constant 0 : index
    %c0_14 = arith.constant 0 : index
    %13 = vector.load %arg5[%c0_13, %c0_14] : memref<1x512xf32, #tpu.memory_space<vmem>>, vector<1x512xf32>
    %14 = vector.broadcast %13 : vector<1x512xf32> to vector<16x512xf32>
    %15 = arith.addf %12, %14 : vector<16x512xf32>
    %cst_15 = arith.constant 0.000000e+00 : f32
    %16 = vector.broadcast %cst_15 : f32 to vector<16x512xf32>
    %17 = arith.maximumf %15, %16 : vector<16x512xf32>
    %18 = arith.truncf %17 : vector<16x512xf32> to vector<16x512xbf16>
    %c0_16 = arith.constant 0 : index
    %c0_17 = arith.constant 0 : index
    %19 = vector.load %arg9[%c0_16, %c0_17] : memref<16x512xbf16, #tpu.memory_space<vmem>>, vector<16x512xbf16>
    tpu.vector_store %arg9[%c0_16, %c0_17], %18 {strides = array<i32>} : memref<16x512xbf16, #tpu.memory_space<vmem>>, vector<16x512xbf16>,
    %c0_18 = arith.constant 0 : index
    %c0_19 = arith.constant 0 : index
    %20 = vector.load %arg9[%c0_18, %c0_19] : memref<16x512xbf16, #tpu.memory_space<vmem>>, vector<16x512xbf16>
    %c0_20 = arith.constant 0 : index
    %c0_21 = arith.constant 0 : index
    %21 = vector.load %arg6[%c0_20, %c0_21] : memref<512x128xbf16, #tpu.memory_space<vmem>>, vector<512x128xbf16>
    %cst_22 = arith.constant dense<0.000000e+00> : vector<16x128xf32>
    %22 = tpu.matmul %20, %21, %cst_22 {dimension_numbers = #tpu.dot_dimension_numbers<[1], [0], [0], [1], [0, 0, 1, 1], [], []>} : vector<16x512xbf16>, vector<512x128xbf16>, vector<16x128xf32> -> vector<16x128xf32>
    %c0_23 = arith.constant 0 : index
    %c0_24 = arith.constant 0 : index
    %23 = vector.load %arg7[%c0_23, %c0_24] : memref<1x128xf32, #tpu.memory_space<vmem>>, vector<1x128xf32>
    %24 = vector.broadcast %23 : vector<1x128xf32> to vector<16x128xf32>
    %25 = arith.addf %22, %24 : vector<16x128xf32>
    %c0_25 = arith.constant 0 : index
    %c0_26 = arith.constant 0 : index
    %26 = vector.load %arg8[%c0_25, %c0_26] : memref<16x128xf32, #tpu.memory_space<vmem>>, vector<16x128xf32>
    tpu.vector_store %arg8[%c0_25, %c0_26], %25 {strides = array<i32>} : memref<16x128xf32, #tpu.memory_space<vmem>>, vector<16x128xf32>,
    return
  }
  func.func @transform_0(%arg0: i32) -> (i32, i32) {
    %c0_i32 = arith.constant 0 : i32
    %c0_i32_0 = arith.constant 0 : i32
    return %arg0, %c0_i32 : i32, i32
  }
  func.func @transform_1(%arg0: i32) -> (i32, i32) {
    %c0_i32 = arith.constant 0 : i32
    %c0_i32_0 = arith.constant 0 : i32
    %c0_i32_1 = arith.constant 0 : i32
    return %c0_i32, %c0_i32_0 : i32, i32
  }
  func.func @transform_2(%arg0: i32) -> (i32, i32) {
    %c0_i32 = arith.constant 0 : i32
    %c0_i32_0 = arith.constant 0 : i32
    %c0_i32_1 = arith.constant 0 : i32
    return %c0_i32, %c0_i32_0 : i32, i32
  }
  func.func @transform_3(%arg0: i32) -> (i32, i32) {
    %c0_i32 = arith.constant 0 : i32
    %c0_i32_0 = arith.constant 0 : i32
    %c0_i32_1 = arith.constant 0 : i32
    return %c0_i32, %c0_i32_0 : i32, i32
  }
  func.func @transform_4(%arg0: i32) -> (i32, i32) {
    %c0_i32 = arith.constant 0 : i32
    %c0_i32_0 = arith.constant 0 : i32
    %c0_i32_1 = arith.constant 0 : i32
    return %c0_i32, %c0_i32_0 : i32, i32
  }
  func.func @transform_5(%arg0: i32) -> (i32, i32) {
    %c0_i32 = arith.constant 0 : i32
    %c0_i32_0 = arith.constant 0 : i32
    %c0_i32_1 = arith.constant 0 : i32
    return %c0_i32, %c0_i32_0 : i32, i32
  }
  func.func @transform_6(%arg0: i32) -> (i32, i32) {
    %c0_i32 = arith.constant 0 : i32
    %c0_i32_0 = arith.constant 0 : i32
    %c0_i32_1 = arith.constant 0 : i32
    return %c0_i32, %c0_i32_0 : i32, i32
  }
  func.func @transform_7(%arg0: i32) -> (i32, i32) {
    %c0_i32 = arith.constant 0 : i32
    %c0_i32_0 = arith.constant 0 : i32
    return %arg0, %c0_i32 : i32, i32
  }
}

</mosaic_0001>

<bundles_post_ra>
// kernel: tpu_custom_call.1
= control target key start
LH: loop header
LB: loop body
LE: loop exit
PB: predicated region body
PF: predicated region fallthrough
CT: control target
= control target key end

     0   :  { %12 = vsyncpa [#allocation4], 0  ;;  %s10245_s0 = inlined_call_operand.hbm [shape: bf16[16,3072], index: 0, kind: input, shape index: {}]   ;;  %s10246_s1 = inlined_call_operand.hbm [shape: bf16[3072,512], index: 1, kind: input, shape index: {}]   ;;  %s10247_s2 = inlined_call_operand.hbm [shape: f32[1,512], index: 2, kind: input, shape index: {}]   ;;  %s10248_s3 = inlined_call_operand.hbm [shape: bf16[512,512], index: 3, kind: input, shape index: {}]   ;;  %s10249_s4 = inlined_call_operand.hbm [shape: f32[1,512], index: 4, kind: input, shape index: {}]   ;;  %s10250_s5 = inlined_call_operand.hbm [shape: bf16[512,128], index: 5, kind: input, shape index: {}]   ;;  %s10251_s6 = inlined_call_operand.hbm [shape: f32[1,128], index: 6, kind: input, shape index: {}]   ;;  %s10252_s7 = inlined_call_operand.hbm [shape: f32[16,128], index: 7, kind: output, shape index: {}]  }
   0x1   :  { %13 = vsyncpa [#allocation7], 0 }
   0x2   :  { %14 = vsyncpa [#allocation10], 0 }
   0x3   :  { %15 = vsyncpa [#allocation13], 0 }
   0x4   :  { %16 = vsyncpa [#allocation5], 0  ;;  %s9979_s24 = smov [#allocation6]   ;;  %s9793_s28 = scalar_lea.hbm %s10246_s1, 98304 }
   0x5   :  { %s34_s25 = sshll.u32 %s9979_s24, 4  ;;  %p9794_p0 = scmp.ne.s32.totalorder %s10246_s1, %s9793_s28  ;;  %s35_s25 = int_to_ptr.vmem [resolvable:$true] %s34_s25 }
   0x6   :  { %p9797_p1 = scmp.lt.u32.totalorder %s9793_s28, %s10246_s1 }
   0x8   :  { %p9799_p2 = pnand %p9797_p1, %p9794_p0 }
   0xa   :  { %9802 = shalt.err (!%p9799_p2)
}
   0xb   :  { %s9803_s10 = scalar_lea.vmem %s35_s25, 98304  ;;  %p9808_p4 = scmp.lt.s32.totalorder %s35_s25, %s35_s25 }
   0xc   :  { %p9804_p3 = scmp.ne.s32.totalorder %s35_s25, %s9803_s10  ;;  %p9809_p5 = scmp.lt.s32.totalorder %s9803_s10, %s9803_s10 }
   0xe   :  { %p9810_p6 = por %p9809_p5, %p9808_p4 }
  0x10   :  { %p9811_p7 = pnand %p9810_p6, %p9804_p3 }
  0x12   :  { %9814 = shalt.err (!%p9811_p7)
}
  0x13   :  { %s9980_s11 = smov 256   ;;  %s9981_s12 = smov 16  }
  0x14   :  { %40 = dma.hbm_to_vmem [thread:$0]  %s10246_s1, 98304, %s35_s25, [#allocation7], %s9980_s11, %s9980_s11, %s9981_s12  }
  0x15   :  { %s9982_s15 = smov [#allocation9]   ;;  %s9983_s17 = smov [#allocation12]  }
  0x16   :  { %s56_s16 = sshll.u32 %s9982_s15, 4  ;;  %s78_s18 = sshll.u32 %s9983_s17, 4  ;;  %s57_s16 = int_to_ptr.vmem [resolvable:$true] %s56_s16  ;;  %s79_s18 = int_to_ptr.vmem [resolvable:$true] %s78_s18 }
  0x17   :  { %s9815_s21 = scalar_lea.hbm %s10248_s3, 16384 }
  0x18   :  { %p9816_p8 = scmp.ne.s32.totalorder %s10248_s3, %s9815_s21  ;;  %p9819_p9 = scmp.lt.u32.totalorder %s9815_s21, %s10248_s3 }
  0x1a   :  { %p9821_p10 = pnand %p9819_p9, %p9816_p8 }
  0x1c   :  { %9824 = shalt.err (!%p9821_p10)
}
  0x1d   :  { %s9825_s1 = scalar_lea.vmem %s57_s16, 16384  ;;  %p9830_p12 = scmp.lt.s32.totalorder %s57_s16, %s57_s16 }
  0x1e   :  { %p9826_p11 = scmp.ne.s32.totalorder %s57_s16, %s9825_s1  ;;  %p9831_p13 = scmp.lt.s32.totalorder %s9825_s1, %s9825_s1 }
  0x20   :  { %p9832_p0 = por %p9831_p13, %p9830_p12 }
  0x22   :  { %p9833_p1 = pnand %p9832_p0, %p9826_p11 }
  0x24   :  { %9836 = shalt.err (!%p9833_p1)
}
  0x25   :  { %62 = dma.hbm_to_vmem [thread:$0]  %s10248_s3, 16384, %s57_s16, [#allocation10], %s9980_s11, %s9980_s11, %s9981_s12  }
  0x26   :  { %s9837_s30 = scalar_lea.hbm %s10250_s5, 4096 }
  0x27   :  { %p9838_p2 = scmp.ne.s32.totalorder %s10250_s5, %s9837_s30  ;;  %p9841_p3 = scmp.lt.u32.totalorder %s9837_s30, %s10250_s5 }
  0x29   :  { %p9843_p4 = pnand %p9841_p3, %p9838_p2 }
  0x2b   :  { %9846 = shalt.err (!%p9843_p4)
}
  0x2c   :  { %s9847_s14 = scalar_lea.vmem %s79_s18, 4096  ;;  %p9852_p6 = scmp.lt.s32.totalorder %s79_s18, %s79_s18 }
  0x2d   :  { %p9848_p5 = scmp.ne.s32.totalorder %s79_s18, %s9847_s14  ;;  %p9853_p7 = scmp.lt.s32.totalorder %s9847_s14, %s9847_s14 }
  0x2f   :  { %p9854_p8 = por %p9853_p7, %p9852_p6 }
  0x31   :  { %p9855_p9 = pnand %p9854_p8, %p9848_p5 }
  0x33   :  { %9858 = shalt.err (!%p9855_p9)
}
  0x34   :  { %s9984_s3 = smov 64   ;;  %s9985_s11 = smov 4  }
  0x35   :  { %84 = dma.hbm_to_vmem [thread:$0]  %s10250_s5, 4096, %s79_s18, [#allocation13], %s9984_s3, %s9984_s3, %s9985_s11  }
  0x36   :  { %s9986_s16 = smov [#allocation3]   ;;  %s9859_s21 = scalar_lea.hbm %s10245_s0, 3072 }
  0x37   :  { %s22_s17 = sshll.u32 %s9986_s16, 4  ;;  %p9860_p10 = scmp.ne.s32.totalorder %s10245_s0, %s9859_s21  ;;  %s23_s17 = int_to_ptr.vmem [resolvable:$true] %s22_s17 }
  0x38   :  { %p9863_p11 = scmp.lt.u32.totalorder %s9859_s21, %s10245_s0 }
  0x3a   :  { %p9865_p12 = pnand %p9863_p11, %p9860_p10 }
  0x3c   :  { %9868 = shalt.err (!%p9865_p12)
}
  0x3d   :  { %s9869_s1 = scalar_lea.vmem %s23_s17, 3072  ;;  %p9874_p0 = scmp.lt.s32.totalorder %s23_s17, %s23_s17 }
  0x3e   :  { %p9870_p13 = scmp.ne.s32.totalorder %s23_s17, %s9869_s1  ;;  %p9875_p1 = scmp.lt.s32.totalorder %s9869_s1, %s9869_s1 }
  0x40   :  { %p9876_p2 = por %p9875_p1, %p9874_p0 }
  0x42   :  { %p9877_p3 = pnand %p9876_p2, %p9870_p13 }
  0x44   :  { %9880 = shalt.err (!%p9877_p3)
}
  0x45   :  { %s9987_s5 = smov 1536   ;;  %s9988_s18 = smov 96  }
  0x46   :  { %28 = dma.hbm_to_vmem [thread:$0]  %s10245_s0, 3072, %s23_s17, [#allocation4], %s9987_s5, %s9987_s5, %s9988_s18  }
  0x47   :  { %s9989_s28 = smov [#allocation8]   ;;  %s9990_s30 = smov [#allocation11]  }
  0x48   :  { %s47_s29 = sshll.u32 %s9989_s28, 4  ;;  %s69_s8 = sshll.u32 %s9990_s30, 4  ;;  %s48_s29 = int_to_ptr.vmem [resolvable:$true] %s47_s29  ;;  %s70_s8 = int_to_ptr.vmem [resolvable:$true] %s69_s8 }
  0x49   :  { %s9881_s13 = scalar_lea.hbm %s10247_s2, 64 }
  0x4a   :  { %p9882_p4 = scmp.ne.s32.totalorder %s10247_s2, %s9881_s13  ;;  %p9885_p5 = scmp.lt.u32.totalorder %s9881_s13, %s10247_s2 }
  0x4c   :  { %p9887_p6 = pnand %p9885_p5, %p9882_p4 }
  0x4e   :  { %9890 = shalt.err (!%p9887_p6)
}
  0x4f   :  { %s9891_s0 = scalar_lea.vmem %s48_s29, 64  ;;  %p9896_p8 = scmp.lt.s32.totalorder %s48_s29, %s48_s29 }
  0x50   :  { %p9892_p7 = scmp.ne.s32.totalorder %s48_s29, %s9891_s0  ;;  %p9897_p9 = scmp.lt.s32.totalorder %s9891_s0, %s9891_s0 }
  0x52   :  { %p9898_p10 = por %p9897_p9, %p9896_p8 }
  0x54   :  { %p9899_p11 = pnand %p9898_p10, %p9892_p7 }
  0x56   :  { %9902 = shalt.err (!%p9899_p11)
}
  0x57   :  { %50 = dma.hbm_to_vmem [thread:$0]  %s10247_s2, 64, %s48_s29, [#allocation7]  }
  0x58   :  { %s9903_s20 = scalar_lea.hbm %s10249_s4, 64 }
  0x59   :  { %p9904_p12 = scmp.ne.s32.totalorder %s10249_s4, %s9903_s20  ;;  %p9907_p13 = scmp.lt.u32.totalorder %s9903_s20, %s10249_s4 }
  0x5b   :  { %p9909_p0 = pnand %p9907_p13, %p9904_p12 }
  0x5d   :  { %9912 = shalt.err (!%p9909_p0)
}
  0x5e   :  { %s9913_s26 = scalar_lea.vmem %s70_s8, 64  ;;  %p9918_p2 = scmp.lt.s32.totalorder %s70_s8, %s70_s8 }
  0x5f   :  { %p9914_p1 = scmp.ne.s32.totalorder %s70_s8, %s9913_s26  ;;  %p9919_p3 = scmp.lt.s32.totalorder %s9913_s26, %s9913_s26 }
  0x61   :  { %p9920_p4 = por %p9919_p3, %p9918_p2 }
  0x63   :  { %p9921_p5 = pnand %p9920_p4, %p9914_p1 }
  0x65   :  { %9924 = shalt.err (!%p9921_p5)
}
  0x66   :  { %72 = dma.hbm_to_vmem [thread:$0]  %s10249_s4, 64, %s70_s8, [#allocation10]  }
  0x67   :  { %s9991_s5 = smov [#allocation14]   ;;  %s9925_s28 = scalar_lea.hbm %s10251_s6, 16 }
  0x68   :  { %s91_s18 = sshll.u32 %s9991_s5, 4  ;;  %p9926_p6 = scmp.ne.s32.totalorder %s10251_s6, %s9925_s28  ;;  %s92_s18 = int_to_ptr.vmem [resolvable:$true] %s91_s18 }
  0x69   :  { %p9929_p7 = scmp.lt.u32.totalorder %s9925_s28, %s10251_s6 }
  0x6b   :  { %p9931_p8 = pnand %p9929_p7, %p9926_p6 }
  0x6d   :  { %9934 = shalt.err (!%p9931_p8)
}
  0x6e   :  { %s9935_s13 = scalar_lea.vmem %s92_s18, 16  ;;  %s9939_s4 = scalar_lea.vmem %s92_s18, 32 }
  0x6f   :  { %p9936_p9 = scmp.ne.s32.totalorder %s92_s18, %s9935_s13  ;;  %p9940_p10 = scmp.lt.s32.totalorder %s92_s18, %s92_s18 }
  0x70   :  { %p9941_p11 = scmp.lt.s32.totalorder %s9939_s4, %s9935_s13 }
  0x72   :  { %p9942_p12 = por %p9941_p11, %p9940_p10 }
  0x74   :  { %p9943_p13 = pnand %p9942_p12, %p9936_p9 }
  0x76   :  { %9946 = shalt.err (!%p9943_p13)
}
  0x77   :  { %94 = dma.hbm_to_vmem [thread:$0]  %s10251_s6, 16, %s92_s18, [#allocation13]  }
  0x78   :  { %9969 = dma.done.wait [#allocation4], 3072  }
  0x79   :  { %9970 = vsyncadd [#allocation4], 4294964224 }
  0x7a   :  { %9971 = dma.done.wait [#allocation7], 98368  }
  0x7b   :  { %9972 = vsyncadd [#allocation7], 4294868928 }
  0x7c   :  { %9973 = dma.done.wait [#allocation10], 16448  }
  0x7d   :  { %9974 = vsyncadd [#allocation10], 4294950848 }
  0x7e   :  { %9975 = dma.done.wait [#allocation13], 4112  }
  0x7f   :  { %9976 = vsyncadd [#allocation13], 4294963184  ;;  %v8417_v0 = vld [vmem:[#allocation6 + $0x4] ss:$16 sps:$4 sm:$0xff]   ;;  %v8419_v1 = vld [vmem:[#allocation6 + $0xc] ss:$16 sps:$4 sm:$0xff]  }
  0x80   :  { %4891 = vmatprep.subr.bf16.mxu0 %v8417_v0  ;;  %v8421_v2 = vld [vmem:[#allocation6] ss:$16 sps:$4 sm:$0xff]   ;;  %v8422_v3 = vld [vmem:[#allocation6 + $0x8] ss:$16 sps:$4 sm:$0xff]   ;;  %5407 = vmatprep.subr.bf16.mxu1 %v8419_v1  ;;  %v8423_v4 = vld [vmem:[#allocation6 + $0x24] ss:$16 sps:$4 sm:$0xff]  }
  0x81   :  { %4892 = vmatpush1.bf16.msra.mxu0 %v8421_v2  ;;  %5408 = vmatpush1.bf16.msra.mxu1 %v8422_v3  ;;  %v8425_v5 = vld [vmem:[#allocation6 + $0x2c] ss:$16 sps:$4 sm:$0xff]   ;;  %v8427_v6 = vld [vmem:[#allocation6 + $0x20] ss:$16 sps:$4 sm:$0xff]   ;;  %v8428_v7 = vld [vmem:[#allocation6 + $0x28] ss:$16 sps:$4 sm:$0xff]  }
  0x82   :  { %4893 = vmatprep.subr.bf16.mxu0 %v8423_v4  ;;  %5409 = vmatprep.subr.bf16.mxu1 %v8425_v5  ;;  %v8429_v8 = vld [vmem:[#allocation6 + $0x44] ss:$16 sps:$4 sm:$0xff]   ;;  %v8431_v9 = vld [vmem:[#allocation6 + $0x4c] ss:$16 sps:$4 sm:$0xff]   ;;  %v8433_v10 = vld [vmem:[#allocation6 + $0x40] ss:$16 sps:$4 sm:$0xff]  }
  0x83   :  { %v8434_v11 = vld [vmem:[#allocation6 + $0x48] ss:$16 sps:$4 sm:$0xff]   ;;  %v8435_v12 = vld [vmem:[#allocation6 + $0x64] ss:$16 sps:$4 sm:$0xff]   ;;  %v8437_v13 = vld [vmem:[#allocation6 + $0x6c] ss:$16 sps:$4 sm:$0xff]  }
  0x84   :  { %v8439_v14 = vld [vmem:[#allocation6 + $0x60] ss:$16 sps:$4 sm:$0xff]   ;;  %v8440_v15 = vld [vmem:[#allocation6 + $0x68] ss:$16 sps:$4 sm:$0xff]   ;;  %v8441_v16 = vld [vmem:[#allocation6 + $0x84] ss:$16 sps:$4 sm:$0xff]  }
  0x85   :  { %4894 = vmatpush1.bf16.msra.mxu0 %v8427_v6  ;;  %5410 = vmatpush1.bf16.msra.mxu1 %v8428_v7  ;;  %v8443_v17 = vld [vmem:[#allocation6 + $0x8c] ss:$16 sps:$4 sm:$0xff]   ;;  %v8445_v18 = vld [vmem:[#allocation6 + $0x80] ss:$16 sps:$4 sm:$0xff]   ;;  %v8446_v19 = vld [vmem:[#allocation6 + $0x88] ss:$16 sps:$4 sm:$0xff]  }
  0x86   :  { %4895 = vmatprep.subr.bf16.mxu0 %v8429_v8  ;;  %5411 = vmatprep.subr.bf16.mxu1 %v8431_v9  ;;  %v8447_v20 = vld [vmem:[#allocation6 + $0xa4] ss:$16 sps:$4 sm:$0xff]   ;;  %v8449_v21 = vld [vmem:[#allocation6 + $0xac] ss:$16 sps:$4 sm:$0xff]   ;;  %v8451_v22 = vld [vmem:[#allocation6 + $0xa0] ss:$16 sps:$4 sm:$0xff]  }
  0x87   :  { %v8452_v23 = vld [vmem:[#allocation6 + $0xa8] ss:$16 sps:$4 sm:$0xff]   ;;  %v8453_v24 = vld [vmem:[#allocation6 + $0xc4] ss:$16 sps:$4 sm:$0xff]   ;;  %v8455_v25 = vld [vmem:[#allocation6 + $0xcc] ss:$16 sps:$4 sm:$0xff]  }
  0x88   :  { %v8457_v26 = vld [vmem:[#allocation6 + $0xc0] ss:$16 sps:$4 sm:$0xff]   ;;  %v8458_v27 = vld [vmem:[#allocation6 + $0xc8] ss:$16 sps:$4 sm:$0xff]   ;;  %v8459_v28 = vld [vmem:[#allocation6 + $0xe4] ss:$16 sps:$4 sm:$0xff]  }
  0x89   :  { %4896 = vmatpush1.bf16.msra.mxu0 %v8433_v10  ;;  %5412 = vmatpush1.bf16.msra.mxu1 %v8434_v11  ;;  %v8461_v29 = vld [vmem:[#allocation6 + $0xec] ss:$16 sps:$4 sm:$0xff]   ;;  %v8463_v30 = vld [vmem:[#allocation6 + $0xe0] ss:$16 sps:$4 sm:$0xff]   ;;  %v8464_v31 = vld [vmem:[#allocation6 + $0xe8] ss:$16 sps:$4 sm:$0xff]  }
  0x8a   :  { %4897 = vmatprep.subr.bf16.mxu0 %v8435_v12  ;;  %5413 = vmatprep.subr.bf16.mxu1 %v8437_v13  ;;  %v8465_v32 = vld [vmem:[#allocation6 + $0x104] ss:$16 sps:$4 sm:$0xff]   ;;  %v8467_v33 = vld [vmem:[#allocation6 + $0x10c] ss:$16 sps:$4 sm:$0xff]   ;;  %v8469_v34 = vld [vmem:[#allocation6 + $0x100] ss:$16 sps:$4 sm:$0xff]  }
  0x8b   :  { %v8470_v35 = vld [vmem:[#allocation6 + $0x108] ss:$16 sps:$4 sm:$0xff]   ;;  %v8471_v36 = vld [vmem:[#allocation6 + $0x124] ss:$16 sps:$4 sm:$0xff]   ;;  %v8473_v37 = vld [vmem:[#allocation6 + $0x12c] ss:$16 sps:$4 sm:$0xff]  }
  0x8c   :  { %v8475_v38 = vld [vmem:[#allocation6 + $0x120] ss:$16 sps:$4 sm:$0xff]   ;;  %v8476_v39 = vld [vmem:[#allocation6 + $0x128] ss:$16 sps:$4 sm:$0xff]   ;;  %v8477_v40 = vld [vmem:[#allocation6 + $0x144] ss:$16 sps:$4 sm:$0xff]  }
  0x8d   :  { %4898 = vmatpush1.bf16.msra.mxu0 %v8439_v14  ;;  %5414 = vmatpush1.bf16.msra.mxu1 %v8440_v15  ;;  %v8479_v41 = vld [vmem:[#allocation6 + $0x14c] ss:$16 sps:$4 sm:$0xff]   ;;  %v8481_v42 = vld [vmem:[#allocation6 + $0x140] ss:$16 sps:$4 sm:$0xff]   ;;  %v8482_v43 = vld [vmem:[#allocation6 + $0x148] ss:$16 sps:$4 sm:$0xff]  }
  0x8e   :  { %4899 = vmatprep.subr.bf16.mxu0 %v8441_v16  ;;  %5415 = vmatprep.subr.bf16.mxu1 %v8443_v17  ;;  %v8483_v44 = vld [vmem:[#allocation6 + $0x164] ss:$16 sps:$4 sm:$0xff]   ;;  %v8485_v45 = vld [vmem:[#allocation6 + $0x16c] ss:$16 sps:$4 sm:$0xff]   ;;  %v8487_v48 = vld [vmem:[#allocation6 + $0x160] ss:$16 sps:$4 sm:$0xff]  }
  0x8f   :  { %v117_v46 = vld [vmem:[#allocation3] sm:$0xff]  ;;  %v8488_v49 = vld [vmem:[#allocation6 + $0x168] ss:$16 sps:$4 sm:$0xff]   ;;  %v8491_v52 = vld [vmem:[#allocation6 + $0x18c] ss:$16 sps:$4 sm:$0xff]   ;;  %s9992_s6 = smov [#allocation15]  }
  0x90   :  { %v129_v47 = vld [vmem:[#allocation3 + $0x60] sm:$0xff]  ;;  %v8494_v54 = vld [vmem:[#allocation6 + $0x188] ss:$16 sps:$4 sm:$0xff]   ;;  %v8497_v56 = vld [vmem:[#allocation6 + $0x1ac] ss:$16 sps:$4 sm:$0xff]   ;;  %s7277_s3 = sshll.u32 %s9992_s6, 4  ;;  %s7278_s3 = int_to_ptr.vmem [resolvable:$true] %s7277_s3 }
  0x91   :  { %4900 = vmatpush1.bf16.msra.mxu0 %v8445_v18  ;;  %5416 = vmatpush1.bf16.msra.mxu1 %v8446_v19  ;;  %v7293_v50 = vcombine.high %v117_v46, %v129_v47  ;;  %v8489_v51 = vld [vmem:[#allocation6 + $0x184] ss:$16 sps:$4 sm:$0xff]   ;;  %v8493_v53 = vld [vmem:[#allocation6 + $0x180] ss:$16 sps:$4 sm:$0xff]   ;;  %v8500_v58 = vld [vmem:[#allocation6 + $0x1a8] ss:$16 sps:$4 sm:$0xff]   ;;  %v7292_v5 = vcombine.low %v117_v46, %v129_v47  ;;  %p9952_p1 = scmp.lt.s32.totalorder %s7278_s3, %s7278_s3 }
  0x92   :  { %4901 = vmatprep.subr.bf16.mxu0 %v8447_v20  ;;  %5417 = vmatprep.subr.bf16.mxu1 %v8449_v21  ;;  %v8495_v55 = vld [vmem:[#allocation6 + $0x1a4] ss:$16 sps:$4 sm:$0xff]   ;;  %v8499_v57 = vld [vmem:[#allocation6 + $0x1a0] ss:$16 sps:$4 sm:$0xff]   ;;  %v8503_v60 = vld [vmem:[#allocation6 + $0x1cc] ss:$16 sps:$4 sm:$0xff]  }
  0x93   :  { %4923 = vmatprep.mubr.bf16.mxu0 %v7293_v50  ;;  %5439 = vmatprep.mubr.bf16.mxu1 %v7293_v50  ;;  %v8501_v59 = vld [vmem:[#allocation6 + $0x1c4] ss:$16 sps:$4 sm:$0xff]   ;;  %v8505_v61 = vld [vmem:[#allocation6 + $0x1c0] ss:$16 sps:$4 sm:$0xff]   ;;  %v8506_v62 = vld [vmem:[#allocation6 + $0x1c8] ss:$16 sps:$4 sm:$0xff]  }
  0x94   :  { %v8507_v63 = vld [vmem:[#allocation6 + $0x1e4] ss:$16 sps:$4 sm:$0xff]   ;;  %v8509_v0 = vld [vmem:[#allocation6 + $0x1ec] ss:$16 sps:$4 sm:$0xff]   ;;  %v8511_v1 = vld [vmem:[#allocation6 + $0x1e0] ss:$16 sps:$4 sm:$0xff]  }
  0x95   :  { %4902 = vmatpush1.bf16.msra.mxu0 %v8451_v22  ;;  %5418 = vmatpush1.bf16.msra.mxu1 %v8452_v23  ;;  %v8512_v2 = vld [vmem:[#allocation6 + $0x1e8] ss:$16 sps:$4 sm:$0xff]   ;;  %v8515_v3 = vld [vmem:[#allocation6 + $0x204] ss:$16 sps:$4 sm:$0xff]   ;;  %v8518_v4 = vld [vmem:[#allocation6 + $0x20c] ss:$16 sps:$4 sm:$0xff]  }
  0x96   :  { %4903 = vmatprep.subr.bf16.mxu0 %v8453_v24  ;;  %5419 = vmatprep.subr.bf16.mxu1 %v8455_v25  ;;  %v8513_v6 = vld [vmem:[#allocation6 + $0x200] ss:$16 sps:$4 sm:$0xff]   ;;  %v8516_v7 = vld [vmem:[#allocation6 + $0x208] ss:$16 sps:$4 sm:$0xff]   ;;  %v8521_v8 = vld [vmem:[#allocation6 + $0x224] ss:$16 sps:$4 sm:$0xff]  }
  0x97   :  { %v8524_v9 = vld [vmem:[#allocation6 + $0x22c] ss:$16 sps:$4 sm:$0xff]   ;;  %v8519_v10 = vld [vmem:[#allocation6 + $0x220] ss:$16 sps:$4 sm:$0xff]   ;;  %v8522_v11 = vld [vmem:[#allocation6 + $0x228] ss:$16 sps:$4 sm:$0xff]  }
  0x98   :  { %v8527_v12 = vld [vmem:[#allocation6 + $0x244] ss:$16 sps:$4 sm:$0xff]   ;;  %v8530_v13 = vld [vmem:[#allocation6 + $0x24c] ss:$16 sps:$4 sm:$0xff]   ;;  %v8525_v14 = vld [vmem:[#allocation6 + $0x240] ss:$16 sps:$4 sm:$0xff]  }
  0x99   :  { %4904 = vmatpush1.bf16.msra.mxu0 %v8457_v26  ;;  %5420 = vmatpush1.bf16.msra.mxu1 %v8458_v27  ;;  %v8528_v15 = vld [vmem:[#allocation6 + $0x248] ss:$16 sps:$4 sm:$0xff]   ;;  %v8533_v16 = vld [vmem:[#allocation6 + $0x264] ss:$16 sps:$4 sm:$0xff]   ;;  %v8536_v17 = vld [vmem:[#allocation6 + $0x26c] ss:$16 sps:$4 sm:$0xff]  }
  0x9a   :  { %4905 = vmatprep.subr.bf16.mxu0 %v8459_v28  ;;  %5421 = vmatprep.subr.bf16.mxu1 %v8461_v29  ;;  %v8531_v18 = vld [vmem:[#allocation6 + $0x260] ss:$16 sps:$4 sm:$0xff]   ;;  %v8534_v19 = vld [vmem:[#allocation6 + $0x268] ss:$16 sps:$4 sm:$0xff]   ;;  %v8539_v20 = vld [vmem:[#allocation6 + $0x284] ss:$16 sps:$4 sm:$0xff]  }
  0x9b   :  { %v8542_v21 = vld [vmem:[#allocation6 + $0x28c] ss:$16 sps:$4 sm:$0xff]   ;;  %v8537_v22 = vld [vmem:[#allocation6 + $0x280] ss:$16 sps:$4 sm:$0xff]   ;;  %v8540_v23 = vld [vmem:[#allocation6 + $0x288] ss:$16 sps:$4 sm:$0xff]  }
  0x9c   :  { %v8545_v24 = vld [vmem:[#allocation6 + $0x2a4] ss:$16 sps:$4 sm:$0xff]   ;;  %v8548_v25 = vld [vmem:[#allocation6 + $0x2ac] ss:$16 sps:$4 sm:$0xff]   ;;  %v8543_v26 = vld [vmem:[#allocation6 + $0x2a0] ss:$16 sps:$4 sm:$0xff]  }
  0x9d   :  { %4906 = vmatpush1.bf16.msra.mxu0 %v8463_v30  ;;  %5422 = vmatpush1.bf16.msra.mxu1 %v8464_v31  ;;  %v8546_v27 = vld [vmem:[#allocation6 + $0x2a8] ss:$16 sps:$4 sm:$0xff]   ;;  %v8551_v28 = vld [vmem:[#allocation6 + $0x2c4] ss:$16 sps:$4 sm:$0xff]   ;;  %v8554_v29 = vld [vmem:[#allocation6 + $0x2cc] ss:$16 sps:$4 sm:$0xff]  }
  0x9e   :  { %4907 = vmatprep.subr.bf16.mxu0 %v8465_v32  ;;  %5423 = vmatprep.subr.bf16.mxu1 %v8467_v33  ;;  %v10119_v30 = vld [vmem:[#allocation3 + $0x8] sm:$0xff]  ;;  %v8549_v32 = vld [vmem:[#allocation6 + $0x2c0] ss:$16 sps:$4 sm:$0xff]   ;;  %v8575_v47 = vld [vmem:[#allocation6 + $0x344] ss:$16 sps:$4 sm:$0xff]   ;;  %s9947_s11 = scalar_lea.vmem %s7278_s3, 256 }
  0x9f   :  { %v10121_v31 = vld [vmem:[#allocation3 + $0x68] sm:$0xff]  ;;  %p9948_p0 = scmp.ne.s32.totalorder %s7278_s3, %s9947_s11  ;;  %p9953_p2 = scmp.lt.s32.totalorder %s9947_s11, %s9947_s11 }
  0xa0   :  { %v8552_v33 = vld [vmem:[#allocation6 + $0x2c8] ss:$16 sps:$4 sm:$0xff]  }
  0xa1   :  { %4908 = vmatpush1.bf16.msra.mxu0 %v8469_v34  ;;  %5424 = vmatpush1.bf16.msra.mxu1 %v8470_v35  ;;  %v7295_v34 = vcombine.high %v10119_v30, %v10121_v31  ;;  %v8557_v35 = vld [vmem:[#allocation6 + $0x2e4] ss:$16 sps:$4 sm:$0xff]   ;;  %v8570_v46 = vld [vmem:[#allocation6 + $0x328] ss:$16 sps:$4 sm:$0xff]   ;;  %p9954_p3 = por %p9953_p2, %p9952_p1 }
  0xa2   :  { %4909 = vmatprep.subr.bf16.mxu0 %v8471_v36  ;;  %5425 = vmatprep.subr.bf16.mxu1 %v8473_v37  ;;  %v8560_v36 = vld [vmem:[#allocation6 + $0x2ec] ss:$16 sps:$4 sm:$0xff]   ;;  %v8555_v37 = vld [vmem:[#allocation6 + $0x2e0] ss:$16 sps:$4 sm:$0xff]   ;;  %v8576_v50 = vld [vmem:[#allocation6 + $0x348] ss:$16 sps:$4 sm:$0xff]  }
  0xa3   :  { %p9955_p4 = pnand %p9954_p3, %p9948_p0 }
  0xa5   :  { %4910 = vmatpush1.bf16.msra.mxu0 %v8475_v38  ;;  %5426 = vmatpush1.bf16.msra.mxu1 %v8476_v39  ;;  %v8558_v38 = vld [vmem:[#allocation6 + $0x2e8] ss:$16 sps:$4 sm:$0xff]   ;;  %v8563_v39 = vld [vmem:[#allocation6 + $0x304] ss:$16 sps:$4 sm:$0xff]  }
  0xa6   :  { %4911 = vmatprep.subr.bf16.mxu0 %v8477_v40  ;;  %5427 = vmatprep.subr.bf16.mxu1 %v8479_v41  ;;  %v8566_v40 = vld [vmem:[#allocation6 + $0x30c] ss:$16 sps:$4 sm:$0xff]   ;;  %v8561_v41 = vld [vmem:[#allocation6 + $0x300] ss:$16 sps:$4 sm:$0xff]  }
  0xa9   :  { %4912 = vmatpush1.bf16.msra.mxu0 %v8481_v42  ;;  %5428 = vmatpush1.bf16.msra.mxu1 %v8482_v43  ;;  %v8564_v42 = vld [vmem:[#allocation6 + $0x308] ss:$16 sps:$4 sm:$0xff]   ;;  %v8569_v43 = vld [vmem:[#allocation6 + $0x324] ss:$16 sps:$4 sm:$0xff]  }
  0xaa   :  { %4913 = vmatprep.subr.bf16.mxu0 %v8483_v44  ;;  %5429 = vmatprep.subr.bf16.mxu1 %v8485_v45  ;;  %v8572_v44 = vld [vmem:[#allocation6 + $0x32c] ss:$16 sps:$4 sm:$0xff]   ;;  %v8567_v45 = vld [vmem:[#allocation6 + $0x320] ss:$16 sps:$4 sm:$0xff]  }
  0xad   :  { %4914 = vmatpush1.bf16.msra.mxu0 %v8487_v48  ;;  %5430 = vmatpush1.bf16.msra.mxu1 %v8488_v49  ;;  %v8578_v48 = vld [vmem:[#allocation6 + $0x34c] ss:$16 sps:$4 sm:$0xff]   ;;  %v8573_v49 = vld [vmem:[#allocation6 + $0x340] ss:$16 sps:$4 sm:$0xff]  }
  0xae   :  { %4915 = vmatprep.subr.bf16.mxu0 %v8489_v51  ;;  %5431 = vmatprep.subr.bf16.mxu1 %v8491_v52  ;;  %v8581_v51 = vld [vmem:[#allocation6 + $0x364] ss:$16 sps:$4 sm:$0xff]   ;;  %v8584_v52 = vld [vmem:[#allocation6 + $0x36c] ss:$16 sps:$4 sm:$0xff]  }
  0xb1   :  { %4916 = vmatpush1.bf16.msra.mxu0 %v8493_v53  ;;  %5432 = vmatpush1.bf16.msra.mxu1 %v8494_v54  ;;  %v8579_v53 = vld [vmem:[#allocation6 + $0x360] ss:$16 sps:$4 sm:$0xff]   ;;  %v8582_v54 = vld [vmem:[#allocation6 + $0x368] ss:$16 sps:$4 sm:$0xff]  }
  0xb2   :  { %4917 = vmatprep.subr.bf16.mxu0 %v8495_v55  ;;  %5433 = vmatprep.subr.bf16.mxu1 %v8497_v56  ;;  %v8587_v55 = vld [vmem:[#allocation6 + $0x384] ss:$16 sps:$4 sm:$0xff]   ;;  %v8590_v56 = vld [vmem:[#allocation6 + $0x38c] ss:$16 sps:$4 sm:$0xff]  }
  0xb5   :  { %4918 = vmatpush1.bf16.msra.mxu0 %v8499_v57  ;;  %5434 = vmatpush1.bf16.msra.mxu1 %v8500_v58  ;;  %v8585_v57 = vld [vmem:[#allocation6 + $0x380] ss:$16 sps:$4 sm:$0xff]   ;;  %v8588_v58 = vld [vmem:[#allocation6 + $0x388] ss:$16 sps:$4 sm:$0xff]  }
  0xb6   :  { %4919 = vmatprep.subr.bf16.mxu0 %v8501_v59  ;;  %5435 = vmatprep.subr.bf16.mxu1 %v8503_v60  ;;  %v8593_v59 = vld [vmem:[#allocation6 + $0x3a4] ss:$16 sps:$4 sm:$0xff]   ;;  %v8596_v60 = vld [vmem:[#allocation6 + $0x3ac] ss:$16 sps:$4 sm:$0xff]  }
  0xb9   :  { %4920 = vmatpush1.bf16.msra.mxu0 %v8505_v61  ;;  %5436 = vmatpush1.bf16.msra.mxu1 %v8506_v62  ;;  %v8591_v61 = vld [vmem:[#allocation6 + $0x3a0] ss:$16 sps:$4 sm:$0xff]   ;;  %v8594_v62 = vld [vmem:[#allocation6 + $0x3a8] ss:$16 sps:$4 sm:$0xff]  }
  0xba   :  { %4921 = vmatprep.subr.bf16.mxu0 %v8507_v63  ;;  %5437 = vmatprep.subr.bf16.mxu1 %v8509_v0  ;;  %v8599_v63 = vld [vmem:[#allocation6 + $0x3c4] ss:$16 sps:$4 sm:$0xff]   ;;  %v8602_v0 = vld [vmem:[#allocation6 + $0x3cc] ss:$16 sps:$4 sm:$0xff]  }
  0xbd   :  { %4922 = vmatpush1.bf16.msra.mxu0 %v8511_v1  ;;  %5438 = vmatpush1.bf16.msra.mxu1 %v8512_v2  ;;  %v8597_v1 = vld [vmem:[#allocation6 + $0x3c0] ss:$16 sps:$4 sm:$0xff]   ;;  %v8600_v2 = vld [vmem:[#allocation6 + $0x3c8] ss:$16 sps:$4 sm:$0xff]  }
  0xbe   :  { %4934 = vmatprep.subr.bf16.mxu0 %v8515_v3  ;;  %5450 = vmatprep.subr.bf16.mxu1 %v8518_v4  ;;  %v8605_v3 = vld [vmem:[#allocation6 + $0x3e4] ss:$16 sps:$4 sm:$0xff]   ;;  %v8608_v4 = vld [vmem:[#allocation6 + $0x3ec] ss:$16 sps:$4 sm:$0xff]  }
  0xc0   :  { %4924 = vmatmul.mubr.bf16.vlgmr.msra.gmra.mrb[0].mxu0 %v7292_v5  ;;  %5440 = vmatmul.mubr.bf16.vlgmr.msra.gmra.mrb[0].mxu1 %v7292_v5  ;;  %v8603_v5 = vld [vmem:[#allocation6 + $0x3e0] ss:$16 sps:$4 sm:$0xff]  }
  0xc1   :  { %4935 = vmatpush1.bf16.msra.mxu0 %v8513_v6  ;;  %5451 = vmatpush1.bf16.msra.mxu1 %v8516_v7  ;;  %v8606_v6 = vld [vmem:[#allocation6 + $0x3e8] ss:$16 sps:$4 sm:$0xff]   ;;  %v8611_v7 = vld [vmem:[#allocation6 + $0x404] ss:$16 sps:$4 sm:$0xff]  }
  0xc2   :  { %4936 = vmatprep.subr.bf16.mxu0 %v8521_v8  ;;  %5452 = vmatprep.subr.bf16.mxu1 %v8524_v9  ;;  %v8614_v8 = vld [vmem:[#allocation6 + $0x40c] ss:$16 sps:$4 sm:$0xff]   ;;  %v7294_v9 = vcombine.low %v10119_v30, %v10121_v31  ;;  %v8636_v30 = vld [vmem:[#allocation6 + $0x488] ss:$16 sps:$4 sm:$0xff]   ;;  %v8641_v31 = vld [vmem:[#allocation6 + $0x4a4] ss:$16 sps:$4 sm:$0xff]  }
  0xc3   :  { %4966 = vmatprep.mubr.bf16.mxu0 %v7295_v34  ;;  %5482 = vmatprep.mubr.bf16.mxu1 %v7295_v34  ;;  %v8642_v34 = vld [vmem:[#allocation6 + $0x4a8] ss:$16 sps:$4 sm:$0xff]  }
  0xc5   :  { %4937 = vmatpush1.bf16.msra.mxu0 %v8519_v10  ;;  %5453 = vmatpush1.bf16.msra.mxu1 %v8522_v11  ;;  %v8609_v10 = vld [vmem:[#allocation6 + $0x400] ss:$16 sps:$4 sm:$0xff]   ;;  %v8612_v11 = vld [vmem:[#allocation6 + $0x408] ss:$16 sps:$4 sm:$0xff]  }
  0xc6   :  { %4938 = vmatprep.subr.bf16.mxu0 %v8527_v12  ;;  %5454 = vmatprep.subr.bf16.mxu1 %v8530_v13  ;;  %v8617_v12 = vld [vmem:[#allocation6 + $0x424] ss:$16 sps:$4 sm:$0xff]   ;;  %v8620_v13 = vld [vmem:[#allocation6 + $0x42c] ss:$16 sps:$4 sm:$0xff]  }
  0xc9   :  { %4939 = vmatpush1.bf16.msra.mxu0 %v8525_v14  ;;  %5455 = vmatpush1.bf16.msra.mxu1 %v8528_v15  ;;  %v10127_v14 = vld [vmem:[#allocation3 + $0x10] sm:$0xff] }
  0xca   :  { %4940 = vmatprep.subr.bf16.mxu0 %v8533_v16  ;;  %5456 = vmatprep.subr.bf16.mxu1 %v8536_v17  ;;  %v10129_v15 = vld [vmem:[#allocation3 + $0x70] sm:$0xff] }
  0xcb   :  { %v7297_v16 = vcombine.high %v10127_v14, %v10129_v15  ;;  %v8615_v17 = vld [vmem:[#allocation6 + $0x420] ss:$16 sps:$4 sm:$0xff]  }
  0xcd   :  { %4941 = vmatpush1.bf16.msra.mxu0 %v8531_v18  ;;  %5457 = vmatpush1.bf16.msra.mxu1 %v8534_v19  ;;  %v8618_v18 = vld [vmem:[#allocation6 + $0x428] ss:$16 sps:$4 sm:$0xff]   ;;  %v8623_v19 = vld [vmem:[#allocation6 + $0x444] ss:$16 sps:$4 sm:$0xff]  }
  0xce   :  { %4942 = vmatprep.subr.bf16.mxu0 %v8539_v20  ;;  %5458 = vmatprep.subr.bf16.mxu1 %v8542_v21  ;;  %v8626_v20 = vld [vmem:[#allocation6 + $0x44c] ss:$16 sps:$4 sm:$0xff]   ;;  %v8621_v21 = vld [vmem:[#allocation6 + $0x440] ss:$16 sps:$4 sm:$0xff]  }
  0xd1   :  { %4943 = vmatpush1.bf16.msra.mxu0 %v8537_v22  ;;  %5459 = vmatpush1.bf16.msra.mxu1 %v8540_v23  ;;  %v8624_v22 = vld [vmem:[#allocation6 + $0x448] ss:$16 sps:$4 sm:$0xff]   ;;  %v8629_v23 = vld [vmem:[#allocation6 + $0x464] ss:$16 sps:$4 sm:$0xff]  }
  0xd2   :  { %4944 = vmatprep.subr.bf16.mxu0 %v8545_v24  ;;  %5460 = vmatprep.subr.bf16.mxu1 %v8548_v25  ;;  %v8632_v24 = vld [vmem:[#allocation6 + $0x46c] ss:$16 sps:$4 sm:$0xff]   ;;  %v8627_v25 = vld [vmem:[#allocation6 + $0x460] ss:$16 sps:$4 sm:$0xff]  }
  0xd5   :  { %4945 = vmatpush1.bf16.msra.mxu0 %v8543_v26  ;;  %5461 = vmatpush1.bf16.msra.mxu1 %v8546_v27  ;;  %v8630_v26 = vld [vmem:[#allocation6 + $0x468] ss:$16 sps:$4 sm:$0xff]   ;;  %v8635_v27 = vld [vmem:[#allocation6 + $0x484] ss:$16 sps:$4 sm:$0xff]  }
  0xd6   :  { %4946 = vmatprep.subr.bf16.mxu0 %v8551_v28  ;;  %5462 = vmatprep.subr.bf16.mxu1 %v8554_v29  ;;  %v8638_v28 = vld [vmem:[#allocation6 + $0x48c] ss:$16 sps:$4 sm:$0xff]   ;;  %v8633_v29 = vld [vmem:[#allocation6 + $0x480] ss:$16 sps:$4 sm:$0xff]  }
  0xd9   :  { %4947 = vmatpush1.bf16.msra.mxu0 %v8549_v32  ;;  %5463 = vmatpush1.bf16.msra.mxu1 %v8552_v33  ;;  %v8644_v32 = vld [vmem:[#allocation6 + $0x4ac] ss:$16 sps:$4 sm:$0xff]   ;;  %v8639_v33 = vld [vmem:[#allocation6 + $0x4a0] ss:$16 sps:$4 sm:$0xff]  }
  0xda   :  { %4948 = vmatprep.subr.bf16.mxu0 %v8557_v35  ;;  %5464 = vmatprep.subr.bf16.mxu1 %v8560_v36  ;;  %v8647_v35 = vld [vmem:[#allocation6 + $0x4c4] ss:$16 sps:$4 sm:$0xff]   ;;  %v8650_v36 = vld [vmem:[#allocation6 + $0x4cc] ss:$16 sps:$4 sm:$0xff]  }
  0xdd   :  { %4949 = vmatpush1.bf16.msra.mxu0 %v8555_v37  ;;  %5465 = vmatpush1.bf16.msra.mxu1 %v8558_v38  ;;  %v8645_v37 = vld [vmem:[#allocation6 + $0x4c0] ss:$16 sps:$4 sm:$0xff]   ;;  %v8648_v38 = vld [vmem:[#allocation6 + $0x4c8] ss:$16 sps:$4 sm:$0xff]  }
  0xde   :  { %4950 = vmatprep.subr.bf16.mxu0 %v8563_v39  ;;  %5466 = vmatprep.subr.bf16.mxu1 %v8566_v40  ;;  %v8653_v39 = vld [vmem:[#allocation6 + $0x4e4] ss:$16 sps:$4 sm:$0xff]   ;;  %v8656_v40 = vld [vmem:[#allocation6 + $0x4ec] ss:$16 sps:$4 sm:$0xff]  }
  0xe1   :  { %4951 = vmatpush1.bf16.msra.mxu0 %v8561_v41  ;;  %5467 = vmatpush1.bf16.msra.mxu1 %v8564_v42  ;;  %v8651_v41 = vld [vmem:[#allocation6 + $0x4e0] ss:$16 sps:$4 sm:$0xff]   ;;  %v8654_v42 = vld [vmem:[#allocation6 + $0x4e8] ss:$16 sps:$4 sm:$0xff]  }
  0xe2   :  { %4952 = vmatprep.subr.bf16.mxu0 %v8569_v43  ;;  %5468 = vmatprep.subr.bf16.mxu1 %v8572_v44  ;;  %v8659_v43 = vld [vmem:[#allocation6 + $0x504] ss:$16 sps:$4 sm:$0xff]   ;;  %v8662_v44 = vld [vmem:[#allocation6 + $0x50c] ss:$16 sps:$4 sm:$0xff]  }
  0xe5   :  { %4953 = vmatpush1.bf16.msra.mxu0 %v8567_v45  ;;  %5469 = vmatpush1.bf16.msra.mxu1 %v8570_v46  ;;  %v8657_v45 = vld [vmem:[#allocation6 + $0x500] ss:$16 sps:$4 sm:$0xff]   ;;  %v8660_v46 = vld [vmem:[#allocation6 + $0x508] ss:$16 sps:$4 sm:$0xff]  }
  0xe6   :  { %4954 = vmatprep.subr.bf16.mxu0 %v8575_v47  ;;  %5470 = vmatprep.subr.bf16.mxu1 %v8578_v48  ;;  %v8665_v47 = vld [vmem:[#allocation6 + $0x524] ss:$16 sps:$4 sm:$0xff]   ;;  %v8668_v48 = vld [vmem:[#allocation6 + $0x52c] ss:$16 sps:$4 sm:$0xff]  }
  0xe9   :  { %4955 = vmatpush1.bf16.msra.mxu0 %v8573_v49  ;;  %5471 = vmatpush1.bf16.msra.mxu1 %v8576_v50  ;;  %v8663_v49 = vld [vmem:[#allocation6 + $0x520] ss:$16 sps:$4 sm:$0xff]   ;;  %v8666_v50 = vld [vmem:[#allocation6 + $0x528] ss:$16 sps:$4 sm:$0xff]  }
  0xea   :  { %4956 = vmatprep.subr.bf16.mxu0 %v8581_v51  ;;  %5472 = vmatprep.subr.bf16.mxu1 %v8584_v52  ;;  %v8671_v51 = vld [vmem:[#allocation6 + $0x544] ss:$16 sps:$4 sm:$0xff]   ;;  %v8674_v52 = vld [vmem:[#allocation6 + $0x54c] ss:$16 sps:$4 sm:$0xff]  }
  0xed   :  { %4957 = vmatpush1.bf16.msra.mxu0 %v8579_v53  ;;  %5473 = vmatpush1.bf16.msra.mxu1 %v8582_v54  ;;  %v8669_v53 = vld [vmem:[#allocation6 + $0x540] ss:$16 sps:$4 sm:$0xff]   ;;  %v8672_v54 = vld [vmem:[#allocation6 + $0x548] ss:$16 sps:$4 sm:$0xff]  }
  0xee   :  { %4958 = vmatprep.subr.bf16.mxu0 %v8587_v55  ;;  %5474 = vmatprep.subr.bf16.mxu1 %v8590_v56  ;;  %v8677_v55 = vld [vmem:[#allocation6 + $0x564] ss:$16 sps:$4 sm:$0xff]   ;;  %v8680_v56 = vld [vmem:[#allocation6 + $0x56c] ss:$16 sps:$4 sm:$0xff]  }
  0xf1   :  { %4959 = vmatpush1.bf16.msra.mxu0 %v8585_v57  ;;  %5475 = vmatpush1.bf16.msra.mxu1 %v8588_v58  ;;  %v8675_v57 = vld [vmem:[#allocation6 + $0x560] ss:$16 sps:$4 sm:$0xff]   ;;  %v8678_v58 = vld [vmem:[#allocation6 + $0x568] ss:$16 sps:$4 sm:$0xff]  }
  0xf2   :  { %4960 = vmatprep.subr.bf16.mxu0 %v8593_v59  ;;  %5476 = vmatprep.subr.bf16.mxu1 %v8596_v60  ;;  %v8683_v59 = vld [vmem:[#allocation6 + $0x584] ss:$16 sps:$4 sm:$0xff]   ;;  %v8686_v60 = vld [vmem:[#allocation6 + $0x58c] ss:$16 sps:$4 sm:$0xff]  }
  0xf5   :  { %4961 = vmatpush1.bf16.msra.mxu0 %v8591_v61  ;;  %5477 = vmatpush1.bf16.msra.mxu1 %v8594_v62  ;;  %v8681_v61 = vld [vmem:[#allocation6 + $0x580] ss:$16 sps:$4 sm:$0xff]   ;;  %v8684_v62 = vld [vmem:[#allocation6 + $0x588] ss:$16 sps:$4 sm:$0xff]  }
  0xf6   :  { %4962 = vmatprep.subr.bf16.mxu0 %v8599_v63  ;;  %5478 = vmatprep.subr.bf16.mxu1 %v8602_v0  ;;  %v8689_v63 = vld [vmem:[#allocation6 + $0x5a4] ss:$16 sps:$4 sm:$0xff]   ;;  %v8692_v0 = vld [vmem:[#allocation6 + $0x5ac] ss:$16 sps:$4 sm:$0xff]  }
  0xf9   :  { %4963 = vmatpush1.bf16.msra.mxu0 %v8597_v1  ;;  %5479 = vmatpush1.bf16.msra.mxu1 %v8600_v2  ;;  %v8687_v1 = vld [vmem:[#allocation6 + $0x5a0] ss:$16 sps:$4 sm:$0xff]   ;;  %v8690_v2 = vld [vmem:[#allocation6 + $0x5a8] ss:$16 sps:$4 sm:$0xff]  }
  0xfa   :  { %4964 = vmatprep.subr.bf16.mxu0 %v8605_v3  ;;  %5480 = vmatprep.subr.bf16.mxu1 %v8608_v4  ;;  %v8695_v3 = vld [vmem:[#allocation6 + $0x5c4] ss:$16 sps:$4 sm:$0xff]   ;;  %v8698_v4 = vld [vmem:[#allocation6 + $0x5cc] ss:$16 sps:$4 sm:$0xff]  }
  0xfd   :  { %4965 = vmatpush1.bf16.msra.mxu0 %v8603_v5  ;;  %5481 = vmatpush1.bf16.msra.mxu1 %v8606_v6  ;;  %v8693_v5 = vld [vmem:[#allocation6 + $0x5c0] ss:$16 sps:$4 sm:$0xff]   ;;  %v8696_v6 = vld [vmem:[#allocation6 + $0x5c8] ss:$16 sps:$4 sm:$0xff]  }
  0xfe   :  { %4977 = vmatprep.subr.bf16.mxu0 %v8611_v7  ;;  %5493 = vmatprep.subr.bf16.mxu1 %v8614_v8  ;;  %v8701_v7 = vld [vmem:[#allocation6 + $0x5e4] ss:$16 sps:$4 sm:$0xff]   ;;  %v8704_v8 = vld [vmem:[#allocation6 + $0x5ec] ss:$16 sps:$4 sm:$0xff]  }
 0x100   :  { %4967 = vmatmul.mubr.bf16.vlgmr.msra.gmra.mrb[0].mxu0 %v7294_v9  ;;  %5483 = vmatmul.mubr.bf16.vlgmr.msra.gmra.mrb[0].mxu1 %v7294_v9  ;;  %v8699_v9 = vld [vmem:[#allocation6 + $0x5e0] ss:$16 sps:$4 sm:$0xff]  }
 0x101   :  { %4978 = vmatpush1.bf16.msra.mxu0 %v8609_v10  ;;  %5494 = vmatpush1.bf16.msra.mxu1 %v8612_v11  ;;  %v8702_v10 = vld [vmem:[#allocation6 + $0x5e8] ss:$16 sps:$4 sm:$0xff]   ;;  %v8707_v11 = vld [vmem:[#allocation6 + $0x604] ss:$16 sps:$4 sm:$0xff]  }
 0x102   :  { %4979 = vmatprep.subr.bf16.mxu0 %v8617_v12  ;;  %5495 = vmatprep.subr.bf16.mxu1 %v8620_v13  ;;  %v8710_v12 = vld [vmem:[#allocation6 + $0x60c] ss:$16 sps:$4 sm:$0xff]   ;;  %v8705_v13 = vld [vmem:[#allocation6 + $0x600] ss:$16 sps:$4 sm:$0xff]  }
 0x103   :  { %5009 = vmatprep.mubr.bf16.mxu0 %v7297_v16  ;;  %5525 = vmatprep.mubr.bf16.mxu1 %v7297_v16  ;;  %v8708_v16 = vld [vmem:[#allocation6 + $0x608] ss:$16 sps:$4 sm:$0xff]  }
 0x105   :  { %4980 = vmatpush1.bf16.msra.mxu0 %v8615_v17  ;;  %5496 = vmatpush1.bf16.msra.mxu1 %v8618_v18  ;;  %v7296_v17 = vcombine.low %v10127_v14, %v10129_v15  ;;  %v10135_v18 = vld [vmem:[#allocation3 + $0x18] sm:$0xff]  ;;  %v8719_v14 = vld [vmem:[#allocation6 + $0x644] ss:$16 sps:$4 sm:$0xff]  }
 0x106   :  { %4981 = vmatprep.subr.bf16.mxu0 %v8623_v19  ;;  %5497 = vmatprep.subr.bf16.mxu1 %v8626_v20  ;;  %v10137_v19 = vld [vmem:[#allocation3 + $0x78] sm:$0xff]  ;;  %v8713_v20 = vld [vmem:[#allocation6 + $0x624] ss:$16 sps:$4 sm:$0xff]  }
 0x107   :  { %v8722_v15 = vld [vmem:[#allocation6 + $0x64c] ss:$16 sps:$4 sm:$0xff]  }
 0x109   :  { %4982 = vmatpush1.bf16.msra.mxu0 %v8621_v21  ;;  %5498 = vmatpush1.bf16.msra.mxu1 %v8624_v22  ;;  %v8716_v21 = vld [vmem:[#allocation6 + $0x62c] ss:$16 sps:$4 sm:$0xff]   ;;  %v7299_v22 = vcombine.high %v10135_v18, %v10137_v19 }
 0x10a   :  { %4983 = vmatprep.subr.bf16.mxu0 %v8629_v23  ;;  %5499 = vmatprep.subr.bf16.mxu1 %v8632_v24  ;;  %v8711_v23 = vld [vmem:[#allocation6 + $0x620] ss:$16 sps:$4 sm:$0xff]   ;;  %v8714_v24 = vld [vmem:[#allocation6 + $0x628] ss:$16 sps:$4 sm:$0xff]  }
 0x10d   :  { %4984 = vmatpush1.bf16.msra.mxu0 %v8627_v25  ;;  %5500 = vmatpush1.bf16.msra.mxu1 %v8630_v26  ;;  %v8717_v25 = vld [vmem:[#allocation6 + $0x640] ss:$16 sps:$4 sm:$0xff]   ;;  %v8720_v26 = vld [vmem:[#allocation6 + $0x648] ss:$16 sps:$4 sm:$0xff]  }
 0x10e   :  { %4985 = vmatprep.subr.bf16.mxu0 %v8635_v27  ;;  %5501 = vmatprep.subr.bf16.mxu1 %v8638_v28  ;;  %v8725_v27 = vld [vmem:[#allocation6 + $0x664] ss:$16 sps:$4 sm:$0xff]   ;;  %v8728_v28 = vld [vmem:[#allocation6 + $0x66c] ss:$16 sps:$4 sm:$0xff]  }
 0x111   :  { %4986 = vmatpush1.bf16.msra.mxu0 %v8633_v29  ;;  %5502 = vmatpush1.bf16.msra.mxu1 %v8636_v30  ;;  %v8723_v29 = vld [vmem:[#allocation6 + $0x660] ss:$16 sps:$4 sm:$0xff]   ;;  %v8726_v30 = vld [vmem:[#allocation6 + $0x668] ss:$16 sps:$4 sm:$0xff]  }
 0x112   :  { %4987 = vmatprep.subr.bf16.mxu0 %v8641_v31  ;;  %5503 = vmatprep.subr.bf16.mxu1 %v8644_v32  ;;  %v8731_v31 = vld [vmem:[#allocation6 + $0x684] ss:$16 sps:$4 sm:$0xff]   ;;  %v8734_v32 = vld [vmem:[#allocation6 + $0x68c] ss:$16 sps:$4 sm:$0xff]  }
 0x115   :  { %4988 = vmatpush1.bf16.msra.mxu0 %v8639_v33  ;;  %5504 = vmatpush1.bf16.msra.mxu1 %v8642_v34  ;;  %v8729_v33 = vld [vmem:[#allocation6 + $0x680] ss:$16 sps:$4 sm:$0xff]   ;;  %v8732_v34 = vld [vmem:[#allocation6 + $0x688] ss:$16 sps:$4 sm:$0xff]  }
 0x116   :  { %4989 = vmatprep.subr.bf16.mxu0 %v8647_v35  ;;  %5505 = vmatprep.subr.bf16.mxu1 %v8650_v36  ;;  %v8737_v35 = vld [vmem:[#allocation6 + $0x6a4] ss:$16 sps:$4 sm:$0xff]   ;;  %v8740_v36 = vld [vmem:[#allocation6 + $0x6ac] ss:$16 sps:$4 sm:$0xff]  }
 0x119   :  { %4990 = vmatpush1.bf16.msra.mxu0 %v8645_v37  ;;  %5506 = vmatpush1.bf16.msra.mxu1 %v8648_v38  ;;  %v8735_v37 = vld [vmem:[#allocation6 + $0x6a0] ss:$16 sps:$4 sm:$0xff]   ;;  %v8738_v38 = vld [vmem:[#allocation6 + $0x6a8] ss:$16 sps:$4 sm:$0xff]  }
 0x11a   :  { %4991 = vmatprep.subr.bf16.mxu0 %v8653_v39  ;;  %5507 = vmatprep.subr.bf16.mxu1 %v8656_v40  ;;  %v8743_v39 = vld [vmem:[#allocation6 + $0x6c4] ss:$16 sps:$4 sm:$0xff]   ;;  %v8746_v40 = vld [vmem:[#allocation6 + $0x6cc] ss:$16 sps:$4 sm:$0xff]  }
 0x11d   :  { %4992 = vmatpush1.bf16.msra.mxu0 %v8651_v41  ;;  %5508 = vmatpush1.bf16.msra.mxu1 %v8654_v42  ;;  %v8741_v41 = vld [vmem:[#allocation6 + $0x6c0] ss:$16 sps:$4 sm:$0xff]   ;;  %v8744_v42 = vld [vmem:[#allocation6 + $0x6c8] ss:$16 sps:$4 sm:$0xff]  }
 0x11e   :  { %4993 = vmatprep.subr.bf16.mxu0 %v8659_v43  ;;  %5509 = vmatprep.subr.bf16.mxu1 %v8662_v44  ;;  %v8749_v43 = vld [vmem:[#allocation6 + $0x6e4] ss:$16 sps:$4 sm:$0xff]   ;;  %v8752_v44 = vld [vmem:[#allocation6 + $0x6ec] ss:$16 sps:$4 sm:$0xff]  }
 0x121   :  { %4994 = vmatpush1.bf16.msra.mxu0 %v8657_v45  ;;  %5510 = vmatpush1.bf16.msra.mxu1 %v8660_v46  ;;  %v8747_v45 = vld [vmem:[#allocation6 + $0x6e0] ss:$16 sps:$4 sm:$0xff]   ;;  %v8750_v46 = vld [vmem:[#allocation6 + $0x6e8] ss:$16 sps:$4 sm:$0xff]  }
 0x122   :  { %4995 = vmatprep.subr.bf16.mxu0 %v8665_v47  ;;  %5511 = vmatprep.subr.bf16.mxu1 %v8668_v48  ;;  %v8755_v47 = vld [vmem:[#allocation6 + $0x704] ss:$16 sps:$4 sm:$0xff]   ;;  %v8758_v48 = vld [vmem:[#allocation6 + $0x70c] ss:$16 sps:$4 sm:$0xff]  }
 0x125   :  { %4996 = vmatpush1.bf16.msra.mxu0 %v8663_v49  ;;  %5512 = vmatpush1.bf16.msra.mxu1 %v8666_v50  ;;  %v8753_v49 = vld [vmem:[#allocation6 + $0x700] ss:$16 sps:$4 sm:$0xff]   ;;  %v8756_v50 = vld [vmem:[#allocation6 + $0x708] ss:$16 sps:$4 sm:$0xff]  }
 0x126   :  { %4997 = vmatprep.subr.bf16.mxu0 %v8671_v51  ;;  %5513 = vmatprep.subr.bf16.mxu1 %v8674_v52  ;;  %v8761_v51 = vld [vmem:[#allocation6 + $0x724] ss:$16 sps:$4 sm:$0xff]   ;;  %v8764_v52 = vld [vmem:[#allocation6 + $0x72c] ss:$16 sps:$4 sm:$0xff]  }
 0x129   :  { %4998 = vmatpush1.bf16.msra.mxu0 %v8669_v53  ;;  %5514 = vmatpush1.bf16.msra.mxu1 %v8672_v54  ;;  %v8759_v53 = vld [vmem:[#allocation6 + $0x720] ss:$16 sps:$4 sm:$0xff]   ;;  %v8762_v54 = vld [vmem:[#allocation6 + $0x728] ss:$16 sps:$4 sm:$0xff]  }
 0x12a   :  { %4999 = vmatprep.subr.bf16.mxu0 %v8677_v55  ;;  %5515 = vmatprep.subr.bf16.mxu1 %v8680_v56  ;;  %v8767_v55 = vld [vmem:[#allocation6 + $0x744] ss:$16 sps:$4 sm:$0xff]   ;;  %v8770_v56 = vld [vmem:[#allocation6 + $0x74c] ss:$16 sps:$4 sm:$0xff]  }
 0x12d   :  { %5000 = vmatpush1.bf16.msra.mxu0 %v8675_v57  ;;  %5516 = vmatpush1.bf16.msra.mxu1 %v8678_v58  ;;  %v8765_v57 = vld [vmem:[#allocation6 + $0x740] ss:$16 sps:$4 sm:$0xff]   ;;  %v8768_v58 = vld [vmem:[#allocation6 + $0x748] ss:$16 sps:$4 sm:$0xff]  }
 0x12e   :  { %5001 = vmatprep.subr.bf16.mxu0 %v8683_v59  ;;  %5517 = vmatprep.subr.bf16.mxu1 %v8686_v60  ;;  %v8773_v59 = vld [vmem:[#allocation6 + $0x764] ss:$16 sps:$4 sm:$0xff]   ;;  %v8776_v60 = vld [vmem:[#allocation6 + $0x76c] ss:$16 sps:$4 sm:$0xff]  }
 0x131   :  { %5002 = vmatpush1.bf16.msra.mxu0 %v8681_v61  ;;  %5518 = vmatpush1.bf16.msra.mxu1 %v8684_v62  ;;  %v8771_v61 = vld [vmem:[#allocation6 + $0x760] ss:$16 sps:$4 sm:$0xff]   ;;  %v8774_v62 = vld [vmem:[#allocation6 + $0x768] ss:$16 sps:$4 sm:$0xff]  }
 0x132   :  { %5003 = vmatprep.subr.bf16.mxu0 %v8689_v63  ;;  %5519 = vmatprep.subr.bf16.mxu1 %v8692_v0  ;;  %v8779_v63 = vld [vmem:[#allocation6 + $0x784] ss:$16 sps:$4 sm:$0xff]   ;;  %v8782_v0 = vld [vmem:[#allocation6 + $0x78c] ss:$16 sps:$4 sm:$0xff]  }
 0x135   :  { %5004 = vmatpush1.bf16.msra.mxu0 %v8687_v1  ;;  %5520 = vmatpush1.bf16.msra.mxu1 %v8690_v2  ;;  %v8777_v1 = vld [vmem:[#allocation6 + $0x780] ss:$16 sps:$4 sm:$0xff]   ;;  %v8780_v2 = vld [vmem:[#allocation6 + $0x788] ss:$16 sps:$4 sm:$0xff]  }
 0x136   :  { %5005 = vmatprep.subr.bf16.mxu0 %v8695_v3  ;;  %5521 = vmatprep.subr.bf16.mxu1 %v8698_v4  ;;  %v8785_v3 = vld [vmem:[#allocation6 + $0x7a4] ss:$16 sps:$4 sm:$0xff]   ;;  %v8788_v4 = vld [vmem:[#allocation6 + $0x7ac] ss:$16 sps:$4 sm:$0xff]  }
 0x139   :  { %5006 = vmatpush1.bf16.msra.mxu0 %v8693_v5  ;;  %5522 = vmatpush1.bf16.msra.mxu1 %v8696_v6  ;;  %v8783_v5 = vld [vmem:[#allocation6 + $0x7a0] ss:$16 sps:$4 sm:$0xff]   ;;  %v8786_v6 = vld [vmem:[#allocation6 + $0x7a8] ss:$16 sps:$4 sm:$0xff]  }
 0x13a   :  { %5007 = vmatprep.subr.bf16.mxu0 %v8701_v7  ;;  %5523 = vmatprep.subr.bf16.mxu1 %v8704_v8  ;;  %v8791_v7 = vld [vmem:[#allocation6 + $0x7c4] ss:$16 sps:$4 sm:$0xff]   ;;  %v8794_v8 = vld [vmem:[#allocation6 + $0x7cc] ss:$16 sps:$4 sm:$0xff]  }
 0x13d   :  { %5008 = vmatpush1.bf16.msra.mxu0 %v8699_v9  ;;  %5524 = vmatpush1.bf16.msra.mxu1 %v8702_v10  ;;  %v8789_v9 = vld [vmem:[#allocation6 + $0x7c0] ss:$16 sps:$4 sm:$0xff]   ;;  %v8792_v10 = vld [vmem:[#allocation6 + $0x7c8] ss:$16 sps:$4 sm:$0xff]  }
 0x13e   :  { %5020 = vmatprep.subr.bf16.mxu0 %v8707_v11  ;;  %5536 = vmatprep.subr.bf16.mxu1 %v8710_v12  ;;  %v8797_v11 = vld [vmem:[#allocation6 + $0x7e4] ss:$16 sps:$4 sm:$0xff]   ;;  %v8800_v12 = vld [vmem:[#allocation6 + $0x7ec] ss:$16 sps:$4 sm:$0xff]  }
 0x140   :  { %5010 = vmatmul.mubr.bf16.vlgmr.msra.gmra.mrb[0].mxu0 %v7296_v17  ;;  %5526 = vmatmul.mubr.bf16.vlgmr.msra.gmra.mrb[0].mxu1 %v7296_v17  ;;  %v8803_v17 = vld [vmem:[#allocation6 + $0x804] ss:$16 sps:$4 sm:$0xff]  }
 0x141   :  { %5021 = vmatpush1.bf16.msra.mxu0 %v8705_v13  ;;  %5537 = vmatpush1.bf16.msra.mxu1 %v8708_v16  ;;  %v8795_v13 = vld [vmem:[#allocation6 + $0x7e0] ss:$16 sps:$4 sm:$0xff]   ;;  %v8798_v16 = vld [vmem:[#allocation6 + $0x7e8] ss:$16 sps:$4 sm:$0xff]  }
 0x142   :  { %5022 = vmatprep.subr.bf16.mxu0 %v8713_v20  ;;  %5538 = vmatprep.subr.bf16.mxu1 %v8716_v21  ;;  %v8806_v20 = vld [vmem:[#allocation6 + $0x80c] ss:$16 sps:$4 sm:$0xff]   ;;  %v10141_v21 = vld [vmem:[#allocation3 + $0x20] sm:$0xff] }
 0x143   :  { %5052 = vmatprep.mubr.bf16.mxu0 %v7299_v22  ;;  %5568 = vmatprep.mubr.bf16.mxu1 %v7299_v22  ;;  %v7298_v22 = vcombine.low %v10135_v18, %v10137_v19  ;;  %v8815_v18 = vld [vmem:[#allocation6 + $0x844] ss:$16 sps:$4 sm:$0xff]   ;;  %v8818_v19 = vld [vmem:[#allocation6 + $0x84c] ss:$16 sps:$4 sm:$0xff]  }
 0x145   :  { %5023 = vmatpush1.bf16.msra.mxu0 %v8711_v23  ;;  %5539 = vmatpush1.bf16.msra.mxu1 %v8714_v24  ;;  %v10145_v23 = vld [vmem:[#allocation3 + $0x80] sm:$0xff] }
 0x146   :  { %5024 = vmatprep.subr.bf16.mxu0 %v8719_v14  ;;  %5540 = vmatprep.subr.bf16.mxu1 %v8722_v15  ;;  %v8801_v24 = vld [vmem:[#allocation6 + $0x800] ss:$16 sps:$4 sm:$0xff]   ;;  %v8804_v14 = vld [vmem:[#allocation6 + $0x808] ss:$16 sps:$4 sm:$0xff]   ;;  %v8809_v15 = vld [vmem:[#allocation6 + $0x824] ss:$16 sps:$4 sm:$0xff]  }
 0x149   :  { %5025 = vmatpush1.bf16.msra.mxu0 %v8717_v25  ;;  %5541 = vmatpush1.bf16.msra.mxu1 %v8720_v26  ;;  %v8812_v25 = vld [vmem:[#allocation6 + $0x82c] ss:$16 sps:$4 sm:$0xff]   ;;  %v7301_v26 = vcombine.high %v10141_v21, %v10145_v23 }
 0x14a   :  { %5026 = vmatprep.subr.bf16.mxu0 %v8725_v27  ;;  %5542 = vmatprep.subr.bf16.mxu1 %v8728_v28  ;;  %v8807_v27 = vld [vmem:[#allocation6 + $0x820] ss:$16 sps:$4 sm:$0xff]   ;;  %v8810_v28 = vld [vmem:[#allocation6 + $0x828] ss:$16 sps:$4 sm:$0xff]  }
 0x14d   :  { %5027 = vmatpush1.bf16.msra.mxu0 %v8723_v29  ;;  %5543 = vmatpush1.bf16.msra.mxu1 %v8726_v30  ;;  %v8813_v29 = vld [vmem:[#allocation6 + $0x840] ss:$16 sps:$4 sm:$0xff]   ;;  %v8816_v30 = vld [vmem:[#allocation6 + $0x848] ss:$16 sps:$4 sm:$0xff]  }
 0x14e   :  { %5028 = vmatprep.subr.bf16.mxu0 %v8731_v31  ;;  %5544 = vmatprep.subr.bf16.mxu1 %v8734_v32  ;;  %v8821_v31 = vld [vmem:[#allocation6 + $0x864] ss:$16 sps:$4 sm:$0xff]   ;;  %v8824_v32 = vld [vmem:[#allocation6 + $0x86c] ss:$16 sps:$4 sm:$0xff]  }
 0x151   :  { %5029 = vmatpush1.bf16.msra.mxu0 %v8729_v33  ;;  %5545 = vmatpush1.bf16.msra.mxu1 %v8732_v34  ;;  %v8819_v33 = vld [vmem:[#allocation6 + $0x860] ss:$16 sps:$4 sm:$0xff]   ;;  %v8822_v34 = vld [vmem:[#allocation6 + $0x868] ss:$16 sps:$4 sm:$0xff]  }
 0x152   :  { %5030 = vmatprep.subr.bf16.mxu0 %v8737_v35  ;;  %5546 = vmatprep.subr.bf16.mxu1 %v8740_v36  ;;  %v8827_v35 = vld [vmem:[#allocation6 + $0x884] ss:$16 sps:$4 sm:$0xff]   ;;  %v8830_v36 = vld [vmem:[#allocation6 + $0x88c] ss:$16 sps:$4 sm:$0xff]  }
 0x155   :  { %5031 = vmatpush1.bf16.msra.mxu0 %v8735_v37  ;;  %5547 = vmatpush1.bf16.msra.mxu1 %v8738_v38  ;;  %v8825_v37 = vld [vmem:[#allocation6 + $0x880] ss:$16 sps:$4 sm:$0xff]   ;;  %v8828_v38 = vld [vmem:[#allocation6 + $0x888] ss:$16 sps:$4 sm:$0xff]  }
 0x156   :  { %5032 = vmatprep.subr.bf16.mxu0 %v8743_v39  ;;  %5548 = vmatprep.subr.bf16.mxu1 %v8746_v40  ;;  %v8833_v39 = vld [vmem:[#allocation6 + $0x8a4] ss:$16 sps:$4 sm:$0xff]   ;;  %v8836_v40 = vld [vmem:[#allocation6 + $0x8ac] ss:$16 sps:$4 sm:$0xff]  }
 0x159   :  { %5033 = vmatpush1.bf16.msra.mxu0 %v8741_v41  ;;  %5549 = vmatpush1.bf16.msra.mxu1 %v8744_v42  ;;  %v8831_v41 = vld [vmem:[#allocation6 + $0x8a0] ss:$16 sps:$4 sm:$0xff]   ;;  %v8834_v42 = vld [vmem:[#allocation6 + $0x8a8] ss:$16 sps:$4 sm:$0xff]  }
 0x15a   :  { %5034 = vmatprep.subr.bf16.mxu0 %v8749_v43  ;;  %5550 = vmatprep.subr.bf16.mxu1 %v8752_v44  ;;  %v8839_v43 = vld [vmem:[#allocation6 + $0x8c4] ss:$16 sps:$4 sm:$0xff]   ;;  %v8842_v44 = vld [vmem:[#allocation6 + $0x8cc] ss:$16 sps:$4 sm:$0xff]  }
 0x15d   :  { %5035 = vmatpush1.bf16.msra.mxu0 %v8747_v45  ;;  %5551 = vmatpush1.bf16.msra.mxu1 %v8750_v46  ;;  %v8837_v45 = vld [vmem:[#allocation6 + $0x8c0] ss:$16 sps:$4 sm:$0xff]   ;;  %v8840_v46 = vld [vmem:[#allocation6 + $0x8c8] ss:$16 sps:$4 sm:$0xff]  }
 0x15e   :  { %5036 = vmatprep.subr.bf16.mxu0 %v8755_v47  ;;  %5552 = vmatprep.subr.bf16.mxu1 %v8758_v48  ;;  %v8845_v47 = vld [vmem:[#allocation6 + $0x8e4] ss:$16 sps:$4 sm:$0xff]   ;;  %v8848_v48 = vld [vmem:[#allocation6 + $0x8ec] ss:$16 sps:$4 sm:$0xff]  }
 0x161   :  { %5037 = vmatpush1.bf16.msra.mxu0 %v8753_v49  ;;  %5553 = vmatpush1.bf16.msra.mxu1 %v8756_v50  ;;  %v8843_v49 = vld [vmem:[#allocation6 + $0x8e0] ss:$16 sps:$4 sm:$0xff]   ;;  %v8846_v50 = vld [vmem:[#allocation6 + $0x8e8] ss:$16 sps:$4 sm:$0xff]  }
 0x162   :  { %5038 = vmatprep.subr.bf16.mxu0 %v8761_v51  ;;  %5554 = vmatprep.subr.bf16.mxu1 %v8764_v52  ;;  %v8851_v51 = vld [vmem:[#allocation6 + $0x904] ss:$16 sps:$4 sm:$0xff]   ;;  %v8854_v52 = vld [vmem:[#allocation6 + $0x90c] ss:$16 sps:$4 sm:$0xff]  }
 0x165   :  { %5039 = vmatpush1.bf16.msra.mxu0 %v8759_v53  ;;  %5555 = vmatpush1.bf16.msra.mxu1 %v8762_v54  ;;  %v8849_v53 = vld [vmem:[#allocation6 + $0x900] ss:$16 sps:$4 sm:$0xff]   ;;  %v8852_v54 = vld [vmem:[#allocation6 + $0x908] ss:$16 sps:$4 sm:$0xff]  }
 0x166   :  { %5040 = vmatprep.subr.bf16.mxu0 %v8767_v55  ;;  %5556 = vmatprep.subr.bf16.mxu1 %v8770_v56  ;;  %v8857_v55 = vld [vmem:[#allocation6 + $0x924] ss:$16 sps:$4 sm:$0xff]   ;;  %v8860_v56 = vld [vmem:[#allocation6 + $0x92c] ss:$16 sps:$4 sm:$0xff]  }
 0x169   :  { %5041 = vmatpush1.bf16.msra.mxu0 %v8765_v57  ;;  %5557 = vmatpush1.bf16.msra.mxu1 %v8768_v58  ;;  %v8855_v57 = vld [vmem:[#allocation6 + $0x920] ss:$16 sps:$4 sm:$0xff]   ;;  %v8858_v58 = vld [vmem:[#allocation6 + $0x928] ss:$16 sps:$4 sm:$0xff]  }
 0x16a   :  { %5042 = vmatprep.subr.bf16.mxu0 %v8773_v59  ;;  %5558 = vmatprep.subr.bf16.mxu1 %v8776_v60  ;;  %v8863_v59 = vld [vmem:[#allocation6 + $0x944] ss:$16 sps:$4 sm:$0xff]   ;;  %v8866_v60 = vld [vmem:[#allocation6 + $0x94c] ss:$16 sps:$4 sm:$0xff]  }
 0x16d   :  { %5043 = vmatpush1.bf16.msra.mxu0 %v8771_v61  ;;  %5559 = vmatpush1.bf16.msra.mxu1 %v8774_v62  ;;  %v8861_v61 = vld [vmem:[#allocation6 + $0x940] ss:$16 sps:$4 sm:$0xff]   ;;  %v8864_v62 = vld [vmem:[#allocation6 + $0x948] ss:$16 sps:$4 sm:$0xff]  }
 0x16e   :  { %5044 = vmatprep.subr.bf16.mxu0 %v8779_v63  ;;  %5560 = vmatprep.subr.bf16.mxu1 %v8782_v0  ;;  %v8869_v63 = vld [vmem:[#allocation6 + $0x964] ss:$16 sps:$4 sm:$0xff]   ;;  %v8872_v0 = vld [vmem:[#allocation6 + $0x96c] ss:$16 sps:$4 sm:$0xff]  }
 0x171   :  { %5045 = vmatpush1.bf16.msra.mxu0 %v8777_v1  ;;  %5561 = vmatpush1.bf16.msra.mxu1 %v8780_v2  ;;  %v8867_v1 = vld [vmem:[#allocation6 + $0x960] ss:$16 sps:$4 sm:$0xff]   ;;  %v8870_v2 = vld [vmem:[#allocation6 + $0x968] ss:$16 sps:$4 sm:$0xff]  }
 0x172   :  { %5046 = vmatprep.subr.bf16.mxu0 %v8785_v3  ;;  %5562 = vmatprep.subr.bf16.mxu1 %v8788_v4  ;;  %v8875_v3 = vld [vmem:[#allocation6 + $0x984] ss:$16 sps:$4 sm:$0xff]   ;;  %v8878_v4 = vld [vmem:[#allocation6 + $0x98c] ss:$16 sps:$4 sm:$0xff]  }
 0x175   :  { %5047 = vmatpush1.bf16.msra.mxu0 %v8783_v5  ;;  %5563 = vmatpush1.bf16.msra.mxu1 %v8786_v6  ;;  %v8873_v5 = vld [vmem:[#allocation6 + $0x980] ss:$16 sps:$4 sm:$0xff]   ;;  %v8876_v6 = vld [vmem:[#allocation6 + $0x988] ss:$16 sps:$4 sm:$0xff]  }
 0x176   :  { %5048 = vmatprep.subr.bf16.mxu0 %v8791_v7  ;;  %5564 = vmatprep.subr.bf16.mxu1 %v8794_v8  ;;  %v8881_v7 = vld [vmem:[#allocation6 + $0x9a4] ss:$16 sps:$4 sm:$0xff]   ;;  %v8884_v8 = vld [vmem:[#allocation6 + $0x9ac] ss:$16 sps:$4 sm:$0xff]  }
 0x179   :  { %5049 = vmatpush1.bf16.msra.mxu0 %v8789_v9  ;;  %5565 = vmatpush1.bf16.msra.mxu1 %v8792_v10  ;;  %v8879_v9 = vld [vmem:[#allocation6 + $0x9a0] ss:$16 sps:$4 sm:$0xff]   ;;  %v8882_v10 = vld [vmem:[#allocation6 + $0x9a8] ss:$16 sps:$4 sm:$0xff]  }
 0x17a   :  { %5050 = vmatprep.subr.bf16.mxu0 %v8797_v11  ;;  %5566 = vmatprep.subr.bf16.mxu1 %v8800_v12  ;;  %v8887_v11 = vld [vmem:[#allocation6 + $0x9c4] ss:$16 sps:$4 sm:$0xff]   ;;  %v8890_v12 = vld [vmem:[#allocation6 + $0x9cc] ss:$16 sps:$4 sm:$0xff]  }
 0x17d   :  { %5051 = vmatpush1.bf16.msra.mxu0 %v8795_v13  ;;  %5567 = vmatpush1.bf16.msra.mxu1 %v8798_v16  ;;  %v8885_v13 = vld [vmem:[#allocation6 + $0x9c0] ss:$16 sps:$4 sm:$0xff]   ;;  %v8888_v16 = vld [vmem:[#allocation6 + $0x9c8] ss:$16 sps:$4 sm:$0xff]  }
 0x17e   :  { %5063 = vmatprep.subr.bf16.mxu0 %v8803_v17  ;;  %5579 = vmatprep.subr.bf16.mxu1 %v8806_v20  ;;  %v8893_v17 = vld [vmem:[#allocation6 + $0x9e4] ss:$16 sps:$4 sm:$0xff]   ;;  %v8896_v20 = vld [vmem:[#allocation6 + $0x9ec] ss:$16 sps:$4 sm:$0xff]  }
 0x180   :  { %5053 = vmatmul.mubr.bf16.vlgmr.msra.gmra.mrb[0].mxu0 %v7298_v22  ;;  %5569 = vmatmul.mubr.bf16.vlgmr.msra.gmra.mrb[0].mxu1 %v7298_v22  ;;  %v8891_v22 = vld [vmem:[#allocation6 + $0x9e0] ss:$16 sps:$4 sm:$0xff]  }
 0x181   :  { %5064 = vmatpush1.bf16.msra.mxu0 %v8801_v24  ;;  %5580 = vmatpush1.bf16.msra.mxu1 %v8804_v14  ;;  %v8894_v24 = vld [vmem:[#allocation6 + $0x9e8] ss:$16 sps:$4 sm:$0xff]   ;;  %v8899_v14 = vld [vmem:[#allocation6 + $0xa04] ss:$16 sps:$4 sm:$0xff]  }
 0x182   :  { %5065 = vmatprep.subr.bf16.mxu0 %v8809_v15  ;;  %5581 = vmatprep.subr.bf16.mxu1 %v8812_v25  ;;  %v8902_v15 = vld [vmem:[#allocation6 + $0xa0c] ss:$16 sps:$4 sm:$0xff]  }
 0x183   :  { %5095 = vmatprep.mubr.bf16.mxu0 %v7301_v26  ;;  %5611 = vmatprep.mubr.bf16.mxu1 %v7301_v26  ;;  %v10149_v25 = vld [vmem:[#allocation3 + $0x28] sm:$0xff] }
 0x184   :  { %v10151_v26 = vld [vmem:[#allocation3 + $0x88] sm:$0xff] }
 0x185   :  { %5066 = vmatpush1.bf16.msra.mxu0 %v8807_v27  ;;  %5582 = vmatpush1.bf16.msra.mxu1 %v8810_v28  ;;  %v7300_v27 = vcombine.low %v10141_v21, %v10145_v23  ;;  %v8897_v28 = vld [vmem:[#allocation6 + $0xa00] ss:$16 sps:$4 sm:$0xff]   ;;  %v8911_v21 = vld [vmem:[#allocation6 + $0xa44] ss:$16 sps:$4 sm:$0xff]   ;;  %v8914_v23 = vld [vmem:[#allocation6 + $0xa4c] ss:$16 sps:$4 sm:$0xff]  }
 0x186   :  { %5067 = vmatprep.subr.bf16.mxu0 %v8815_v18  ;;  %5583 = vmatprep.subr.bf16.mxu1 %v8818_v19  ;;  %v8900_v18 = vld [vmem:[#allocation6 + $0xa08] ss:$16 sps:$4 sm:$0xff]   ;;  %v8905_v19 = vld [vmem:[#allocation6 + $0xa24] ss:$16 sps:$4 sm:$0xff]  }
 0x189   :  { %5068 = vmatpush1.bf16.msra.mxu0 %v8813_v29  ;;  %5584 = vmatpush1.bf16.msra.mxu1 %v8816_v30  ;;  %v8908_v29 = vld [vmem:[#allocation6 + $0xa2c] ss:$16 sps:$4 sm:$0xff]   ;;  %v7303_v30 = vcombine.high %v10149_v25, %v10151_v26 }
 0x18a   :  { %5069 = vmatprep.subr.bf16.mxu0 %v8821_v31  ;;  %5585 = vmatprep.subr.bf16.mxu1 %v8824_v32  ;;  %v8903_v31 = vld [vmem:[#allocation6 + $0xa20] ss:$16 sps:$4 sm:$0xff]   ;;  %v8906_v32 = vld [vmem:[#allocation6 + $0xa28] ss:$16 sps:$4 sm:$0xff]  }
 0x18d   :  { %5070 = vmatpush1.bf16.msra.mxu0 %v8819_v33  ;;  %5586 = vmatpush1.bf16.msra.mxu1 %v8822_v34  ;;  %v8909_v33 = vld [vmem:[#allocation6 + $0xa40] ss:$16 sps:$4 sm:$0xff]   ;;  %v8912_v34 = vld [vmem:[#allocation6 + $0xa48] ss:$16 sps:$4 sm:$0xff]  }
 0x18e   :  { %5071 = vmatprep.subr.bf16.mxu0 %v8827_v35  ;;  %5587 = vmatprep.subr.bf16.mxu1 %v8830_v36  ;;  %v8917_v35 = vld [vmem:[#allocation6 + $0xa64] ss:$16 sps:$4 sm:$0xff]   ;;  %v8920_v36 = vld [vmem:[#allocation6 + $0xa6c] ss:$16 sps:$4 sm:$0xff]  }
 0x191   :  { %5072 = vmatpush1.bf16.msra.mxu0 %v8825_v37  ;;  %5588 = vmatpush1.bf16.msra.mxu1 %v8828_v38  ;;  %v8915_v37 = vld [vmem:[#allocation6 + $0xa60] ss:$16 sps:$4 sm:$0xff]   ;;  %v8918_v38 = vld [vmem:[#allocation6 + $0xa68] ss:$16 sps:$4 sm:$0xff]  }
 0x192   :  { %5073 = vmatprep.subr.bf16.mxu0 %v8833_v39  ;;  %5589 = vmatprep.subr.bf16.mxu1 %v8836_v40  ;;  %v8923_v39 = vld [vmem:[#allocation6 + $0xa84] ss:$16 sps:$4 sm:$0xff]   ;;  %v8926_v40 = vld [vmem:[#allocation6 + $0xa8c] ss:$16 sps:$4 sm:$0xff]  }
 0x195   :  { %5074 = vmatpush1.bf16.msra.mxu0 %v8831_v41  ;;  %5590 = vmatpush1.bf16.msra.mxu1 %v8834_v42  ;;  %v8921_v41 = vld [vmem:[#allocation6 + $0xa80] ss:$16 sps:$4 sm:$0xff]   ;;  %v8924_v42 = vld [vmem:[#allocation6 + $0xa88] ss:$16 sps:$4 sm:$0xff]  }
 0x196   :  { %5075 = vmatprep.subr.bf16.mxu0 %v8839_v43  ;;  %5591 = vmatprep.subr.bf16.mxu1 %v8842_v44  ;;  %v8929_v43 = vld [vmem:[#allocation6 + $0xaa4] ss:$16 sps:$4 sm:$0xff]   ;;  %v8932_v44 = vld [vmem:[#allocation6 + $0xaac] ss:$16 sps:$4 sm:$0xff]  }
 0x199   :  { %5076 = vmatpush1.bf16.msra.mxu0 %v8837_v45  ;;  %5592 = vmatpush1.bf16.msra.mxu1 %v8840_v46  ;;  %v8927_v45 = vld [vmem:[#allocation6 + $0xaa0] ss:$16 sps:$4 sm:$0xff]   ;;  %v8930_v46 = vld [vmem:[#allocation6 + $0xaa8] ss:$16 sps:$4 sm:$0xff]  }
 0x19a   :  { %5077 = vmatprep.subr.bf16.mxu0 %v8845_v47  ;;  %5593 = vmatprep.subr.bf16.mxu1 %v8848_v48  ;;  %v8935_v47 = vld [vmem:[#allocation6 + $0xac4] ss:$16 sps:$4 sm:$0xff]   ;;  %v8938_v48 = vld [vmem:[#allocation6 + $0xacc] ss:$16 sps:$4 sm:$0xff]  }
 0x19d   :  { %5078 = vmatpush1.bf16.msra.mxu0 %v8843_v49  ;;  %5594 = vmatpush1.bf16.msra.mxu1 %v8846_v50  ;;  %v8933_v49 = vld [vmem:[#allocation6 + $0xac0] ss:$16 sps:$4 sm:$0xff]   ;;  %v8936_v50 = vld [vmem:[#allocation6 + $0xac8] ss:$16 sps:$4 sm:$0xff]  }
 0x19e   :  { %5079 = vmatprep.subr.bf16.mxu0 %v8851_v51  ;;  %5595 = vmatprep.subr.bf16.mxu1 %v8854_v52  ;;  %v8941_v51 = vld [vmem:[#allocation6 + $0xae4] ss:$16 sps:$4 sm:$0xff]   ;;  %v8944_v52 = vld [vmem:[#allocation6 + $0xaec] ss:$16 sps:$4 sm:$0xff]  }
 0x1a1   :  { %5080 = vmatpush1.bf16.msra.mxu0 %v8849_v53  ;;  %5596 = vmatpush1.bf16.msra.mxu1 %v8852_v54  ;;  %v8939_v53 = vld [vmem:[#allocation6 + $0xae0] ss:$16 sps:$4 sm:$0xff]   ;;  %v8942_v54 = vld [vmem:[#allocation6 + $0xae8] ss:$16 sps:$4 sm:$0xff]  }
 0x1a2   :  { %5081 = vmatprep.subr.bf16.mxu0 %v8857_v55  ;;  %5597 = vmatprep.subr.bf16.mxu1 %v8860_v56  ;;  %v8947_v55 = vld [vmem:[#allocation6 + $0xb04] ss:$16 sps:$4 sm:$0xff]   ;;  %v8950_v56 = vld [vmem:[#allocation6 + $0xb0c] ss:$16 sps:$4 sm:$0xff]  }
 0x1a5   :  { %5082 = vmatpush1.bf16.msra.mxu0 %v8855_v57  ;;  %5598 = vmatpush1.bf16.msra.mxu1 %v8858_v58  ;;  %v8945_v57 = vld [vmem:[#allocation6 + $0xb00] ss:$16 sps:$4 sm:$0xff]   ;;  %v8948_v58 = vld [vmem:[#allocation6 + $0xb08] ss:$16 sps:$4 sm:$0xff]  }
 0x1a6   :  { %5083 = vmatprep.subr.bf16.mxu0 %v8863_v59  ;;  %5599 = vmatprep.subr.bf16.mxu1 %v8866_v60  ;;  %v8953_v59 = vld [vmem:[#allocation6 + $0xb24] ss:$16 sps:$4 sm:$0xff]   ;;  %v8956_v60 = vld [vmem:[#allocation6 + $0xb2c] ss:$16 sps:$4 sm:$0xff]  }
 0x1a9   :  { %5084 = vmatpush1.bf16.msra.mxu0 %v8861_v61  ;;  %5600 = vmatpush1.bf16.msra.mxu1 %v8864_v62  ;;  %v8951_v61 = vld [vmem:[#allocation6 + $0xb20] ss:$16 sps:$4 sm:$0xff]   ;;  %v8954_v62 = vld [vmem:[#allocation6 + $0xb28] ss:$16 sps:$4 sm:$0xff]  }
 0x1aa   :  { %5085 = vmatprep.subr.bf16.mxu0 %v8869_v63  ;;  %5601 = vmatprep.subr.bf16.mxu1 %v8872_v0  ;;  %v8959_v63 = vld [vmem:[#allocation6 + $0xb44] ss:$16 sps:$4 sm:$0xff]   ;;  %v8962_v0 = vld [vmem:[#allocation6 + $0xb4c] ss:$16 sps:$4 sm:$0xff]  }
 0x1ad   :  { %5086 = vmatpush1.bf16.msra.mxu0 %v8867_v1  ;;  %5602 = vmatpush1.bf16.msra.mxu1 %v8870_v2  ;;  %v8957_v1 = vld [vmem:[#allocation6 + $0xb40] ss:$16 sps:$4 sm:$0xff]   ;;  %v8960_v2 = vld [vmem:[#allocation6 + $0xb48] ss:$16 sps:$4 sm:$0xff]  }
 0x1ae   :  { %5087 = vmatprep.subr.bf16.mxu0 %v8875_v3  ;;  %5603 = vmatprep.subr.bf16.mxu1 %v8878_v4  ;;  %v8965_v3 = vld [vmem:[#allocation6 + $0xb64] ss:$16 sps:$4 sm:$0xff]   ;;  %v8968_v4 = vld [vmem:[#allocation6 + $0xb6c] ss:$16 sps:$4 sm:$0xff]  }
 0x1b1   :  { %5088 = vmatpush1.bf16.msra.mxu0 %v8873_v5  ;;  %5604 = vmatpush1.bf16.msra.mxu1 %v8876_v6  ;;  %v8963_v5 = vld [vmem:[#allocation6 + $0xb60] ss:$16 sps:$4 sm:$0xff]   ;;  %v8966_v6 = vld [vmem:[#allocation6 + $0xb68] ss:$16 sps:$4 sm:$0xff]  }
 0x1b2   :  { %5089 = vmatprep.subr.bf16.mxu0 %v8881_v7  ;;  %5605 = vmatprep.subr.bf16.mxu1 %v8884_v8  ;;  %v8971_v7 = vld [vmem:[#allocation6 + $0xb84] ss:$16 sps:$4 sm:$0xff]   ;;  %v8974_v8 = vld [vmem:[#allocation6 + $0xb8c] ss:$16 sps:$4 sm:$0xff]  }
 0x1b5   :  { %5090 = vmatpush1.bf16.msra.mxu0 %v8879_v9  ;;  %5606 = vmatpush1.bf16.msra.mxu1 %v8882_v10  ;;  %v8969_v9 = vld [vmem:[#allocation6 + $0xb80] ss:$16 sps:$4 sm:$0xff]   ;;  %v8972_v10 = vld [vmem:[#allocation6 + $0xb88] ss:$16 sps:$4 sm:$0xff]  }
 0x1b6   :  { %5091 = vmatprep.subr.bf16.mxu0 %v8887_v11  ;;  %5607 = vmatprep.subr.bf16.mxu1 %v8890_v12  ;;  %v8977_v11 = vld [vmem:[#allocation6 + $0xba4] ss:$16 sps:$4 sm:$0xff]   ;;  %v8980_v12 = vld [vmem:[#allocation6 + $0xbac] ss:$16 sps:$4 sm:$0xff]  }
 0x1b9   :  { %5092 = vmatpush1.bf16.msra.mxu0 %v8885_v13  ;;  %5608 = vmatpush1.bf16.msra.mxu1 %v8888_v16  ;;  %v8975_v13 = vld [vmem:[#allocation6 + $0xba0] ss:$16 sps:$4 sm:$0xff]   ;;  %v8978_v16 = vld [vmem:[#allocation6 + $0xba8] ss:$16 sps:$4 sm:$0xff]  }
 0x1ba   :  { %5093 = vmatprep.subr.bf16.mxu0 %v8893_v17  ;;  %5609 = vmatprep.subr.bf16.mxu1 %v8896_v20  ;;  %v8983_v17 = vld [vmem:[#allocation6 + $0xbc4] ss:$16 sps:$4 sm:$0xff]   ;;  %v8986_v20 = vld [vmem:[#allocation6 + $0xbcc] ss:$16 sps:$4 sm:$0xff]  }
 0x1bd   :  { %5094 = vmatpush1.bf16.msra.mxu0 %v8891_v22  ;;  %5610 = vmatpush1.bf16.msra.mxu1 %v8894_v24  ;;  %v8981_v22 = vld [vmem:[#allocation6 + $0xbc0] ss:$16 sps:$4 sm:$0xff]   ;;  %v8984_v24 = vld [vmem:[#allocation6 + $0xbc8] ss:$16 sps:$4 sm:$0xff]  }
 0x1be   :  { %5106 = vmatprep.subr.bf16.mxu0 %v8899_v14  ;;  %5622 = vmatprep.subr.bf16.mxu1 %v8902_v15  ;;  %v8989_v14 = vld [vmem:[#allocation6 + $0xbe4] ss:$16 sps:$4 sm:$0xff]   ;;  %v8992_v15 = vld [vmem:[#allocation6 + $0xbec] ss:$16 sps:$4 sm:$0xff]  }
 0x1c0   :  { %5096 = vmatmul.mubr.bf16.vlgmr.msra.gmra.mrb[0].mxu0 %v7300_v27  ;;  %5612 = vmatmul.mubr.bf16.vlgmr.msra.gmra.mrb[0].mxu1 %v7300_v27  ;;  %v8987_v27 = vld [vmem:[#allocation6 + $0xbe0] ss:$16 sps:$4 sm:$0xff]  }
 0x1c1   :  { %5107 = vmatpush1.bf16.msra.mxu0 %v8897_v28  ;;  %5623 = vmatpush1.bf16.msra.mxu1 %v8900_v18  ;;  %v8990_v28 = vld [vmem:[#allocation6 + $0xbe8] ss:$16 sps:$4 sm:$0xff]   ;;  %v8995_v18 = vld [vmem:[#allocation6 + $0xc04] ss:$16 sps:$4 sm:$0xff]  }
 0x1c2   :  { %5108 = vmatprep.subr.bf16.mxu0 %v8905_v19  ;;  %5624 = vmatprep.subr.bf16.mxu1 %v8908_v29  ;;  %v8998_v19 = vld [vmem:[#allocation6 + $0xc0c] ss:$16 sps:$4 sm:$0xff]   ;;  %v10157_v29 = vld [vmem:[#allocation3 + $0x30] sm:$0xff] }
 0x1c3   :  { %5138 = vmatprep.mubr.bf16.mxu0 %v7303_v30  ;;  %5654 = vmatprep.mubr.bf16.mxu1 %v7303_v30  ;;  %v10159_v30 = vld [vmem:[#allocation3 + $0x90] sm:$0xff] }
 0x1c5   :  { %5109 = vmatpush1.bf16.msra.mxu0 %v8903_v31  ;;  %5625 = vmatpush1.bf16.msra.mxu1 %v8906_v32  ;;  %v7302_v31 = vcombine.low %v10149_v25, %v10151_v26  ;;  %v8993_v32 = vld [vmem:[#allocation6 + $0xc00] ss:$16 sps:$4 sm:$0xff]   ;;  %v9007_v25 = vld [vmem:[#allocation6 + $0xc44] ss:$16 sps:$4 sm:$0xff]   ;;  %v9010_v26 = vld [vmem:[#allocation6 + $0xc4c] ss:$16 sps:$4 sm:$0xff]  }
 0x1c6   :  { %5110 = vmatprep.subr.bf16.mxu0 %v8911_v21  ;;  %5626 = vmatprep.subr.bf16.mxu1 %v8914_v23  ;;  %v8996_v21 = vld [vmem:[#allocation6 + $0xc08] ss:$16 sps:$4 sm:$0xff]   ;;  %v9001_v23 = vld [vmem:[#allocation6 + $0xc24] ss:$16 sps:$4 sm:$0xff]  }
 0x1c9   :  { %5111 = vmatpush1.bf16.msra.mxu0 %v8909_v33  ;;  %5627 = vmatpush1.bf16.msra.mxu1 %v8912_v34  ;;  %v9004_v33 = vld [vmem:[#allocation6 + $0xc2c] ss:$16 sps:$4 sm:$0xff]   ;;  %v7305_v34 = vcombine.high %v10157_v29, %v10159_v30 }
 0x1ca   :  { %5112 = vmatprep.subr.bf16.mxu0 %v8917_v35  ;;  %5628 = vmatprep.subr.bf16.mxu1 %v8920_v36  ;;  %v8999_v35 = vld [vmem:[#allocation6 + $0xc20] ss:$16 sps:$4 sm:$0xff]   ;;  %v9002_v36 = vld [vmem:[#allocation6 + $0xc28] ss:$16 sps:$4 sm:$0xff]  }
 0x1cd   :  { %5113 = vmatpush1.bf16.msra.mxu0 %v8915_v37  ;;  %5629 = vmatpush1.bf16.msra.mxu1 %v8918_v38  ;;  %v9005_v37 = vld [vmem:[#allocation6 + $0xc40] ss:$16 sps:$4 sm:$0xff]   ;;  %v9008_v38 = vld [vmem:[#allocation6 + $0xc48] ss:$16 sps:$4 sm:$0xff]  }
 0x1ce   :  { %5114 = vmatprep.subr.bf16.mxu0 %v8923_v39  ;;  %5630 = vmatprep.subr.bf16.mxu1 %v8926_v40  ;;  %v9013_v39 = vld [vmem:[#allocation6 + $0xc64] ss:$16 sps:$4 sm:$0xff]   ;;  %v9016_v40 = vld [vmem:[#allocation6 + $0xc6c] ss:$16 sps:$4 sm:$0xff]  }
 0x1d1   :  { %5115 = vmatpush1.bf16.msra.mxu0 %v8921_v41  ;;  %5631 = vmatpush1.bf16.msra.mxu1 %v8924_v42  ;;  %v9011_v41 = vld [vmem:[#allocation6 + $0xc60] ss:$16 sps:$4 sm:$0xff]   ;;  %v9014_v42 = vld [vmem:[#allocation6 + $0xc68] ss:$16 sps:$4 sm:$0xff]  }
 0x1d2   :  { %5116 = vmatprep.subr.bf16.mxu0 %v8929_v43  ;;  %5632 = vmatprep.subr.bf16.mxu1 %v8932_v44  ;;  %v9019_v43 = vld [vmem:[#allocation6 + $0xc84] ss:$16 sps:$4 sm:$0xff]   ;;  %v9022_v44 = vld [vmem:[#allocation6 + $0xc8c] ss:$16 sps:$4 sm:$0xff]  }
 0x1d5   :  { %5117 = vmatpush1.bf16.msra.mxu0 %v8927_v45  ;;  %5633 = vmatpush1.bf16.msra.mxu1 %v8930_v46  ;;  %v9017_v45 = vld [vmem:[#allocation6 + $0xc80] ss:$16 sps:$4 sm:$0xff]   ;;  %v9020_v46 = vld [vmem:[#allocation6 + $0xc88] ss:$16 sps:$4 sm:$0xff]  }
 0x1d6   :  { %5118 = vmatprep.subr.bf16.mxu0 %v8935_v47  ;;  %5634 = vmatprep.subr.bf16.mxu1 %v8938_v48  ;;  %v9025_v47 = vld [vmem:[#allocation6 + $0xca4] ss:$16 sps:$4 sm:$0xff]   ;;  %v9028_v48 = vld [vmem:[#allocation6 + $0xcac] ss:$16 sps:$4 sm:$0xff]  }
 0x1d9   :  { %5119 = vmatpush1.bf16.msra.mxu0 %v8933_v49  ;;  %5635 = vmatpush1.bf16.msra.mxu1 %v8936_v50  ;;  %v9023_v49 = vld [vmem:[#allocation6 + $0xca0] ss:$16 sps:$4 sm:$0xff]   ;;  %v9026_v50 = vld [vmem:[#allocation6 + $0xca8] ss:$16 sps:$4 sm:$0xff]  }
 0x1da   :  { %5120 = vmatprep.subr.bf16.mxu0 %v8941_v51  ;;  %5636 = vmatprep.subr.bf16.mxu1 %v8944_v52  ;;  %v9031_v51 = vld [vmem:[#allocation6 + $0xcc4] ss:$16 sps:$4 sm:$0xff]   ;;  %v9034_v52 = vld [vmem:[#allocation6 + $0xccc] ss:$16 sps:$4 sm:$0xff]  }
 0x1dd   :  { %5121 = vmatpush1.bf16.msra.mxu0 %v8939_v53  ;;  %5637 = vmatpush1.bf16.msra.mxu1 %v8942_v54  ;;  %v9029_v53 = vld [vmem:[#allocation6 + $0xcc0] ss:$16 sps:$4 sm:$0xff]   ;;  %v9032_v54 = vld [vmem:[#allocation6 + $0xcc8] ss:$16 sps:$4 sm:$0xff]  }
 0x1de   :  { %5122 = vmatprep.subr.bf16.mxu0 %v8947_v55  ;;  %5638 = vmatprep.subr.bf16.mxu1 %v8950_v56  ;;  %v9037_v55 = vld [vmem:[#allocation6 + $0xce4] ss:$16 sps:$4 sm:$0xff]   ;;  %v9040_v56 = vld [vmem:[#allocation6 + $0xcec] ss:$16 sps:$4 sm:$0xff]  }
 0x1e1   :  { %5123 = vmatpush1.bf16.msra.mxu0 %v8945_v57  ;;  %5639 = vmatpush1.bf16.msra.mxu1 %v8948_v58  ;;  %v9035_v57 = vld [vmem:[#allocation6 + $0xce0] ss:$16 sps:$4 sm:$0xff]   ;;  %v9038_v58 = vld [vmem:[#allocation6 + $0xce8] ss:$16 sps:$4 sm:$0xff]  }
 0x1e2   :  { %5124 = vmatprep.subr.bf16.mxu0 %v8953_v59  ;;  %5640 = vmatprep.subr.bf16.mxu1 %v8956_v60  ;;  %v9043_v59 = vld [vmem:[#allocation6 + $0xd04] ss:$16 sps:$4 sm:$0xff]   ;;  %v9046_v60 = vld [vmem:[#allocation6 + $0xd0c] ss:$16 sps:$4 sm:$0xff]  }
 0x1e5   :  { %5125 = vmatpush1.bf16.msra.mxu0 %v8951_v61  ;;  %5641 = vmatpush1.bf16.msra.mxu1 %v8954_v62  ;;  %v9041_v61 = vld [vmem:[#allocation6 + $0xd00] ss:$16 sps:$4 sm:$0xff]   ;;  %v9044_v62 = vld [vmem:[#allocation6 + $0xd08] ss:$16 sps:$4 sm:$0xff]  }
 0x1e6   :  { %5126 = vmatprep.subr.bf16.mxu0 %v8959_v63  ;;  %5642 = vmatprep.subr.bf16.mxu1 %v8962_v0  ;;  %v9049_v63 = vld [vmem:[#allocation6 + $0xd24] ss:$16 sps:$4 sm:$0xff]   ;;  %v9052_v0 = vld [vmem:[#allocation6 + $0xd2c] ss:$16 sps:$4 sm:$0xff]  }
 0x1e9   :  { %5127 = vmatpush1.bf16.msra.mxu0 %v8957_v1  ;;  %5643 = vmatpush1.bf16.msra.mxu1 %v8960_v2  ;;  %v9047_v1 = vld [vmem:[#allocation6 + $0xd20] ss:$16 sps:$4 sm:$0xff]   ;;  %v9050_v2 = vld [vmem:[#allocation6 + $0xd28] ss:$16 sps:$4 sm:$0xff]  }
 0x1ea   :  { %5128 = vmatprep.subr.bf16.mxu0 %v8965_v3  ;;  %5644 = vmatprep.subr.bf16.mxu1 %v8968_v4  ;;  %v9055_v3 = vld [vmem:[#allocation6 + $0xd44] ss:$16 sps:$4 sm:$0xff]   ;;  %v9058_v4 = vld [vmem:[#allocation6 + $0xd4c] ss:$16 sps:$4 sm:$0xff]  }
 0x1ed   :  { %5129 = vmatpush1.bf16.msra.mxu0 %v8963_v5  ;;  %5645 = vmatpush1.bf16.msra.mxu1 %v8966_v6  ;;  %v9053_v5 = vld [vmem:[#allocation6 + $0xd40] ss:$16 sps:$4 sm:$0xff]   ;;  %v9056_v6 = vld [vmem:[#allocation6 + $0xd48] ss:$16 sps:$4 sm:$0xff]  }
 0x1ee   :  { %5130 = vmatprep.subr.bf16.mxu0 %v8971_v7  ;;  %5646 = vmatprep.subr.bf16.mxu1 %v8974_v8  ;;  %v9061_v7 = vld [vmem:[#allocation6 + $0xd64] ss:$16 sps:$4 sm:$0xff]   ;;  %v9064_v8 = vld [vmem:[#allocation6 + $0xd6c] ss:$16 sps:$4 sm:$0xff]  }
 0x1f1   :  { %5131 = vmatpush1.bf16.msra.mxu0 %v8969_v9  ;;  %5647 = vmatpush1.bf16.msra.mxu1 %v8972_v10  ;;  %v9059_v9 = vld [vmem:[#allocation6 + $0xd60] ss:$16 sps:$4 sm:$0xff]   ;;  %v9062_v10 = vld [vmem:[#allocation6 + $0xd68] ss:$16 sps:$4 sm:$0xff]  }
 0x1f2   :  { %5132 = vmatprep.subr.bf16.mxu0 %v8977_v11  ;;  %5648 = vmatprep.subr.bf16.mxu1 %v8980_v12  ;;  %v9067_v11 = vld [vmem:[#allocation6 + $0xd84] ss:$16 sps:$4 sm:$0xff]   ;;  %v9070_v12 = vld [vmem:[#allocation6 + $0xd8c] ss:$16 sps:$4 sm:$0xff]  }
 0x1f5   :  { %5133 = vmatpush1.bf16.msra.mxu0 %v8975_v13  ;;  %5649 = vmatpush1.bf16.msra.mxu1 %v8978_v16  ;;  %v9065_v13 = vld [vmem:[#allocation6 + $0xd80] ss:$16 sps:$4 sm:$0xff]   ;;  %v9068_v16 = vld [vmem:[#allocation6 + $0xd88] ss:$16 sps:$4 sm:$0xff]  }
 0x1f6   :  { %5134 = vmatprep.subr.bf16.mxu0 %v8983_v17  ;;  %5650 = vmatprep.subr.bf16.mxu1 %v8986_v20  ;;  %v9073_v17 = vld [vmem:[#allocation6 + $0xda4] ss:$16 sps:$4 sm:$0xff]   ;;  %v9076_v20 = vld [vmem:[#allocation6 + $0xdac] ss:$16 sps:$4 sm:$0xff]  }
 0x1f9   :  { %5135 = vmatpush1.bf16.msra.mxu0 %v8981_v22  ;;  %5651 = vmatpush1.bf16.msra.mxu1 %v8984_v24  ;;  %v9071_v22 = vld [vmem:[#allocation6 + $0xda0] ss:$16 sps:$4 sm:$0xff]   ;;  %v9074_v24 = vld [vmem:[#allocation6 + $0xda8] ss:$16 sps:$4 sm:$0xff]  }
 0x1fa   :  { %5136 = vmatprep.subr.bf16.mxu0 %v8989_v14  ;;  %5652 = vmatprep.subr.bf16.mxu1 %v8992_v15  ;;  %v9079_v14 = vld [vmem:[#allocation6 + $0xdc4] ss:$16 sps:$4 sm:$0xff]   ;;  %v9082_v15 = vld [vmem:[#allocation6 + $0xdcc] ss:$16 sps:$4 sm:$0xff]  }
 0x1fd   :  { %5137 = vmatpush1.bf16.msra.mxu0 %v8987_v27  ;;  %5653 = vmatpush1.bf16.msra.mxu1 %v8990_v28  ;;  %v9077_v27 = vld [vmem:[#allocation6 + $0xdc0] ss:$16 sps:$4 sm:$0xff]   ;;  %v9080_v28 = vld [vmem:[#allocation6 + $0xdc8] ss:$16 sps:$4 sm:$0xff]  }
 0x1fe   :  { %5149 = vmatprep.subr.bf16.mxu0 %v8995_v18  ;;  %5665 = vmatprep.subr.bf16.mxu1 %v8998_v19  ;;  %v9085_v18 = vld [vmem:[#allocation6 + $0xde4] ss:$16 sps:$4 sm:$0xff]   ;;  %v9088_v19 = vld [vmem:[#allocation6 + $0xdec] ss:$16 sps:$4 sm:$0xff]  }
 0x200   :  { %5139 = vmatmul.mubr.bf16.vlgmr.msra.gmra.mrb[0].mxu0 %v7302_v31  ;;  %5655 = vmatmul.mubr.bf16.vlgmr.msra.gmra.mrb[0].mxu1 %v7302_v31  ;;  %v9083_v31 = vld [vmem:[#allocation6 + $0xde0] ss:$16 sps:$4 sm:$0xff]  }
 0x201   :  { %5150 = vmatpush1.bf16.msra.mxu0 %v8993_v32  ;;  %5666 = vmatpush1.bf16.msra.mxu1 %v8996_v21  ;;  %v9086_v32 = vld [vmem:[#allocation6 + $0xde8] ss:$16 sps:$4 sm:$0xff]   ;;  %v9091_v21 = vld [vmem:[#allocation6 + $0xe04] ss:$16 sps:$4 sm:$0xff]  }
 0x202   :  { %5151 = vmatprep.subr.bf16.mxu0 %v9001_v23  ;;  %5667 = vmatprep.subr.bf16.mxu1 %v9004_v33  ;;  %v9094_v23 = vld [vmem:[#allocation6 + $0xe0c] ss:$16 sps:$4 sm:$0xff]  }
 0x203   :  { %5181 = vmatprep.mubr.bf16.mxu0 %v7305_v34  ;;  %5697 = vmatprep.mubr.bf16.mxu1 %v7305_v34  ;;  %v10165_v33 = vld [vmem:[#allocation3 + $0x38] sm:$0xff] }
 0x204   :  { %v10167_v34 = vld [vmem:[#allocation3 + $0x98] sm:$0xff] }
 0x205   :  { %5152 = vmatpush1.bf16.msra.mxu0 %v8999_v35  ;;  %5668 = vmatpush1.bf16.msra.mxu1 %v9002_v36  ;;  %v7304_v35 = vcombine.low %v10157_v29, %v10159_v30  ;;  %v9089_v36 = vld [vmem:[#allocation6 + $0xe00] ss:$16 sps:$4 sm:$0xff]   ;;  %v9103_v29 = vld [vmem:[#allocation6 + $0xe44] ss:$16 sps:$4 sm:$0xff]   ;;  %v9106_v30 = vld [vmem:[#allocation6 + $0xe4c] ss:$16 sps:$4 sm:$0xff]  }
 0x206   :  { %5153 = vmatprep.subr.bf16.mxu0 %v9007_v25  ;;  %5669 = vmatprep.subr.bf16.mxu1 %v9010_v26  ;;  %v9092_v25 = vld [vmem:[#allocation6 + $0xe08] ss:$16 sps:$4 sm:$0xff]   ;;  %v9097_v26 = vld [vmem:[#allocation6 + $0xe24] ss:$16 sps:$4 sm:$0xff]  }
 0x209   :  { %5154 = vmatpush1.bf16.msra.mxu0 %v9005_v37  ;;  %5670 = vmatpush1.bf16.msra.mxu1 %v9008_v38  ;;  %v9100_v37 = vld [vmem:[#allocation6 + $0xe2c] ss:$16 sps:$4 sm:$0xff]   ;;  %v7307_v38 = vcombine.high %v10165_v33, %v10167_v34 }
 0x20a   :  { %5155 = vmatprep.subr.bf16.mxu0 %v9013_v39  ;;  %5671 = vmatprep.subr.bf16.mxu1 %v9016_v40  ;;  %v9095_v39 = vld [vmem:[#allocation6 + $0xe20] ss:$16 sps:$4 sm:$0xff]   ;;  %v9098_v40 = vld [vmem:[#allocation6 + $0xe28] ss:$16 sps:$4 sm:$0xff]  }
 0x20d   :  { %5156 = vmatpush1.bf16.msra.mxu0 %v9011_v41  ;;  %5672 = vmatpush1.bf16.msra.mxu1 %v9014_v42  ;;  %v9101_v41 = vld [vmem:[#allocation6 + $0xe40] ss:$16 sps:$4 sm:$0xff]   ;;  %v9104_v42 = vld [vmem:[#allocation6 + $0xe48] ss:$16 sps:$4 sm:$0xff]  }
 0x20e   :  { %5157 = vmatprep.subr.bf16.mxu0 %v9019_v43  ;;  %5673 = vmatprep.subr.bf16.mxu1 %v9022_v44  ;;  %v9109_v43 = vld [vmem:[#allocation6 + $0xe64] ss:$16 sps:$4 sm:$0xff]   ;;  %v9112_v44 = vld [vmem:[#allocation6 + $0xe6c] ss:$16 sps:$4 sm:$0xff]  }
 0x211   :  { %5158 = vmatpush1.bf16.msra.mxu0 %v9017_v45  ;;  %5674 = vmatpush1.bf16.msra.mxu1 %v9020_v46  ;;  %v9107_v45 = vld [vmem:[#allocation6 + $0xe60] ss:$16 sps:$4 sm:$0xff]   ;;  %v9110_v46 = vld [vmem:[#allocation6 + $0xe68] ss:$16 sps:$4 sm:$0xff]  }
 0x212   :  { %5159 = vmatprep.subr.bf16.mxu0 %v9025_v47  ;;  %5675 = vmatprep.subr.bf16.mxu1 %v9028_v48  ;;  %v9115_v47 = vld [vmem:[#allocation6 + $0xe84] ss:$16 sps:$4 sm:$0xff]   ;;  %v9118_v48 = vld [vmem:[#allocation6 + $0xe8c] ss:$16 sps:$4 sm:$0xff]  }
 0x215   :  { %5160 = vmatpush1.bf16.msra.mxu0 %v9023_v49  ;;  %5676 = vmatpush1.bf16.msra.mxu1 %v9026_v50  ;;  %v9113_v49 = vld [vmem:[#allocation6 + $0xe80] ss:$16 sps:$4 sm:$0xff]   ;;  %v9116_v50 = vld [vmem:[#allocation6 + $0xe88] ss:$16 sps:$4 sm:$0xff]  }
 0x216   :  { %5161 = vmatprep.subr.bf16.mxu0 %v9031_v51  ;;  %5677 = vmatprep.subr.bf16.mxu1 %v9034_v52  ;;  %v9121_v51 = vld [vmem:[#allocation6 + $0xea4] ss:$16 sps:$4 sm:$0xff]   ;;  %v9124_v52 = vld [vmem:[#allocation6 + $0xeac] ss:$16 sps:$4 sm:$0xff]  }
 0x219   :  { %5162 = vmatpush1.bf16.msra.mxu0 %v9029_v53  ;;  %5678 = vmatpush1.bf16.msra.mxu1 %v9032_v54  ;;  %v9119_v53 = vld [vmem:[#allocation6 + $0xea0] ss:$16 sps:$4 sm:$0xff]   ;;  %v9122_v54 = vld [vmem:[#allocation6 + $0xea8] ss:$16 sps:$4 sm:$0xff]  }
 0x21a   :  { %5163 = vmatprep.subr.bf16.mxu0 %v9037_v55  ;;  %5679 = vmatprep.subr.bf16.mxu1 %v9040_v56  ;;  %v9127_v55 = vld [vmem:[#allocation6 + $0xec4] ss:$16 sps:$4 sm:$0xff]   ;;  %v9130_v56 = vld [vmem:[#allocation6 + $0xecc] ss:$16 sps:$4 sm:$0xff]  }
 0x21d   :  { %5164 = vmatpush1.bf16.msra.mxu0 %v9035_v57  ;;  %5680 = vmatpush1.bf16.msra.mxu1 %v9038_v58  ;;  %v9125_v57 = vld [vmem:[#allocation6 + $0xec0] ss:$16 sps:$4 sm:$0xff]   ;;  %v9128_v58 = vld [vmem:[#allocation6 + $0xec8] ss:$16 sps:$4 sm:$0xff]  }
 0x21e   :  { %5165 = vmatprep.subr.bf16.mxu0 %v9043_v59  ;;  %5681 = vmatprep.subr.bf16.mxu1 %v9046_v60  ;;  %v9133_v59 = vld [vmem:[#allocation6 + $0xee4] ss:$16 sps:$4 sm:$0xff]   ;;  %v9136_v60 = vld [vmem:[#allocation6 + $0xeec] ss:$16 sps:$4 sm:$0xff]  }
 0x221   :  { %5166 = vmatpush1.bf16.msra.mxu0 %v9041_v61  ;;  %5682 = vmatpush1.bf16.msra.mxu1 %v9044_v62  ;;  %v9131_v61 = vld [vmem:[#allocation6 + $0xee0] ss:$16 sps:$4 sm:$0xff]   ;;  %v9134_v62 = vld [vmem:[#allocation6 + $0xee8] ss:$16 sps:$4 sm:$0xff]  }
 0x222   :  { %5167 = vmatprep.subr.bf16.mxu0 %v9049_v63  ;;  %5683 = vmatprep.subr.bf16.mxu1 %v9052_v0  ;;  %v9139_v63 = vld [vmem:[#allocation6 + $0xf04] ss:$16 sps:$4 sm:$0xff]   ;;  %v9142_v0 = vld [vmem:[#allocation6 + $0xf0c] ss:$16 sps:$4 sm:$0xff]  }
 0x225   :  { %5168 = vmatpush1.bf16.msra.mxu0 %v9047_v1  ;;  %5684 = vmatpush1.bf16.msra.mxu1 %v9050_v2  ;;  %v9137_v1 = vld [vmem:[#allocation6 + $0xf00] ss:$16 sps:$4 sm:$0xff]   ;;  %v9140_v2 = vld [vmem:[#allocation6 + $0xf08] ss:$16 sps:$4 sm:$0xff]  }
 0x226   :  { %5169 = vmatprep.subr.bf16.mxu0 %v9055_v3  ;;  %5685 = vmatprep.subr.bf16.mxu1 %v9058_v4  ;;  %v9145_v3 = vld [vmem:[#allocation6 + $0xf24] ss:$16 sps:$4 sm:$0xff]   ;;  %v9148_v4 = vld [vmem:[#allocation6 + $0xf2c] ss:$16 sps:$4 sm:$0xff]  }
 0x229   :  { %5170 = vmatpush1.bf16.msra.mxu0 %v9053_v5  ;;  %5686 = vmatpush1.bf16.msra.mxu1 %v9056_v6  ;;  %v9143_v5 = vld [vmem:[#allocation6 + $0xf20] ss:$16 sps:$4 sm:$0xff]   ;;  %v9146_v6 = vld [vmem:[#allocation6 + $0xf28] ss:$16 sps:$4 sm:$0xff]  }
 0x22a   :  { %5171 = vmatprep.subr.bf16.mxu0 %v9061_v7  ;;  %5687 = vmatprep.subr.bf16.mxu1 %v9064_v8  ;;  %v9151_v7 = vld [vmem:[#allocation6 + $0xf44] ss:$16 sps:$4 sm:$0xff]   ;;  %v9154_v8 = vld [vmem:[#allocation6 + $0xf4c] ss:$16 sps:$4 sm:$0xff]  }
 0x22d   :  { %5172 = vmatpush1.bf16.msra.mxu0 %v9059_v9  ;;  %5688 = vmatpush1.bf16.msra.mxu1 %v9062_v10  ;;  %v9149_v9 = vld [vmem:[#allocation6 + $0xf40] ss:$16 sps:$4 sm:$0xff]   ;;  %v9152_v10 = vld [vmem:[#allocation6 + $0xf48] ss:$16 sps:$4 sm:$0xff]  }
 0x22e   :  { %5173 = vmatprep.subr.bf16.mxu0 %v9067_v11  ;;  %5689 = vmatprep.subr.bf16.mxu1 %v9070_v12  ;;  %v9157_v11 = vld [vmem:[#allocation6 + $0xf64] ss:$16 sps:$4 sm:$0xff]   ;;  %v9160_v12 = vld [vmem:[#allocation6 + $0xf6c] ss:$16 sps:$4 sm:$0xff]  }
 0x231   :  { %5174 = vmatpush1.bf16.msra.mxu0 %v9065_v13  ;;  %5690 = vmatpush1.bf16.msra.mxu1 %v9068_v16  ;;  %v9155_v13 = vld [vmem:[#allocation6 + $0xf60] ss:$16 sps:$4 sm:$0xff]   ;;  %v9158_v16 = vld [vmem:[#allocation6 + $0xf68] ss:$16 sps:$4 sm:$0xff]  }
 0x232   :  { %5175 = vmatprep.subr.bf16.mxu0 %v9073_v17  ;;  %5691 = vmatprep.subr.bf16.mxu1 %v9076_v20  ;;  %v9163_v17 = vld [vmem:[#allocation6 + $0xf84] ss:$16 sps:$4 sm:$0xff]   ;;  %v9166_v20 = vld [vmem:[#allocation6 + $0xf8c] ss:$16 sps:$4 sm:$0xff]  }
 0x235   :  { %5176 = vmatpush1.bf16.msra.mxu0 %v9071_v22  ;;  %5692 = vmatpush1.bf16.msra.mxu1 %v9074_v24  ;;  %v9161_v22 = vld [vmem:[#allocation6 + $0xf80] ss:$16 sps:$4 sm:$0xff]   ;;  %v9164_v24 = vld [vmem:[#allocation6 + $0xf88] ss:$16 sps:$4 sm:$0xff]  }
 0x236   :  { %5177 = vmatprep.subr.bf16.mxu0 %v9079_v14  ;;  %5693 = vmatprep.subr.bf16.mxu1 %v9082_v15  ;;  %v9169_v14 = vld [vmem:[#allocation6 + $0xfa4] ss:$16 sps:$4 sm:$0xff]   ;;  %v9172_v15 = vld [vmem:[#allocation6 + $0xfac] ss:$16 sps:$4 sm:$0xff]  }
 0x239   :  { %5178 = vmatpush1.bf16.msra.mxu0 %v9077_v27  ;;  %5694 = vmatpush1.bf16.msra.mxu1 %v9080_v28  ;;  %v9167_v27 = vld [vmem:[#allocation6 + $0xfa0] ss:$16 sps:$4 sm:$0xff]   ;;  %v9170_v28 = vld [vmem:[#allocation6 + $0xfa8] ss:$16 sps:$4 sm:$0xff]  }
 0x23a   :  { %5179 = vmatprep.subr.bf16.mxu0 %v9085_v18  ;;  %5695 = vmatprep.subr.bf16.mxu1 %v9088_v19  ;;  %v9175_v18 = vld [vmem:[#allocation6 + $0xfc4] ss:$16 sps:$4 sm:$0xff]   ;;  %v9178_v19 = vld [vmem:[#allocation6 + $0xfcc] ss:$16 sps:$4 sm:$0xff]  }
 0x23d   :  { %5180 = vmatpush1.bf16.msra.mxu0 %v9083_v31  ;;  %5696 = vmatpush1.bf16.msra.mxu1 %v9086_v32  ;;  %v9173_v31 = vld [vmem:[#allocation6 + $0xfc0] ss:$16 sps:$4 sm:$0xff]   ;;  %v9176_v32 = vld [vmem:[#allocation6 + $0xfc8] ss:$16 sps:$4 sm:$0xff]  }
 0x23e   :  { %5192 = vmatprep.subr.bf16.mxu0 %v9091_v21  ;;  %5708 = vmatprep.subr.bf16.mxu1 %v9094_v23  ;;  %v9181_v21 = vld [vmem:[#allocation6 + $0xfe4] ss:$16 sps:$4 sm:$0xff]   ;;  %v9184_v23 = vld [vmem:[#allocation6 + $0xfec] ss:$16 sps:$4 sm:$0xff]  }
 0x240   :  { %5182 = vmatmul.mubr.bf16.vlgmr.msra.gmra.mrb[0].mxu0 %v7304_v35  ;;  %5698 = vmatmul.mubr.bf16.vlgmr.msra.gmra.mrb[0].mxu1 %v7304_v35  ;;  %v9179_v35 = vld [vmem:[#allocation6 + $0xfe0] ss:$16 sps:$4 sm:$0xff]  }
 0x241   :  { %5193 = vmatpush1.bf16.msra.mxu0 %v9089_v36  ;;  %5709 = vmatpush1.bf16.msra.mxu1 %v9092_v25  ;;  %v9182_v36 = vld [vmem:[#allocation6 + $0xfe8] ss:$16 sps:$4 sm:$0xff]   ;;  %v9187_v25 = vld [vmem:[#allocation6 + $0x1004] ss:$16 sps:$4 sm:$0xff]  }
 0x242   :  { %5194 = vmatprep.subr.bf16.mxu0 %v9097_v26  ;;  %5710 = vmatprep.subr.bf16.mxu1 %v9100_v37  ;;  %v9190_v26 = vld [vmem:[#allocation6 + $0x100c] ss:$16 sps:$4 sm:$0xff]   ;;  %v10173_v37 = vld [vmem:[#allocation3 + $0x40] sm:$0xff] }
 0x243   :  { %5224 = vmatprep.mubr.bf16.mxu0 %v7307_v38  ;;  %5740 = vmatprep.mubr.bf16.mxu1 %v7307_v38  ;;  %v10175_v38 = vld [vmem:[#allocation3 + $0xa0] sm:$0xff] }
 0x245   :  { %5195 = vmatpush1.bf16.msra.mxu0 %v9095_v39  ;;  %5711 = vmatpush1.bf16.msra.mxu1 %v9098_v40  ;;  %v7306_v39 = vcombine.low %v10165_v33, %v10167_v34  ;;  %v9185_v40 = vld [vmem:[#allocation6 + $0x1000] ss:$16 sps:$4 sm:$0xff]   ;;  %v9199_v33 = vld [vmem:[#allocation6 + $0x1044] ss:$16 sps:$4 sm:$0xff]   ;;  %v9202_v34 = vld [vmem:[#allocation6 + $0x104c] ss:$16 sps:$4 sm:$0xff]  }
 0x246   :  { %5196 = vmatprep.subr.bf16.mxu0 %v9103_v29  ;;  %5712 = vmatprep.subr.bf16.mxu1 %v9106_v30  ;;  %v9188_v29 = vld [vmem:[#allocation6 + $0x1008] ss:$16 sps:$4 sm:$0xff]   ;;  %v9193_v30 = vld [vmem:[#allocation6 + $0x1024] ss:$16 sps:$4 sm:$0xff]  }
 0x249   :  { %5197 = vmatpush1.bf16.msra.mxu0 %v9101_v41  ;;  %5713 = vmatpush1.bf16.msra.mxu1 %v9104_v42  ;;  %v9196_v41 = vld [vmem:[#allocation6 + $0x102c] ss:$16 sps:$4 sm:$0xff]   ;;  %v7309_v42 = vcombine.high %v10173_v37, %v10175_v38 }
 0x24a   :  { %5198 = vmatprep.subr.bf16.mxu0 %v9109_v43  ;;  %5714 = vmatprep.subr.bf16.mxu1 %v9112_v44  ;;  %v9191_v43 = vld [vmem:[#allocation6 + $0x1020] ss:$16 sps:$4 sm:$0xff]   ;;  %v9194_v44 = vld [vmem:[#allocation6 + $0x1028] ss:$16 sps:$4 sm:$0xff]  }
 0x24d   :  { %5199 = vmatpush1.bf16.msra.mxu0 %v9107_v45  ;;  %5715 = vmatpush1.bf16.msra.mxu1 %v9110_v46  ;;  %v9197_v45 = vld [vmem:[#allocation6 + $0x1040] ss:$16 sps:$4 sm:$0xff]   ;;  %v9200_v46 = vld [vmem:[#allocation6 + $0x1048] ss:$16 sps:$4 sm:$0xff]  }
 0x24e   :  { %5200 = vmatprep.subr.bf16.mxu0 %v9115_v47  ;;  %5716 = vmatprep.subr.bf16.mxu1 %v9118_v48  ;;  %v9205_v47 = vld [vmem:[#allocation6 + $0x1064] ss:$16 sps:$4 sm:$0xff]   ;;  %v9208_v48 = vld [vmem:[#allocation6 + $0x106c] ss:$16 sps:$4 sm:$0xff]  }
 0x251   :  { %5201 = vmatpush1.bf16.msra.mxu0 %v9113_v49  ;;  %5717 = vmatpush1.bf16.msra.mxu1 %v9116_v50  ;;  %v9203_v49 = vld [vmem:[#allocation6 + $0x1060] ss:$16 sps:$4 sm:$0xff]   ;;  %v9206_v50 = vld [vmem:[#allocation6 + $0x1068] ss:$16 sps:$4 sm:$0xff]  }
 0x252   :  { %5202 = vmatprep.subr.bf16.mxu0 %v9121_v51  ;;  %5718 = vmatprep.subr.bf16.mxu1 %v9124_v52  ;;  %v9211_v51 = vld [vmem:[#allocation6 + $0x1084] ss:$16 sps:$4 sm:$0xff]   ;;  %v9214_v52 = vld [vmem:[#allocation6 + $0x108c] ss:$16 sps:$4 sm:$0xff]  }
 0x255   :  { %5203 = vmatpush1.bf16.msra.mxu0 %v9119_v53  ;;  %5719 = vmatpush1.bf16.msra.mxu1 %v9122_v54  ;;  %v9209_v53 = vld [vmem:[#allocation6 + $0x1080] ss:$16 sps:$4 sm:$0xff]   ;;  %v9212_v54 = vld [vmem:[#allocation6 + $0x1088] ss:$16 sps:$4 sm:$0xff]  }
 0x256   :  { %5204 = vmatprep.subr.bf16.mxu0 %v9127_v55  ;;  %5720 = vmatprep.subr.bf16.mxu1 %v9130_v56  ;;  %v9217_v55 = vld [vmem:[#allocation6 + $0x10a4] ss:$16 sps:$4 sm:$0xff]   ;;  %v9220_v56 = vld [vmem:[#allocation6 + $0x10ac] ss:$16 sps:$4 sm:$0xff]  }
 0x259   :  { %5205 = vmatpush1.bf16.msra.mxu0 %v9125_v57  ;;  %5721 = vmatpush1.bf16.msra.mxu1 %v9128_v58  ;;  %v9215_v57 = vld [vmem:[#allocation6 + $0x10a0] ss:$16 sps:$4 sm:$0xff]   ;;  %v9218_v58 = vld [vmem:[#allocation6 + $0x10a8] ss:$16 sps:$4 sm:$0xff]  }
 0x25a   :  { %5206 = vmatprep.subr.bf16.mxu0 %v9133_v59  ;;  %5722 = vmatprep.subr.bf16.mxu1 %v9136_v60  ;;  %v9223_v59 = vld [vmem:[#allocation6 + $0x10c4] ss:$16 sps:$4 sm:$0xff]   ;;  %v9226_v60 = vld [vmem:[#allocation6 + $0x10cc] ss:$16 sps:$4 sm:$0xff]  }
 0x25d   :  { %5207 = vmatpush1.bf16.msra.mxu0 %v9131_v61  ;;  %5723 = vmatpush1.bf16.msra.mxu1 %v9134_v62  ;;  %v9221_v61 = vld [vmem:[#allocation6 + $0x10c0] ss:$16 sps:$4 sm:$0xff]   ;;  %v9224_v62 = vld [vmem:[#allocation6 + $0x10c8] ss:$16 sps:$4 sm:$0xff]  }
 0x25e   :  { %5208 = vmatprep.subr.bf16.mxu0 %v9139_v63  ;;  %5724 = vmatprep.subr.bf16.mxu1 %v9142_v0  ;;  %v9229_v63 = vld [vmem:[#allocation6 + $0x10e4] ss:$16 sps:$4 sm:$0xff]   ;;  %v9232_v0 = vld [vmem:[#allocation6 + $0x10ec] ss:$16 sps:$4 sm:$0xff]  }
 0x261   :  { %5209 = vmatpush1.bf16.msra.mxu0 %v9137_v1  ;;  %5725 = vmatpush1.bf16.msra.mxu1 %v9140_v2  ;;  %v9227_v1 = vld [vmem:[#allocation6 + $0x10e0] ss:$16 sps:$4 sm:$0xff]   ;;  %v9230_v2 = vld [vmem:[#allocation6 + $0x10e8] ss:$16 sps:$4 sm:$0xff]  }
 0x262   :  { %5210 = vmatprep.subr.bf16.mxu0 %v9145_v3  ;;  %5726 = vmatprep.subr.bf16.mxu1 %v9148_v4  ;;  %v9235_v3 = vld [vmem:[#allocation6 + $0x1104] ss:$16 sps:$4 sm:$0xff]   ;;  %v9238_v4 = vld [vmem:[#allocation6 + $0x110c] ss:$16 sps:$4 sm:$0xff]  }
 0x265   :  { %5211 = vmatpush1.bf16.msra.mxu0 %v9143_v5  ;;  %5727 = vmatpush1.bf16.msra.mxu1 %v9146_v6  ;;  %v9233_v5 = vld [vmem:[#allocation6 + $0x1100] ss:$16 sps:$4 sm:$0xff]   ;;  %v9236_v6 = vld [vmem:[#allocation6 + $0x1108] ss:$16 sps:$4 sm:$0xff]  }
 0x266   :  { %5212 = vmatprep.subr.bf16.mxu0 %v9151_v7  ;;  %5728 = vmatprep.subr.bf16.mxu1 %v9154_v8  ;;  %v9241_v7 = vld [vmem:[#allocation6 + $0x1124] ss:$16 sps:$4 sm:$0xff]   ;;  %v9244_v8 = vld [vmem:[#allocation6 + $0x112c] ss:$16 sps:$4 sm:$0xff]  }
 0x269   :  { %5213 = vmatpush1.bf16.msra.mxu0 %v9149_v9  ;;  %5729 = vmatpush1.bf16.msra.mxu1 %v9152_v10  ;;  %v9239_v9 = vld [vmem:[#allocation6 + $0x1120] ss:$16 sps:$4 sm:$0xff]   ;;  %v9242_v10 = vld [vmem:[#allocation6 + $0x1128] ss:$16 sps:$4 sm:$0xff]  }
 0x26a   :  { %5214 = vmatprep.subr.bf16.mxu0 %v9157_v11  ;;  %5730 = vmatprep.subr.bf16.mxu1 %v9160_v12  ;;  %v9247_v11 = vld [vmem:[#allocation6 + $0x1144] ss:$16 sps:$4 sm:$0xff]   ;;  %v9250_v12 = vld [vmem:[#allocation6 + $0x114c] ss:$16 sps:$4 sm:$0xff]  }
 0x26d   :  { %5215 = vmatpush1.bf16.msra.mxu0 %v9155_v13  ;;  %5731 = vmatpush1.bf16.msra.mxu1 %v9158_v16  ;;  %v9245_v13 = vld [vmem:[#allocation6 + $0x1140] ss:$16 sps:$4 sm:$0xff]   ;;  %v9248_v16 = vld [vmem:[#allocation6 + $0x1148] ss:$16 sps:$4 sm:$0xff]  }
 0x26e   :  { %5216 = vmatprep.subr.bf16.mxu0 %v9163_v17  ;;  %5732 = vmatprep.subr.bf16.mxu1 %v9166_v20  ;;  %v9253_v17 = vld [vmem:[#allocation6 + $0x1164] ss:$16 sps:$4 sm:$0xff]   ;;  %v9256_v20 = vld [vmem:[#allocation6 + $0x116c] ss:$16 sps:$4 sm:$0xff]  }
 0x271   :  { %5217 = vmatpush1.bf16.msra.mxu0 %v9161_v22  ;;  %5733 = vmatpush1.bf16.msra.mxu1 %v9164_v24  ;;  %v9251_v22 = vld [vmem:[#allocation6 + $0x1160] ss:$16 sps:$4 sm:$0xff]   ;;  %v9254_v24 = vld [vmem:[#allocation6 + $0x1168] ss:$16 sps:$4 sm:$0xff]  }
 0x272   :  { %5218 = vmatprep.subr.bf16.mxu0 %v9169_v14  ;;  %5734 = vmatprep.subr.bf16.mxu1 %v9172_v15  ;;  %v9259_v14 = vld [vmem:[#allocation6 + $0x1184] ss:$16 sps:$4 sm:$0xff]   ;;  %v9262_v15 = vld [vmem:[#allocation6 + $0x118c] ss:$16 sps:$4 sm:$0xff]  }
 0x275   :  { %5219 = vmatpush1.bf16.msra.mxu0 %v9167_v27  ;;  %5735 = vmatpush1.bf16.msra.mxu1 %v9170_v28  ;;  %v9257_v27 = vld [vmem:[#allocation6 + $0x1180] ss:$16 sps:$4 sm:$0xff]   ;;  %v9260_v28 = vld [vmem:[#allocation6 + $0x1188] ss:$16 sps:$4 sm:$0xff]  }
 0x276   :  { %5220 = vmatprep.subr.bf16.mxu0 %v9175_v18  ;;  %5736 = vmatprep.subr.bf16.mxu1 %v9178_v19  ;;  %v9265_v18 = vld [vmem:[#allocation6 + $0x11a4] ss:$16 sps:$4 sm:$0xff]   ;;  %v9268_v19 = vld [vmem:[#allocation6 + $0x11ac] ss:$16 sps:$4 sm:$0xff]  }
 0x279   :  { %5221 = vmatpush1.bf16.msra.mxu0 %v9173_v31  ;;  %5737 = vmatpush1.bf16.msra.mxu1 %v9176_v32  ;;  %v9263_v31 = vld [vmem:[#allocation6 + $0x11a0] ss:$16 sps:$4 sm:$0xff]   ;;  %v9266_v32 = vld [vmem:[#allocation6 + $0x11a8] ss:$16 sps:$4 sm:$0xff]  }
 0x27a   :  { %5222 = vmatprep.subr.bf16.mxu0 %v9181_v21  ;;  %5738 = vmatprep.subr.bf16.mxu1 %v9184_v23  ;;  %v9271_v21 = vld [vmem:[#allocation6 + $0x11c4] ss:$16 sps:$4 sm:$0xff]   ;;  %v9274_v23 = vld [vmem:[#allocation6 + $0x11cc] ss:$16 sps:$4 sm:$0xff]  }
 0x27d   :  { %5223 = vmatpush1.bf16.msra.mxu0 %v9179_v35  ;;  %5739 = vmatpush1.bf16.msra.mxu1 %v9182_v36  ;;  %v9269_v35 = vld [vmem:[#allocation6 + $0x11c0] ss:$16 sps:$4 sm:$0xff]   ;;  %v9272_v36 = vld [vmem:[#allocation6 + $0x11c8] ss:$16 sps:$4 sm:$0xff]  }
 0x27e   :  { %5235 = vmatprep.subr.bf16.mxu0 %v9187_v25  ;;  %5751 = vmatprep.subr.bf16.mxu1 %v9190_v26  ;;  %v9277_v25 = vld [vmem:[#allocation6 + $0x11e4] ss:$16 sps:$4 sm:$0xff]   ;;  %v9280_v26 = vld [vmem:[#allocation6 + $0x11ec] ss:$16 sps:$4 sm:$0xff]  }
 0x280   :  { %5225 = vmatmul.mubr.bf16.vlgmr.msra.gmra.mrb[0].mxu0 %v7306_v39  ;;  %5741 = vmatmul.mubr.bf16.vlgmr.msra.gmra.mrb[0].mxu1 %v7306_v39  ;;  %v9275_v39 = vld [vmem:[#allocation6 + $0x11e0] ss:$16 sps:$4 sm:$0xff]  }
 0x281   :  { %5236 = vmatpush1.bf16.msra.mxu0 %v9185_v40  ;;  %5752 = vmatpush1.bf16.msra.mxu1 %v9188_v29  ;;  %v9278_v40 = vld [vmem:[#allocation6 + $0x11e8] ss:$16 sps:$4 sm:$0xff]   ;;  %v9283_v29 = vld [vmem:[#allocation6 + $0x1204] ss:$16 sps:$4 sm:$0xff]  }
 0x282   :  { %5237 = vmatprep.subr.bf16.mxu0 %v9193_v30  ;;  %5753 = vmatprep.subr.bf16.mxu1 %v9196_v41  ;;  %v9286_v30 = vld [vmem:[#allocation6 + $0x120c] ss:$16 sps:$4 sm:$0xff]   ;;  %v7308_v41 = vcombine.low %v10173_v37, %v10175_v38  ;;  %v9287_v37 = vld [vmem:[#allocation6 + $0x1220] ss:$16 sps:$4 sm:$0xff]   ;;  %v9290_v38 = vld [vmem:[#allocation6 + $0x1228] ss:$16 sps:$4 sm:$0xff]  }
 0x283   :  { %5267 = vmatprep.mubr.bf16.mxu0 %v7309_v42  ;;  %5783 = vmatprep.mubr.bf16.mxu1 %v7309_v42  ;;  %v10183_v42 = vld [vmem:[#allocation3 + $0x48] sm:$0xff] }
 0x285   :  { %5238 = vmatpush1.bf16.msra.mxu0 %v9191_v43  ;;  %5754 = vmatpush1.bf16.msra.mxu1 %v9194_v44  ;;  %v10185_v43 = vld [vmem:[#allocation3 + $0xa8] sm:$0xff]  ;;  %v9281_v44 = vld [vmem:[#allocation6 + $0x1200] ss:$16 sps:$4 sm:$0xff]  }
 0x286   :  { %5239 = vmatprep.subr.bf16.mxu0 %v9199_v33  ;;  %5755 = vmatprep.subr.bf16.mxu1 %v9202_v34  ;;  %v9284_v33 = vld [vmem:[#allocation6 + $0x1208] ss:$16 sps:$4 sm:$0xff]   ;;  %v9289_v34 = vld [vmem:[#allocation6 + $0x1224] ss:$16 sps:$4 sm:$0xff]  }
 0x289   :  { %5240 = vmatpush1.bf16.msra.mxu0 %v9197_v45  ;;  %5756 = vmatpush1.bf16.msra.mxu1 %v9200_v46  ;;  %v9292_v45 = vld [vmem:[#allocation6 + $0x122c] ss:$16 sps:$4 sm:$0xff]   ;;  %v7311_v46 = vcombine.high %v10183_v42, %v10185_v43 }
 0x28a   :  { %5241 = vmatprep.subr.bf16.mxu0 %v9205_v47  ;;  %5757 = vmatprep.subr.bf16.mxu1 %v9208_v48  ;;  %v9295_v47 = vld [vmem:[#allocation6 + $0x1244] ss:$16 sps:$4 sm:$0xff]   ;;  %v9298_v48 = vld [vmem:[#allocation6 + $0x124c] ss:$16 sps:$4 sm:$0xff]  }
 0x28d   :  { %5242 = vmatpush1.bf16.msra.mxu0 %v9203_v49  ;;  %5758 = vmatpush1.bf16.msra.mxu1 %v9206_v50  ;;  %v9293_v49 = vld [vmem:[#allocation6 + $0x1240] ss:$16 sps:$4 sm:$0xff]   ;;  %v9296_v50 = vld [vmem:[#allocation6 + $0x1248] ss:$16 sps:$4 sm:$0xff]  }
 0x28e   :  { %5243 = vmatprep.subr.bf16.mxu0 %v9211_v51  ;;  %5759 = vmatprep.subr.bf16.mxu1 %v9214_v52  ;;  %v9301_v51 = vld [vmem:[#allocation6 + $0x1264] ss:$16 sps:$4 sm:$0xff]   ;;  %v9304_v52 = vld [vmem:[#allocation6 + $0x126c] ss:$16 sps:$4 sm:$0xff]  }
 0x291   :  { %5244 = vmatpush1.bf16.msra.mxu0 %v9209_v53  ;;  %5760 = vmatpush1.bf16.msra.mxu1 %v9212_v54  ;;  %v9299_v53 = vld [vmem:[#allocation6 + $0x1260] ss:$16 sps:$4 sm:$0xff]   ;;  %v9302_v54 = vld [vmem:[#allocation6 + $0x1268] ss:$16 sps:$4 sm:$0xff]  }
 0x292   :  { %5245 = vmatprep.subr.bf16.mxu0 %v9217_v55  ;;  %5761 = vmatprep.subr.bf16.mxu1 %v9220_v56  ;;  %v9307_v55 = vld [vmem:[#allocation6 + $0x1284] ss:$16 sps:$4 sm:$0xff]   ;;  %v9310_v56 = vld [vmem:[#allocation6 + $0x128c] ss:$16 sps:$4 sm:$0xff]  }
 0x295   :  { %5246 = vmatpush1.bf16.msra.mxu0 %v9215_v57  ;;  %5762 = vmatpush1.bf16.msra.mxu1 %v9218_v58  ;;  %v9305_v57 = vld [vmem:[#allocation6 + $0x1280] ss:$16 sps:$4 sm:$0xff]   ;;  %v9308_v58 = vld [vmem:[#allocation6 + $0x1288] ss:$16 sps:$4 sm:$0xff]  }
 0x296   :  { %5247 = vmatprep.subr.bf16.mxu0 %v9223_v59  ;;  %5763 = vmatprep.subr.bf16.mxu1 %v9226_v60  ;;  %v9313_v59 = vld [vmem:[#allocation6 + $0x12a4] ss:$16 sps:$4 sm:$0xff]   ;;  %v9316_v60 = vld [vmem:[#allocation6 + $0x12ac] ss:$16 sps:$4 sm:$0xff]  }
 0x299   :  { %5248 = vmatpush1.bf16.msra.mxu0 %v9221_v61  ;;  %5764 = vmatpush1.bf16.msra.mxu1 %v9224_v62  ;;  %v9311_v61 = vld [vmem:[#allocation6 + $0x12a0] ss:$16 sps:$4 sm:$0xff]   ;;  %v9314_v62 = vld [vmem:[#allocation6 + $0x12a8] ss:$16 sps:$4 sm:$0xff]  }
 0x29a   :  { %5249 = vmatprep.subr.bf16.mxu0 %v9229_v63  ;;  %5765 = vmatprep.subr.bf16.mxu1 %v9232_v0  ;;  %v9319_v63 = vld [vmem:[#allocation6 + $0x12c4] ss:$16 sps:$4 sm:$0xff]   ;;  %v9322_v0 = vld [vmem:[#allocation6 + $0x12cc] ss:$16 sps:$4 sm:$0xff]  }
 0x29d   :  { %5250 = vmatpush1.bf16.msra.mxu0 %v9227_v1  ;;  %5766 = vmatpush1.bf16.msra.mxu1 %v9230_v2  ;;  %v9317_v1 = vld [vmem:[#allocation6 + $0x12c0] ss:$16 sps:$4 sm:$0xff]   ;;  %v9320_v2 = vld [vmem:[#allocation6 + $0x12c8] ss:$16 sps:$4 sm:$0xff]  }
 0x29e   :  { %5251 = vmatprep.subr.bf16.mxu0 %v9235_v3  ;;  %5767 = vmatprep.subr.bf16.mxu1 %v9238_v4  ;;  %v9325_v3 = vld [vmem:[#allocation6 + $0x12e4] ss:$16 sps:$4 sm:$0xff]   ;;  %v9328_v4 = vld [vmem:[#allocation6 + $0x12ec] ss:$16 sps:$4 sm:$0xff]  }
 0x2a1   :  { %5252 = vmatpush1.bf16.msra.mxu0 %v9233_v5  ;;  %5768 = vmatpush1.bf16.msra.mxu1 %v9236_v6  ;;  %v9323_v5 = vld [vmem:[#allocation6 + $0x12e0] ss:$16 sps:$4 sm:$0xff]   ;;  %v9326_v6 = vld [vmem:[#allocation6 + $0x12e8] ss:$16 sps:$4 sm:$0xff]  }
 0x2a2   :  { %5253 = vmatprep.subr.bf16.mxu0 %v9241_v7  ;;  %5769 = vmatprep.subr.bf16.mxu1 %v9244_v8  ;;  %v9331_v7 = vld [vmem:[#allocation6 + $0x1304] ss:$16 sps:$4 sm:$0xff]   ;;  %v9334_v8 = vld [vmem:[#allocation6 + $0x130c] ss:$16 sps:$4 sm:$0xff]  }
 0x2a5   :  { %5254 = vmatpush1.bf16.msra.mxu0 %v9239_v9  ;;  %5770 = vmatpush1.bf16.msra.mxu1 %v9242_v10  ;;  %v9329_v9 = vld [vmem:[#allocation6 + $0x1300] ss:$16 sps:$4 sm:$0xff]   ;;  %v9332_v10 = vld [vmem:[#allocation6 + $0x1308] ss:$16 sps:$4 sm:$0xff]  }
 0x2a6   :  { %5255 = vmatprep.subr.bf16.mxu0 %v9247_v11  ;;  %5771 = vmatprep.subr.bf16.mxu1 %v9250_v12  ;;  %v9337_v11 = vld [vmem:[#allocation6 + $0x1324] ss:$16 sps:$4 sm:$0xff]   ;;  %v9340_v12 = vld [vmem:[#allocation6 + $0x132c] ss:$16 sps:$4 sm:$0xff]  }
 0x2a9   :  { %5256 = vmatpush1.bf16.msra.mxu0 %v9245_v13  ;;  %5772 = vmatpush1.bf16.msra.mxu1 %v9248_v16  ;;  %v9335_v13 = vld [vmem:[#allocation6 + $0x1320] ss:$16 sps:$4 sm:$0xff]   ;;  %v9338_v16 = vld [vmem:[#allocation6 + $0x1328] ss:$16 sps:$4 sm:$0xff]  }
 0x2aa   :  { %5257 = vmatprep.subr.bf16.mxu0 %v9253_v17  ;;  %5773 = vmatprep.subr.bf16.mxu1 %v9256_v20  ;;  %v9343_v17 = vld [vmem:[#allocation6 + $0x1344] ss:$16 sps:$4 sm:$0xff]   ;;  %v9346_v20 = vld [vmem:[#allocation6 + $0x134c] ss:$16 sps:$4 sm:$0xff]  }
 0x2ad   :  { %5258 = vmatpush1.bf16.msra.mxu0 %v9251_v22  ;;  %5774 = vmatpush1.bf16.msra.mxu1 %v9254_v24  ;;  %v9341_v22 = vld [vmem:[#allocation6 + $0x1340] ss:$16 sps:$4 sm:$0xff]   ;;  %v9344_v24 = vld [vmem:[#allocation6 + $0x1348] ss:$16 sps:$4 sm:$0xff]  }
 0x2ae   :  { %5259 = vmatprep.subr.bf16.mxu0 %v9259_v14  ;;  %5775 = vmatprep.subr.bf16.mxu1 %v9262_v15  ;;  %v9349_v14 = vld [vmem:[#allocation6 + $0x1364] ss:$16 sps:$4 sm:$0xff]   ;;  %v9352_v15 = vld [vmem:[#allocation6 + $0x136c] ss:$16 sps:$4 sm:$0xff]  }
 0x2b1   :  { %5260 = vmatpush1.bf16.msra.mxu0 %v9257_v27  ;;  %5776 = vmatpush1.bf16.msra.mxu1 %v9260_v28  ;;  %v9347_v27 = vld [vmem:[#allocation6 + $0x1360] ss:$16 sps:$4 sm:$0xff]   ;;  %v9350_v28 = vld [vmem:[#allocation6 + $0x1368] ss:$16 sps:$4 sm:$0xff]  }
 0x2b2   :  { %5261 = vmatprep.subr.bf16.mxu0 %v9265_v18  ;;  %5777 = vmatprep.subr.bf16.mxu1 %v9268_v19  ;;  %v9355_v18 = vld [vmem:[#allocation6 + $0x1384] ss:$16 sps:$4 sm:$0xff]   ;;  %v9358_v19 = vld [vmem:[#allocation6 + $0x138c] ss:$16 sps:$4 sm:$0xff]  }
 0x2b5   :  { %5262 = vmatpush1.bf16.msra.mxu0 %v9263_v31  ;;  %5778 = vmatpush1.bf16.msra.mxu1 %v9266_v32  ;;  %v9353_v31 = vld [vmem:[#allocation6 + $0x1380] ss:$16 sps:$4 sm:$0xff]   ;;  %v9356_v32 = vld [vmem:[#allocation6 + $0x1388] ss:$16 sps:$4 sm:$0xff]  }
 0x2b6   :  { %5263 = vmatprep.subr.bf16.mxu0 %v9271_v21  ;;  %5779 = vmatprep.subr.bf16.mxu1 %v9274_v23  ;;  %v9361_v21 = vld [vmem:[#allocation6 + $0x13a4] ss:$16 sps:$4 sm:$0xff]   ;;  %v9364_v23 = vld [vmem:[#allocation6 + $0x13ac] ss:$16 sps:$4 sm:$0xff]  }
 0x2b9   :  { %5264 = vmatpush1.bf16.msra.mxu0 %v9269_v35  ;;  %5780 = vmatpush1.bf16.msra.mxu1 %v9272_v36  ;;  %v9359_v35 = vld [vmem:[#allocation6 + $0x13a0] ss:$16 sps:$4 sm:$0xff]   ;;  %v9362_v36 = vld [vmem:[#allocation6 + $0x13a8] ss:$16 sps:$4 sm:$0xff]  }
 0x2ba   :  { %5265 = vmatprep.subr.bf16.mxu0 %v9277_v25  ;;  %5781 = vmatprep.subr.bf16.mxu1 %v9280_v26  ;;  %v9367_v25 = vld [vmem:[#allocation6 + $0x13c4] ss:$16 sps:$4 sm:$0xff]   ;;  %v9370_v26 = vld [vmem:[#allocation6 + $0x13cc] ss:$16 sps:$4 sm:$0xff]  }
 0x2bd   :  { %5266 = vmatpush1.bf16.msra.mxu0 %v9275_v39  ;;  %5782 = vmatpush1.bf16.msra.mxu1 %v9278_v40  ;;  %v9365_v39 = vld [vmem:[#allocation6 + $0x13c0] ss:$16 sps:$4 sm:$0xff]   ;;  %v9368_v40 = vld [vmem:[#allocation6 + $0x13c8] ss:$16 sps:$4 sm:$0xff]  }
 0x2be   :  { %5278 = vmatprep.subr.bf16.mxu0 %v9283_v29  ;;  %5794 = vmatprep.subr.bf16.mxu1 %v9286_v30  ;;  %v9373_v29 = vld [vmem:[#allocation6 + $0x13e4] ss:$16 sps:$4 sm:$0xff]   ;;  %v9376_v30 = vld [vmem:[#allocation6 + $0x13ec] ss:$16 sps:$4 sm:$0xff]  }
 0x2c0   :  { %5268 = vmatmul.mubr.bf16.vlgmr.msra.gmra.mrb[0].mxu0 %v7308_v41  ;;  %5784 = vmatmul.mubr.bf16.vlgmr.msra.gmra.mrb[0].mxu1 %v7308_v41  ;;  %v9371_v41 = vld [vmem:[#allocation6 + $0x13e0] ss:$16 sps:$4 sm:$0xff]  }
 0x2c1   :  { %5279 = vmatpush1.bf16.msra.mxu0 %v9281_v44  ;;  %5795 = vmatpush1.bf16.msra.mxu1 %v9284_v33  ;;  %v9374_v44 = vld [vmem:[#allocation6 + $0x13e8] ss:$16 sps:$4 sm:$0xff]   ;;  %v9379_v33 = vld [vmem:[#allocation6 + $0x1404] ss:$16 sps:$4 sm:$0xff]  }
 0x2c2   :  { %5280 = vmatprep.subr.bf16.mxu0 %v9289_v34  ;;  %5796 = vmatprep.subr.bf16.mxu1 %v9292_v45  ;;  %v9382_v34 = vld [vmem:[#allocation6 + $0x140c] ss:$16 sps:$4 sm:$0xff]   ;;  %v7310_v45 = vcombine.low %v10183_v42, %v10185_v43  ;;  %v9383_v42 = vld [vmem:[#allocation6 + $0x1420] ss:$16 sps:$4 sm:$0xff]   ;;  %v9386_v43 = vld [vmem:[#allocation6 + $0x1428] ss:$16 sps:$4 sm:$0xff]  }
 0x2c3   :  { %5310 = vmatprep.mubr.bf16.mxu0 %v7311_v46  ;;  %5826 = vmatprep.mubr.bf16.mxu1 %v7311_v46  ;;  %v10191_v46 = vld [vmem:[#allocation3 + $0x50] sm:$0xff] }
 0x2c5   :  { %5281 = vmatpush1.bf16.msra.mxu0 %v9287_v37  ;;  %5797 = vmatpush1.bf16.msra.mxu1 %v9290_v38  ;;  %v10193_v37 = vld [vmem:[#allocation3 + $0xb0] sm:$0xff] }
 0x2c6   :  { %5282 = vmatprep.subr.bf16.mxu0 %v9295_v47  ;;  %5798 = vmatprep.subr.bf16.mxu1 %v9298_v48  ;;  %v9377_v38 = vld [vmem:[#allocation6 + $0x1400] ss:$16 sps:$4 sm:$0xff]   ;;  %v9380_v47 = vld [vmem:[#allocation6 + $0x1408] ss:$16 sps:$4 sm:$0xff]   ;;  %v9385_v48 = vld [vmem:[#allocation6 + $0x1424] ss:$16 sps:$4 sm:$0xff]  }
 0x2c9   :  { %5283 = vmatpush1.bf16.msra.mxu0 %v9293_v49  ;;  %5799 = vmatpush1.bf16.msra.mxu1 %v9296_v50  ;;  %v9388_v49 = vld [vmem:[#allocation6 + $0x142c] ss:$16 sps:$4 sm:$0xff]   ;;  %v7313_v50 = vcombine.high %v10191_v46, %v10193_v37 }
 0x2ca   :  { %5284 = vmatprep.subr.bf16.mxu0 %v9301_v51  ;;  %5800 = vmatprep.subr.bf16.mxu1 %v9304_v52  ;;  %v9391_v51 = vld [vmem:[#allocation6 + $0x1444] ss:$16 sps:$4 sm:$0xff]   ;;  %v9394_v52 = vld [vmem:[#allocation6 + $0x144c] ss:$16 sps:$4 sm:$0xff]  }
 0x2cd   :  { %5285 = vmatpush1.bf16.msra.mxu0 %v9299_v53  ;;  %5801 = vmatpush1.bf16.msra.mxu1 %v9302_v54  ;;  %v9389_v53 = vld [vmem:[#allocation6 + $0x1440] ss:$16 sps:$4 sm:$0xff]   ;;  %v9392_v54 = vld [vmem:[#allocation6 + $0x1448] ss:$16 sps:$4 sm:$0xff]  }
 0x2ce   :  { %5286 = vmatprep.subr.bf16.mxu0 %v9307_v55  ;;  %5802 = vmatprep.subr.bf16.mxu1 %v9310_v56  ;;  %v9397_v55 = vld [vmem:[#allocation6 + $0x1464] ss:$16 sps:$4 sm:$0xff]   ;;  %v9400_v56 = vld [vmem:[#allocation6 + $0x146c] ss:$16 sps:$4 sm:$0xff]  }
 0x2d1   :  { %5287 = vmatpush1.bf16.msra.mxu0 %v9305_v57  ;;  %5803 = vmatpush1.bf16.msra.mxu1 %v9308_v58  ;;  %v9395_v57 = vld [vmem:[#allocation6 + $0x1460] ss:$16 sps:$4 sm:$0xff]   ;;  %v9398_v58 = vld [vmem:[#allocation6 + $0x1468] ss:$16 sps:$4 sm:$0xff]  }
 0x2d2   :  { %5288 = vmatprep.subr.bf16.mxu0 %v9313_v59  ;;  %5804 = vmatprep.subr.bf16.mxu1 %v9316_v60  ;;  %v9403_v59 = vld [vmem:[#allocation6 + $0x1484] ss:$16 sps:$4 sm:$0xff]   ;;  %v9406_v60 = vld [vmem:[#allocation6 + $0x148c] ss:$16 sps:$4 sm:$0xff]  }
 0x2d5   :  { %5289 = vmatpush1.bf16.msra.mxu0 %v9311_v61  ;;  %5805 = vmatpush1.bf16.msra.mxu1 %v9314_v62  ;;  %v9401_v61 = vld [vmem:[#allocation6 + $0x1480] ss:$16 sps:$4 sm:$0xff]   ;;  %v9404_v62 = vld [vmem:[#allocation6 + $0x1488] ss:$16 sps:$4 sm:$0xff]  }
 0x2d6   :  { %5290 = vmatprep.subr.bf16.mxu0 %v9319_v63  ;;  %5806 = vmatprep.subr.bf16.mxu1 %v9322_v0  ;;  %v9409_v63 = vld [vmem:[#allocation6 + $0x14a4] ss:$16 sps:$4 sm:$0xff]   ;;  %v9412_v0 = vld [vmem:[#allocation6 + $0x14ac] ss:$16 sps:$4 sm:$0xff]  }
 0x2d9   :  { %5291 = vmatpush1.bf16.msra.mxu0 %v9317_v1  ;;  %5807 = vmatpush1.bf16.msra.mxu1 %v9320_v2  ;;  %v9407_v1 = vld [vmem:[#allocation6 + $0x14a0] ss:$16 sps:$4 sm:$0xff]   ;;  %v9410_v2 = vld [vmem:[#allocation6 + $0x14a8] ss:$16 sps:$4 sm:$0xff]  }
 0x2da   :  { %5292 = vmatprep.subr.bf16.mxu0 %v9325_v3  ;;  %5808 = vmatprep.subr.bf16.mxu1 %v9328_v4  ;;  %v9415_v3 = vld [vmem:[#allocation6 + $0x14c4] ss:$16 sps:$4 sm:$0xff]   ;;  %v9418_v4 = vld [vmem:[#allocation6 + $0x14cc] ss:$16 sps:$4 sm:$0xff]  }
 0x2dd   :  { %5293 = vmatpush1.bf16.msra.mxu0 %v9323_v5  ;;  %5809 = vmatpush1.bf16.msra.mxu1 %v9326_v6  ;;  %v9413_v5 = vld [vmem:[#allocation6 + $0x14c0] ss:$16 sps:$4 sm:$0xff]   ;;  %v9416_v6 = vld [vmem:[#allocation6 + $0x14c8] ss:$16 sps:$4 sm:$0xff]  }
 0x2de   :  { %5294 = vmatprep.subr.bf16.mxu0 %v9331_v7  ;;  %5810 = vmatprep.subr.bf16.mxu1 %v9334_v8  ;;  %v9421_v7 = vld [vmem:[#allocation6 + $0x14e4] ss:$16 sps:$4 sm:$0xff]   ;;  %v9424_v8 = vld [vmem:[#allocation6 + $0x14ec] ss:$16 sps:$4 sm:$0xff]  }
 0x2e1   :  { %5295 = vmatpush1.bf16.msra.mxu0 %v9329_v9  ;;  %5811 = vmatpush1.bf16.msra.mxu1 %v9332_v10  ;;  %v9419_v9 = vld [vmem:[#allocation6 + $0x14e0] ss:$16 sps:$4 sm:$0xff]   ;;  %v9422_v10 = vld [vmem:[#allocation6 + $0x14e8] ss:$16 sps:$4 sm:$0xff]  }
 0x2e2   :  { %5296 = vmatprep.subr.bf16.mxu0 %v9337_v11  ;;  %5812 = vmatprep.subr.bf16.mxu1 %v9340_v12  ;;  %v9427_v11 = vld [vmem:[#allocation6 + $0x1504] ss:$16 sps:$4 sm:$0xff]   ;;  %v9430_v12 = vld [vmem:[#allocation6 + $0x150c] ss:$16 sps:$4 sm:$0xff]  }
 0x2e5   :  { %5297 = vmatpush1.bf16.msra.mxu0 %v9335_v13  ;;  %5813 = vmatpush1.bf16.msra.mxu1 %v9338_v16  ;;  %v9425_v13 = vld [vmem:[#allocation6 + $0x1500] ss:$16 sps:$4 sm:$0xff]   ;;  %v9428_v16 = vld [vmem:[#allocation6 + $0x1508] ss:$16 sps:$4 sm:$0xff]  }
 0x2e6   :  { %5298 = vmatprep.subr.bf16.mxu0 %v9343_v17  ;;  %5814 = vmatprep.subr.bf16.mxu1 %v9346_v20  ;;  %v9433_v17 = vld [vmem:[#allocation6 + $0x1524] ss:$16 sps:$4 sm:$0xff]   ;;  %v9436_v20 = vld [vmem:[#allocation6 + $0x152c] ss:$16 sps:$4 sm:$0xff]  }
 0x2e9   :  { %5299 = vmatpush1.bf16.msra.mxu0 %v9341_v22  ;;  %5815 = vmatpush1.bf16.msra.mxu1 %v9344_v24  ;;  %v9431_v22 = vld [vmem:[#allocation6 + $0x1520] ss:$16 sps:$4 sm:$0xff]   ;;  %v9434_v24 = vld [vmem:[#allocation6 + $0x1528] ss:$16 sps:$4 sm:$0xff]  }
 0x2ea   :  { %5300 = vmatprep.subr.bf16.mxu0 %v9349_v14  ;;  %5816 = vmatprep.subr.bf16.mxu1 %v9352_v15  ;;  %v9439_v14 = vld [vmem:[#allocation6 + $0x1544] ss:$16 sps:$4 sm:$0xff]   ;;  %v9442_v15 = vld [vmem:[#allocation6 + $0x154c] ss:$16 sps:$4 sm:$0xff]  }
 0x2ed   :  { %5301 = vmatpush1.bf16.msra.mxu0 %v9347_v27  ;;  %5817 = vmatpush1.bf16.msra.mxu1 %v9350_v28  ;;  %v9437_v27 = vld [vmem:[#allocation6 + $0x1540] ss:$16 sps:$4 sm:$0xff]   ;;  %v9440_v28 = vld [vmem:[#allocation6 + $0x1548] ss:$16 sps:$4 sm:$0xff]  }
 0x2ee   :  { %5302 = vmatprep.subr.bf16.mxu0 %v9355_v18  ;;  %5818 = vmatprep.subr.bf16.mxu1 %v9358_v19  ;;  %v9445_v18 = vld [vmem:[#allocation6 + $0x1564] ss:$16 sps:$4 sm:$0xff]   ;;  %v9448_v19 = vld [vmem:[#allocation6 + $0x156c] ss:$16 sps:$4 sm:$0xff]  }
 0x2f1   :  { %5303 = vmatpush1.bf16.msra.mxu0 %v9353_v31  ;;  %5819 = vmatpush1.bf16.msra.mxu1 %v9356_v32  ;;  %v9443_v31 = vld [vmem:[#allocation6 + $0x1560] ss:$16 sps:$4 sm:$0xff]   ;;  %v9446_v32 = vld [vmem:[#allocation6 + $0x1568] ss:$16 sps:$4 sm:$0xff]  }
 0x2f2   :  { %5304 = vmatprep.subr.bf16.mxu0 %v9361_v21  ;;  %5820 = vmatprep.subr.bf16.mxu1 %v9364_v23  ;;  %v9451_v21 = vld [vmem:[#allocation6 + $0x1584] ss:$16 sps:$4 sm:$0xff]   ;;  %v9454_v23 = vld [vmem:[#allocation6 + $0x158c] ss:$16 sps:$4 sm:$0xff]  }
 0x2f5   :  { %5305 = vmatpush1.bf16.msra.mxu0 %v9359_v35  ;;  %5821 = vmatpush1.bf16.msra.mxu1 %v9362_v36  ;;  %v9449_v35 = vld [vmem:[#allocation6 + $0x1580] ss:$16 sps:$4 sm:$0xff]   ;;  %v9452_v36 = vld [vmem:[#allocation6 + $0x1588] ss:$16 sps:$4 sm:$0xff]  }
 0x2f6   :  { %5306 = vmatprep.subr.bf16.mxu0 %v9367_v25  ;;  %5822 = vmatprep.subr.bf16.mxu1 %v9370_v26  ;;  %v9457_v25 = vld [vmem:[#allocation6 + $0x15a4] ss:$16 sps:$4 sm:$0xff]   ;;  %v9460_v26 = vld [vmem:[#allocation6 + $0x15ac] ss:$16 sps:$4 sm:$0xff]  }
 0x2f9   :  { %5307 = vmatpush1.bf16.msra.mxu0 %v9365_v39  ;;  %5823 = vmatpush1.bf16.msra.mxu1 %v9368_v40  ;;  %v9455_v39 = vld [vmem:[#allocation6 + $0x15a0] ss:$16 sps:$4 sm:$0xff]   ;;  %v9458_v40 = vld [vmem:[#allocation6 + $0x15a8] ss:$16 sps:$4 sm:$0xff]  }
 0x2fa   :  { %5308 = vmatprep.subr.bf16.mxu0 %v9373_v29  ;;  %5824 = vmatprep.subr.bf16.mxu1 %v9376_v30  ;;  %v9463_v29 = vld [vmem:[#allocation6 + $0x15c4] ss:$16 sps:$4 sm:$0xff]   ;;  %v9466_v30 = vld [vmem:[#allocation6 + $0x15cc] ss:$16 sps:$4 sm:$0xff]  }
 0x2fd   :  { %5309 = vmatpush1.bf16.msra.mxu0 %v9371_v41  ;;  %5825 = vmatpush1.bf16.msra.mxu1 %v9374_v44  ;;  %v9461_v41 = vld [vmem:[#allocation6 + $0x15c0] ss:$16 sps:$4 sm:$0xff]   ;;  %v9464_v44 = vld [vmem:[#allocation6 + $0x15c8] ss:$16 sps:$4 sm:$0xff]  }
 0x2fe   :  { %5321 = vmatprep.subr.bf16.mxu0 %v9379_v33  ;;  %5837 = vmatprep.subr.bf16.mxu1 %v9382_v34  ;;  %v9469_v33 = vld [vmem:[#allocation6 + $0x15e4] ss:$16 sps:$4 sm:$0xff]   ;;  %v9472_v34 = vld [vmem:[#allocation6 + $0x15ec] ss:$16 sps:$4 sm:$0xff]  }
 0x300   :  { %5311 = vmatmul.mubr.bf16.vlgmr.msra.gmra.mrb[0].mxu0 %v7310_v45  ;;  %5827 = vmatmul.mubr.bf16.vlgmr.msra.gmra.mrb[0].mxu1 %v7310_v45  ;;  %v9467_v45 = vld [vmem:[#allocation6 + $0x15e0] ss:$16 sps:$4 sm:$0xff]  }
 0x301   :  { %5322 = vmatpush1.bf16.msra.mxu0 %v9377_v38  ;;  %5838 = vmatpush1.bf16.msra.mxu1 %v9380_v47  ;;  %v9470_v38 = vld [vmem:[#allocation6 + $0x15e8] ss:$16 sps:$4 sm:$0xff]   ;;  %v9475_v47 = vld [vmem:[#allocation6 + $0x1604] ss:$16 sps:$4 sm:$0xff]  }
 0x302   :  { %5323 = vmatprep.subr.bf16.mxu0 %v9385_v48  ;;  %5839 = vmatprep.subr.bf16.mxu1 %v9388_v49  ;;  %v9478_v48 = vld [vmem:[#allocation6 + $0x160c] ss:$16 sps:$4 sm:$0xff]   ;;  %v7312_v49 = vcombine.low %v10191_v46, %v10193_v37  ;;  %v9479_v46 = vld [vmem:[#allocation6 + $0x1620] ss:$16 sps:$4 sm:$0xff]   ;;  %v9482_v37 = vld [vmem:[#allocation6 + $0x1628] ss:$16 sps:$4 sm:$0xff]  }
 0x303   :  { %5353 = vmatprep.mubr.bf16.mxu0 %v7313_v50  ;;  %5869 = vmatprep.mubr.bf16.mxu1 %v7313_v50  ;;  %v10199_v50 = vld [vmem:[#allocation3 + $0x58] sm:$0xff] }
 0x305   :  { %5324 = vmatpush1.bf16.msra.mxu0 %v9383_v42  ;;  %5840 = vmatpush1.bf16.msra.mxu1 %v9386_v43  ;;  %v10201_v42 = vld [vmem:[#allocation3 + $0xb8] sm:$0xff]  ;;  %v9473_v43 = vld [vmem:[#allocation6 + $0x1600] ss:$16 sps:$4 sm:$0xff]  }
 0x306   :  { %5325 = vmatprep.subr.bf16.mxu0 %v9391_v51  ;;  %5841 = vmatprep.subr.bf16.mxu1 %v9394_v52  ;;  %v9476_v51 = vld [vmem:[#allocation6 + $0x1608] ss:$16 sps:$4 sm:$0xff]   ;;  %v9481_v52 = vld [vmem:[#allocation6 + $0x1624] ss:$16 sps:$4 sm:$0xff]  }
 0x309   :  { %5326 = vmatpush1.bf16.msra.mxu0 %v9389_v53  ;;  %5842 = vmatpush1.bf16.msra.mxu1 %v9392_v54  ;;  %v9484_v53 = vld [vmem:[#allocation6 + $0x162c] ss:$16 sps:$4 sm:$0xff]   ;;  %v7315_v54 = vcombine.high %v10199_v50, %v10201_v42 }
 0x30a   :  { %5327 = vmatprep.subr.bf16.mxu0 %v9397_v55  ;;  %5843 = vmatprep.subr.bf16.mxu1 %v9400_v56  ;;  %v9487_v55 = vld [vmem:[#allocation6 + $0x1644] ss:$16 sps:$4 sm:$0xff]   ;;  %v9490_v56 = vld [vmem:[#allocation6 + $0x164c] ss:$16 sps:$4 sm:$0xff]  }
 0x30d   :  { %5328 = vmatpush1.bf16.msra.mxu0 %v9395_v57  ;;  %5844 = vmatpush1.bf16.msra.mxu1 %v9398_v58  ;;  %v9485_v57 = vld [vmem:[#allocation6 + $0x1640] ss:$16 sps:$4 sm:$0xff]   ;;  %v9488_v58 = vld [vmem:[#allocation6 + $0x1648] ss:$16 sps:$4 sm:$0xff]  }
 0x30e   :  { %5329 = vmatprep.subr.bf16.mxu0 %v9403_v59  ;;  %5845 = vmatprep.subr.bf16.mxu1 %v9406_v60  ;;  %v9493_v59 = vld [vmem:[#allocation6 + $0x1664] ss:$16 sps:$4 sm:$0xff]   ;;  %v9496_v60 = vld [vmem:[#allocation6 + $0x166c] ss:$16 sps:$4 sm:$0xff]  }
 0x311   :  { %5330 = vmatpush1.bf16.msra.mxu0 %v9401_v61  ;;  %5846 = vmatpush1.bf16.msra.mxu1 %v9404_v62  ;;  %v9491_v61 = vld [vmem:[#allocation6 + $0x1660] ss:$16 sps:$4 sm:$0xff]   ;;  %v9494_v62 = vld [vmem:[#allocation6 + $0x1668] ss:$16 sps:$4 sm:$0xff]  }
 0x312   :  { %5331 = vmatprep.subr.bf16.mxu0 %v9409_v63  ;;  %5847 = vmatprep.subr.bf16.mxu1 %v9412_v0  ;;  %v9499_v63 = vld [vmem:[#allocation6 + $0x1684] ss:$16 sps:$4 sm:$0xff]   ;;  %v9502_v0 = vld [vmem:[#allocation6 + $0x168c] ss:$16 sps:$4 sm:$0xff]  }
 0x315   :  { %5332 = vmatpush1.bf16.msra.mxu0 %v9407_v1  ;;  %5848 = vmatpush1.bf16.msra.mxu1 %v9410_v2  ;;  %v9497_v1 = vld [vmem:[#allocation6 + $0x1680] ss:$16 sps:$4 sm:$0xff]   ;;  %v9500_v2 = vld [vmem:[#allocation6 + $0x1688] ss:$16 sps:$4 sm:$0xff]  }
 0x316   :  { %5333 = vmatprep.subr.bf16.mxu0 %v9415_v3  ;;  %5849 = vmatprep.subr.bf16.mxu1 %v9418_v4  ;;  %v9505_v3 = vld [vmem:[#allocation6 + $0x16a4] ss:$16 sps:$4 sm:$0xff]   ;;  %v9508_v4 = vld [vmem:[#allocation6 + $0x16ac] ss:$16 sps:$4 sm:$0xff]  }
 0x319   :  { %5334 = vmatpush1.bf16.msra.mxu0 %v9413_v5  ;;  %5850 = vmatpush1.bf16.msra.mxu1 %v9416_v6  ;;  %v9503_v5 = vld [vmem:[#allocation6 + $0x16a0] ss:$16 sps:$4 sm:$0xff]   ;;  %v9506_v6 = vld [vmem:[#allocation6 + $0x16a8] ss:$16 sps:$4 sm:$0xff]  }
 0x31a   :  { %5335 = vmatprep.subr.bf16.mxu0 %v9421_v7  ;;  %5851 = vmatprep.subr.bf16.mxu1 %v9424_v8  ;;  %v9511_v7 = vld [vmem:[#allocation6 + $0x16c4] ss:$16 sps:$4 sm:$0xff]   ;;  %v9514_v8 = vld [vmem:[#allocation6 + $0x16cc] ss:$16 sps:$4 sm:$0xff]  }
 0x31d   :  { %5336 = vmatpush1.bf16.msra.mxu0 %v9419_v9  ;;  %5852 = vmatpush1.bf16.msra.mxu1 %v9422_v10  ;;  %v9509_v9 = vld [vmem:[#allocation6 + $0x16c0] ss:$16 sps:$4 sm:$0xff]   ;;  %v9512_v10 = vld [vmem:[#allocation6 + $0x16c8] ss:$16 sps:$4 sm:$0xff]  }
 0x31e   :  { %5337 = vmatprep.subr.bf16.mxu0 %v9427_v11  ;;  %5853 = vmatprep.subr.bf16.mxu1 %v9430_v12  ;;  %v9517_v11 = vld [vmem:[#allocation6 + $0x16e4] ss:$16 sps:$4 sm:$0xff]   ;;  %v9520_v12 = vld [vmem:[#allocation6 + $0x16ec] ss:$16 sps:$4 sm:$0xff]  }
 0x321   :  { %5338 = vmatpush1.bf16.msra.mxu0 %v9425_v13  ;;  %5854 = vmatpush1.bf16.msra.mxu1 %v9428_v16  ;;  %v9515_v13 = vld [vmem:[#allocation6 + $0x16e0] ss:$16 sps:$4 sm:$0xff]   ;;  %v9518_v16 = vld [vmem:[#allocation6 + $0x16e8] ss:$16 sps:$4 sm:$0xff]  }
 0x322   :  { %5339 = vmatprep.subr.bf16.mxu0 %v9433_v17  ;;  %5855 = vmatprep.subr.bf16.mxu1 %v9436_v20  ;;  %v9523_v17 = vld [vmem:[#allocation6 + $0x1704] ss:$16 sps:$4 sm:$0xff]   ;;  %v9526_v20 = vld [vmem:[#allocation6 + $0x170c] ss:$16 sps:$4 sm:$0xff]  }
 0x325   :  { %5340 = vmatpush1.bf16.msra.mxu0 %v9431_v22  ;;  %5856 = vmatpush1.bf16.msra.mxu1 %v9434_v24  ;;  %v9521_v22 = vld [vmem:[#allocation6 + $0x1700] ss:$16 sps:$4 sm:$0xff]   ;;  %v9524_v24 = vld [vmem:[#allocation6 + $0x1708] ss:$16 sps:$4 sm:$0xff]  }
 0x326   :  { %5341 = vmatprep.subr.bf16.mxu0 %v9439_v14  ;;  %5857 = vmatprep.subr.bf16.mxu1 %v9442_v15  ;;  %v9529_v14 = vld [vmem:[#allocation6 + $0x1724] ss:$16 sps:$4 sm:$0xff]   ;;  %v9532_v15 = vld [vmem:[#allocation6 + $0x172c] ss:$16 sps:$4 sm:$0xff]  }
 0x329   :  { %5342 = vmatpush1.bf16.msra.mxu0 %v9437_v27  ;;  %5858 = vmatpush1.bf16.msra.mxu1 %v9440_v28  ;;  %v9527_v27 = vld [vmem:[#allocation6 + $0x1720] ss:$16 sps:$4 sm:$0xff]   ;;  %v9530_v28 = vld [vmem:[#allocation6 + $0x1728] ss:$16 sps:$4 sm:$0xff]  }
 0x32a   :  { %5343 = vmatprep.subr.bf16.mxu0 %v9445_v18  ;;  %5859 = vmatprep.subr.bf16.mxu1 %v9448_v19  ;;  %v9535_v18 = vld [vmem:[#allocation6 + $0x1744] ss:$16 sps:$4 sm:$0xff]   ;;  %v9538_v19 = vld [vmem:[#allocation6 + $0x174c] ss:$16 sps:$4 sm:$0xff]  }
 0x32d   :  { %5344 = vmatpush1.bf16.msra.mxu0 %v9443_v31  ;;  %5860 = vmatpush1.bf16.msra.mxu1 %v9446_v32  ;;  %v9533_v31 = vld [vmem:[#allocation6 + $0x1740] ss:$16 sps:$4 sm:$0xff]   ;;  %v9536_v32 = vld [vmem:[#allocation6 + $0x1748] ss:$16 sps:$4 sm:$0xff]  }
 0x32e   :  { %5345 = vmatprep.subr.bf16.mxu0 %v9451_v21  ;;  %5861 = vmatprep.subr.bf16.mxu1 %v9454_v23  ;;  %v9541_v21 = vld [vmem:[#allocation6 + $0x1764] ss:$16 sps:$4 sm:$0xff]   ;;  %v9544_v23 = vld [vmem:[#allocation6 + $0x176c] ss:$16 sps:$4 sm:$0xff]  }
 0x331   :  { %5346 = vmatpush1.bf16.msra.mxu0 %v9449_v35  ;;  %5862 = vmatpush1.bf16.msra.mxu1 %v9452_v36  ;;  %v9539_v35 = vld [vmem:[#allocation6 + $0x1760] ss:$16 sps:$4 sm:$0xff]   ;;  %v9542_v36 = vld [vmem:[#allocation6 + $0x1768] ss:$16 sps:$4 sm:$0xff]  }
 0x332   :  { %5347 = vmatprep.subr.bf16.mxu0 %v9457_v25  ;;  %5863 = vmatprep.subr.bf16.mxu1 %v9460_v26  ;;  %v9547_v25 = vld [vmem:[#allocation6 + $0x1784] ss:$16 sps:$4 sm:$0xff]   ;;  %v9550_v26 = vld [vmem:[#allocation6 + $0x178c] ss:$16 sps:$4 sm:$0xff]  }
 0x335   :  { %5348 = vmatpush1.bf16.msra.mxu0 %v9455_v39  ;;  %5864 = vmatpush1.bf16.msra.mxu1 %v9458_v40  ;;  %v9545_v39 = vld [vmem:[#allocation6 + $0x1780] ss:$16 sps:$4 sm:$0xff]   ;;  %v9548_v40 = vld [vmem:[#allocation6 + $0x1788] ss:$16 sps:$4 sm:$0xff]  }
 0x336   :  { %5349 = vmatprep.subr.bf16.mxu0 %v9463_v29  ;;  %5865 = vmatprep.subr.bf16.mxu1 %v9466_v30  ;;  %v9553_v29 = vld [vmem:[#allocation6 + $0x17a4] ss:$16 sps:$4 sm:$0xff]   ;;  %v9556_v30 = vld [vmem:[#allocation6 + $0x17ac] ss:$16 sps:$4 sm:$0xff]  }
 0x339   :  { %5350 = vmatpush1.bf16.msra.mxu0 %v9461_v41  ;;  %5866 = vmatpush1.bf16.msra.mxu1 %v9464_v44  ;;  %v9551_v41 = vld [vmem:[#allocation6 + $0x17a0] ss:$16 sps:$4 sm:$0xff]   ;;  %v9554_v44 = vld [vmem:[#allocation6 + $0x17a8] ss:$16 sps:$4 sm:$0xff]  }
 0x33a   :  { %5351 = vmatprep.subr.bf16.mxu0 %v9469_v33  ;;  %5867 = vmatprep.subr.bf16.mxu1 %v9472_v34  ;;  %v9559_v33 = vld [vmem:[#allocation6 + $0x17c4] ss:$16 sps:$4 sm:$0xff]   ;;  %v9562_v34 = vld [vmem:[#allocation6 + $0x17cc] ss:$16 sps:$4 sm:$0xff]  }
 0x33d   :  { %5352 = vmatpush1.bf16.msra.mxu0 %v9467_v45  ;;  %5868 = vmatpush1.bf16.msra.mxu1 %v9470_v38  ;;  %v9557_v45 = vld [vmem:[#allocation6 + $0x17c0] ss:$16 sps:$4 sm:$0xff]   ;;  %v9560_v38 = vld [vmem:[#allocation6 + $0x17c8] ss:$16 sps:$4 sm:$0xff]  }
 0x33e   :  { %5364 = vmatprep.subr.bf16.mxu0 %v9475_v47  ;;  %5880 = vmatprep.subr.bf16.mxu1 %v9478_v48  ;;  %v9565_v47 = vld [vmem:[#allocation6 + $0x17e4] ss:$16 sps:$4 sm:$0xff]   ;;  %v9568_v48 = vld [vmem:[#allocation6 + $0x17ec] ss:$16 sps:$4 sm:$0xff]  }
 0x340   :  { %5354 = vmatmul.mubr.bf16.vlgmr.msra.gmra.mrb[0].mxu0 %v7312_v49  ;;  %5870 = vmatmul.mubr.bf16.vlgmr.msra.gmra.mrb[0].mxu1 %v7312_v49  ;;  %v9563_v49 = vld [vmem:[#allocation6 + $0x17e0] ss:$16 sps:$4 sm:$0xff]  }
 0x341   :  { %5365 = vmatpush1.bf16.msra.mxu0 %v9473_v43  ;;  %5881 = vmatpush1.bf16.msra.mxu1 %v9476_v51  ;;  %v9566_v43 = vld [vmem:[#allocation6 + $0x17e8] ss:$16 sps:$4 sm:$0xff]  }
 0x342   :  { %5366 = vmatprep.subr.bf16.mxu0 %v9481_v52  ;;  %5882 = vmatprep.subr.bf16.mxu1 %v9484_v53  ;;  %v9571_v51 = vld [vmem:[#allocation9 + $0x4] ss:$16 sps:$4 sm:$0xff]   ;;  %v9574_v52 = vld [vmem:[#allocation9 + $0xc] ss:$16 sps:$4 sm:$0xff]   ;;  %v7314_v53 = vcombine.low %v10199_v50, %v10201_v42  ;;  %v9581_v50 = vld [vmem:[#allocation9 + $0x40] ss:$16 sps:$4 sm:$0xff]  }
 0x343   :  { %5396 = vmatprep.mubr.bf16.mxu0 %v7315_v54  ;;  %5912 = vmatprep.mubr.bf16.mxu1 %v7315_v54  ;;  %v9569_v54 = vld [vmem:[#allocation9] ss:$16 sps:$4 sm:$0xff]   ;;  %v9584_v42 = vld [vmem:[#allocation9 + $0x48] ss:$16 sps:$4 sm:$0xff]  }
 0x345   :  { %5367 = vmatpush1.bf16.msra.mxu0 %v9479_v46  ;;  %5883 = vmatpush1.bf16.msra.mxu1 %v9482_v37  ;;  %v9572_v46 = vld [vmem:[#allocation9 + $0x8] ss:$16 sps:$4 sm:$0xff]   ;;  %v9577_v37 = vld [vmem:[#allocation9 + $0x24] ss:$16 sps:$4 sm:$0xff]  }
 0x346   :  { %5368 = vmatprep.subr.bf16.mxu0 %v9487_v55  ;;  %5884 = vmatprep.subr.bf16.mxu1 %v9490_v56  ;;  %v9580_v55 = vld [vmem:[#allocation9 + $0x2c] ss:$16 sps:$4 sm:$0xff]   ;;  %v9575_v56 = vld [vmem:[#allocation9 + $0x20] ss:$16 sps:$4 sm:$0xff]  }
 0x349   :  { %5369 = vmatpush1.bf16.msra.mxu0 %v9485_v57  ;;  %5885 = vmatpush1.bf16.msra.mxu1 %v9488_v58  ;;  %v9578_v57 = vld [vmem:[#allocation9 + $0x28] ss:$16 sps:$4 sm:$0xff]   ;;  %v9583_v58 = vld [vmem:[#allocation9 + $0x44] ss:$16 sps:$4 sm:$0xff]  }
 0x34a   :  { %5370 = vmatprep.subr.bf16.mxu0 %v9493_v59  ;;  %5886 = vmatprep.subr.bf16.mxu1 %v9496_v60  ;;  %v9586_v59 = vld [vmem:[#allocation9 + $0x4c] ss:$16 sps:$4 sm:$0xff]   ;;  %v9589_v60 = vld [vmem:[#allocation9 + $0x64] ss:$16 sps:$4 sm:$0xff]  }
 0x34d   :  { %5371 = vmatpush1.bf16.msra.mxu0 %v9491_v61  ;;  %5887 = vmatpush1.bf16.msra.mxu1 %v9494_v62  ;;  %v9592_v61 = vld [vmem:[#allocation9 + $0x6c] ss:$16 sps:$4 sm:$0xff]   ;;  %v9587_v62 = vld [vmem:[#allocation9 + $0x60] ss:$16 sps:$4 sm:$0xff]  }
 0x34e   :  { %5372 = vmatprep.subr.bf16.mxu0 %v9499_v63  ;;  %5888 = vmatprep.subr.bf16.mxu1 %v9502_v0  ;;  %v9590_v63 = vld [vmem:[#allocation9 + $0x68] ss:$16 sps:$4 sm:$0xff]   ;;  %v9595_v0 = vld [vmem:[#allocation9 + $0x84] ss:$16 sps:$4 sm:$0xff]  }
 0x351   :  { %5373 = vmatpush1.bf16.msra.mxu0 %v9497_v1  ;;  %5889 = vmatpush1.bf16.msra.mxu1 %v9500_v2  ;;  %v9598_v1 = vld [vmem:[#allocation9 + $0x8c] ss:$16 sps:$4 sm:$0xff]   ;;  %v9593_v2 = vld [vmem:[#allocation9 + $0x80] ss:$16 sps:$4 sm:$0xff]  }
 0x352   :  { %5374 = vmatprep.subr.bf16.mxu0 %v9505_v3  ;;  %5890 = vmatprep.subr.bf16.mxu1 %v9508_v4  ;;  %v9596_v3 = vld [vmem:[#allocation9 + $0x88] ss:$16 sps:$4 sm:$0xff]   ;;  %v9601_v4 = vld [vmem:[#allocation9 + $0xa4] ss:$16 sps:$4 sm:$0xff]  }
 0x355   :  { %5375 = vmatpush1.bf16.msra.mxu0 %v9503_v5  ;;  %5891 = vmatpush1.bf16.msra.mxu1 %v9506_v6  ;;  %v9604_v5 = vld [vmem:[#allocation9 + $0xac] ss:$16 sps:$4 sm:$0xff]   ;;  %v9599_v6 = vld [vmem:[#allocation9 + $0xa0] ss:$16 sps:$4 sm:$0xff]  }
 0x356   :  { %5376 = vmatprep.subr.bf16.mxu0 %v9511_v7  ;;  %5892 = vmatprep.subr.bf16.mxu1 %v9514_v8  ;;  %v9602_v7 = vld [vmem:[#allocation9 + $0xa8] ss:$16 sps:$4 sm:$0xff]   ;;  %v9607_v8 = vld [vmem:[#allocation9 + $0xc4] ss:$16 sps:$4 sm:$0xff]  }
 0x359   :  { %5377 = vmatpush1.bf16.msra.mxu0 %v9509_v9  ;;  %5893 = vmatpush1.bf16.msra.mxu1 %v9512_v10  ;;  %v9610_v9 = vld [vmem:[#allocation9 + $0xcc] ss:$16 sps:$4 sm:$0xff]   ;;  %v9605_v10 = vld [vmem:[#allocation9 + $0xc0] ss:$16 sps:$4 sm:$0xff]  }
 0x35a   :  { %5378 = vmatprep.subr.bf16.mxu0 %v9517_v11  ;;  %5894 = vmatprep.subr.bf16.mxu1 %v9520_v12  ;;  %v9608_v11 = vld [vmem:[#allocation9 + $0xc8] ss:$16 sps:$4 sm:$0xff]   ;;  %v9613_v12 = vld [vmem:[#allocation9 + $0xe4] ss:$16 sps:$4 sm:$0xff]  }
 0x35d   :  { %5379 = vmatpush1.bf16.msra.mxu0 %v9515_v13  ;;  %5895 = vmatpush1.bf16.msra.mxu1 %v9518_v16  ;;  %v9616_v13 = vld [vmem:[#allocation9 + $0xec] ss:$16 sps:$4 sm:$0xff]   ;;  %v9611_v16 = vld [vmem:[#allocation9 + $0xe0] ss:$16 sps:$4 sm:$0xff]  }
 0x35e   :  { %5380 = vmatprep.subr.bf16.mxu0 %v9523_v17  ;;  %5896 = vmatprep.subr.bf16.mxu1 %v9526_v20  ;;  %v9614_v17 = vld [vmem:[#allocation9 + $0xe8] ss:$16 sps:$4 sm:$0xff]   ;;  %v9619_v20 = vld [vmem:[#allocation9 + $0x104] ss:$16 sps:$4 sm:$0xff]  }
 0x361   :  { %5381 = vmatpush1.bf16.msra.mxu0 %v9521_v22  ;;  %5897 = vmatpush1.bf16.msra.mxu1 %v9524_v24  ;;  %v9622_v22 = vld [vmem:[#allocation9 + $0x10c] ss:$16 sps:$4 sm:$0xff]   ;;  %v9617_v24 = vld [vmem:[#allocation9 + $0x100] ss:$16 sps:$4 sm:$0xff]  }
 0x362   :  { %5382 = vmatprep.subr.bf16.mxu0 %v9529_v14  ;;  %5898 = vmatprep.subr.bf16.mxu1 %v9532_v15  ;;  %v9620_v14 = vld [vmem:[#allocation9 + $0x108] ss:$16 sps:$4 sm:$0xff]   ;;  %v9625_v15 = vld [vmem:[#allocation9 + $0x124] ss:$16 sps:$4 sm:$0xff]  }
 0x365   :  { %5383 = vmatpush1.bf16.msra.mxu0 %v9527_v27  ;;  %5899 = vmatpush1.bf16.msra.mxu1 %v9530_v28  ;;  %v9628_v27 = vld [vmem:[#allocation9 + $0x12c] ss:$16 sps:$4 sm:$0xff]   ;;  %v9623_v28 = vld [vmem:[#allocation9 + $0x120] ss:$16 sps:$4 sm:$0xff]  }
 0x366   :  { %5384 = vmatprep.subr.bf16.mxu0 %v9535_v18  ;;  %5900 = vmatprep.subr.bf16.mxu1 %v9538_v19  ;;  %v9626_v18 = vld [vmem:[#allocation9 + $0x128] ss:$16 sps:$4 sm:$0xff]   ;;  %v9631_v19 = vld [vmem:[#allocation9 + $0x144] ss:$16 sps:$4 sm:$0xff]  }
 0x369   :  { %5385 = vmatpush1.bf16.msra.mxu0 %v9533_v31  ;;  %5901 = vmatpush1.bf16.msra.mxu1 %v9536_v32  ;;  %v9634_v31 = vld [vmem:[#allocation9 + $0x14c] ss:$16 sps:$4 sm:$0xff]   ;;  %v9629_v32 = vld [vmem:[#allocation9 + $0x140] ss:$16 sps:$4 sm:$0xff]  }
 0x36a   :  { %5386 = vmatprep.subr.bf16.mxu0 %v9541_v21  ;;  %5902 = vmatprep.subr.bf16.mxu1 %v9544_v23  ;;  %v9632_v21 = vld [vmem:[#allocation9 + $0x148] ss:$16 sps:$4 sm:$0xff]   ;;  %v9637_v23 = vld [vmem:[#allocation9 + $0x164] ss:$16 sps:$4 sm:$0xff]  }
 0x36d   :  { %5387 = vmatpush1.bf16.msra.mxu0 %v9539_v35  ;;  %5903 = vmatpush1.bf16.msra.mxu1 %v9542_v36  ;;  %v9640_v35 = vld [vmem:[#allocation9 + $0x16c] ss:$16 sps:$4 sm:$0xff]   ;;  %v9635_v36 = vld [vmem:[#allocation9 + $0x160] ss:$16 sps:$4 sm:$0xff]  }
 0x36e   :  { %5388 = vmatprep.subr.bf16.mxu0 %v9547_v25  ;;  %5904 = vmatprep.subr.bf16.mxu1 %v9550_v26  ;;  %v9638_v25 = vld [vmem:[#allocation9 + $0x168] ss:$16 sps:$4 sm:$0xff]   ;;  %v9643_v26 = vld [vmem:[#allocation9 + $0x184] ss:$16 sps:$4 sm:$0xff]  }
 0x371   :  { %5389 = vmatpush1.bf16.msra.mxu0 %v9545_v39  ;;  %5905 = vmatpush1.bf16.msra.mxu1 %v9548_v40  ;;  %v9646_v39 = vld [vmem:[#allocation9 + $0x18c] ss:$16 sps:$4 sm:$0xff]   ;;  %v9641_v40 = vld [vmem:[#allocation9 + $0x180] ss:$16 sps:$4 sm:$0xff]  }
 0x372   :  { %5390 = vmatprep.subr.bf16.mxu0 %v9553_v29  ;;  %5906 = vmatprep.subr.bf16.mxu1 %v9556_v30  ;;  %v9644_v29 = vld [vmem:[#allocation9 + $0x188] ss:$16 sps:$4 sm:$0xff]   ;;  %v9649_v30 = vld [vmem:[#allocation9 + $0x1a4] ss:$16 sps:$4 sm:$0xff]  }
 0x375   :  { %5391 = vmatpush1.bf16.msra.mxu0 %v9551_v41  ;;  %5907 = vmatpush1.bf16.msra.mxu1 %v9554_v44  ;;  %v9652_v41 = vld [vmem:[#allocation9 + $0x1ac] ss:$16 sps:$4 sm:$0xff]   ;;  %v9647_v44 = vld [vmem:[#allocation9 + $0x1a0] ss:$16 sps:$4 sm:$0xff]  }
 0x376   :  { %5392 = vmatprep.subr.bf16.mxu0 %v9559_v33  ;;  %5908 = vmatprep.subr.bf16.mxu1 %v9562_v34  ;;  %v9650_v33 = vld [vmem:[#allocation9 + $0x1a8] ss:$16 sps:$4 sm:$0xff]   ;;  %v9655_v34 = vld [vmem:[#allocation9 + $0x1c4] ss:$16 sps:$4 sm:$0xff]  }
 0x379   :  { %5393 = vmatpush1.bf16.msra.mxu0 %v9557_v45  ;;  %5909 = vmatpush1.bf16.msra.mxu1 %v9560_v38  ;;  %v9658_v45 = vld [vmem:[#allocation9 + $0x1cc] ss:$16 sps:$4 sm:$0xff]   ;;  %v9653_v38 = vld [vmem:[#allocation9 + $0x1c0] ss:$16 sps:$4 sm:$0xff]  }
 0x37a   :  { %5394 = vmatprep.subr.bf16.mxu0 %v9565_v47  ;;  %5910 = vmatprep.subr.bf16.mxu1 %v9568_v48  ;;  %v9656_v47 = vld [vmem:[#allocation9 + $0x1c8] ss:$16 sps:$4 sm:$0xff]   ;;  %v9661_v48 = vld [vmem:[#allocation9 + $0x1e4] ss:$16 sps:$4 sm:$0xff]  }
 0x37d   :  { %5395 = vmatpush1.bf16.msra.mxu0 %v9563_v49  ;;  %5911 = vmatpush1.bf16.msra.mxu1 %v9566_v43  ;;  %v9664_v49 = vld [vmem:[#allocation9 + $0x1ec] ss:$16 sps:$4 sm:$0xff]   ;;  %v9659_v43 = vld [vmem:[#allocation9 + $0x1e0] ss:$16 sps:$4 sm:$0xff]  }
 0x37e   :  { %6733 = vmatprep.subr.bf16.mxu0 %v9571_v51  ;;  %6819 = vmatprep.subr.bf16.mxu1 %v9574_v52  ;;  %v9662_v51 = vld [vmem:[#allocation9 + $0x1e8] ss:$16 sps:$4 sm:$0xff]   ;;  %v9667_v52 = vld [vmem:[#allocation9 + $0x204] ss:$16 sps:$4 sm:$0xff]  }
 0x380   :  { %5397 = vmatmul.mubr.bf16.vlgmr.msra.gmra.mrb[0].mxu0 %v7314_v53  ;;  %5913 = vmatmul.mubr.bf16.vlgmr.msra.gmra.mrb[0].mxu1 %v7314_v53  ;;  %v9670_v53 = vld [vmem:[#allocation9 + $0x20c] ss:$16 sps:$4 sm:$0xff]  }
 0x381   :  { %6734 = vmatpush1.bf16.msra.mxu0 %v9569_v54  ;;  %6820 = vmatpush1.bf16.msra.mxu1 %v9572_v46  ;;  %v911_v54 = vlaneseq }
 0x382   :  { %6735 = vmatprep.subr.bf16.mxu0 %v9577_v37  ;;  %6821 = vmatprep.subr.bf16.mxu1 %v9580_v55 }
 0x383   :  { %v10207_v46 = vshrl.u32 %v911_v54, 7  ;;  %v9704_v54 = vld [vmem:[#allocation9 + $0x2c8] ss:$16 sps:$4 sm:$0xff]  }
 0x385   :  { %6736 = vmatpush1.bf16.msra.mxu0 %v9575_v56  ;;  %6822 = vmatpush1.bf16.msra.mxu1 %v9578_v57  ;;  %v913_v37 = vsub.s32 0, %v10207_v46  ;;  %v921_v55 = vsub.s32 2, %v10207_v46  ;;  %v909_v56 = vld [vmem:[#allocation8] sm:$0xf]  ;;  %v917_v57 = vsub.s32 1, %v10207_v46 }
 0x386   :  { %6737 = vmatprep.subr.bf16.mxu0 %v9583_v58  ;;  %6823 = vmatprep.subr.bf16.mxu1 %v9586_v59  ;;  %v925_v58 = vsub.s32 3, %v10207_v46 }
 0x387   :  { %v914_v59 = vrot.slane %v909_v56, %v913_v37 }
 0x389   :  { %6738 = vmatpush1.bf16.msra.mxu0 %v9581_v50  ;;  %6824 = vmatpush1.bf16.msra.mxu1 %v9584_v42  ;;  %v922_v50 = vrot.slane %v909_v56, %v921_v55  ;;  %v918_v42 = vrot.slane %v909_v56, %v917_v57 }
 0x38a   :  { %6739 = vmatprep.subr.bf16.mxu0 %v9589_v60  ;;  %6825 = vmatprep.subr.bf16.mxu1 %v9592_v61  ;;  %v926_v60 = vrot.slane %v909_v56, %v925_v58  ;;  %v9709_v56 = vld [vmem:[#allocation9 + $0x2e4] ss:$16 sps:$4 sm:$0xff]  }
 0x38d   :  { %6740 = vmatpush1.bf16.msra.mxu0 %v9587_v62  ;;  %6826 = vmatpush1.bf16.msra.mxu1 %v9590_v63 }
 0x38e   :  { %6741 = vmatprep.subr.bf16.mxu0 %v9595_v0  ;;  %6827 = vmatprep.subr.bf16.mxu1 %v9598_v1 }
 0x391   :  { %6742 = vmatpush1.bf16.msra.mxu0 %v9593_v2  ;;  %6828 = vmatpush1.bf16.msra.mxu1 %v9596_v3 }
 0x392   :  { %6743 = vmatprep.subr.bf16.mxu0 %v9601_v4  ;;  %6829 = vmatprep.subr.bf16.mxu1 %v9604_v5 }
 0x395   :  { %6744 = vmatpush1.bf16.msra.mxu0 %v9599_v6  ;;  %6830 = vmatpush1.bf16.msra.mxu1 %v9602_v7 }
 0x396   :  { %6745 = vmatprep.subr.bf16.mxu0 %v9607_v8  ;;  %6831 = vmatprep.subr.bf16.mxu1 %v9610_v9 }
 0x399   :  { %6746 = vmatpush1.bf16.msra.mxu0 %v9605_v10  ;;  %6832 = vmatpush1.bf16.msra.mxu1 %v9608_v11 }
 0x39a   :  { %6747 = vmatprep.subr.bf16.mxu0 %v9613_v12  ;;  %6833 = vmatprep.subr.bf16.mxu1 %v9616_v13 }
 0x39d   :  { %6748 = vmatpush1.bf16.msra.mxu0 %v9611_v16  ;;  %6834 = vmatpush1.bf16.msra.mxu1 %v9614_v17 }
 0x39e   :  { %6749 = vmatprep.subr.bf16.mxu0 %v9619_v20  ;;  %6835 = vmatprep.subr.bf16.mxu1 %v9622_v22 }
 0x3a1   :  { %6750 = vmatpush1.bf16.msra.mxu0 %v9617_v24  ;;  %6836 = vmatpush1.bf16.msra.mxu1 %v9620_v14 }
 0x3a2   :  { %6751 = vmatprep.subr.bf16.mxu0 %v9625_v15  ;;  %6837 = vmatprep.subr.bf16.mxu1 %v9628_v27 }
 0x3a5   :  { %6752 = vmatpush1.bf16.msra.mxu0 %v9623_v28  ;;  %6838 = vmatpush1.bf16.msra.mxu1 %v9626_v18 }
 0x3a6   :  { %6753 = vmatprep.subr.bf16.mxu0 %v9631_v19  ;;  %6839 = vmatprep.subr.bf16.mxu1 %v9634_v31  ;;  %v9665_v31 = vld [vmem:[#allocation9 + $0x200] ss:$16 sps:$4 sm:$0xff]  }
 0x3a9   :  { %6754 = vmatpush1.bf16.msra.mxu0 %v9629_v32  ;;  %6840 = vmatpush1.bf16.msra.mxu1 %v9632_v21  ;;  %v9668_v32 = vld [vmem:[#allocation9 + $0x208] ss:$16 sps:$4 sm:$0xff]   ;;  %v9673_v21 = vld [vmem:[#allocation9 + $0x224] ss:$16 sps:$4 sm:$0xff]  }
 0x3aa   :  { %6755 = vmatprep.subr.bf16.mxu0 %v9637_v23  ;;  %6841 = vmatprep.subr.bf16.mxu1 %v9640_v35  ;;  %v9676_v23 = vld [vmem:[#allocation9 + $0x22c] ss:$16 sps:$4 sm:$0xff]   ;;  %v9671_v35 = vld [vmem:[#allocation9 + $0x220] ss:$16 sps:$4 sm:$0xff]  }
 0x3ad   :  { %6756 = vmatpush1.bf16.msra.mxu0 %v9635_v36  ;;  %6842 = vmatpush1.bf16.msra.mxu1 %v9638_v25  ;;  %v9674_v36 = vld [vmem:[#allocation9 + $0x228] ss:$16 sps:$4 sm:$0xff]   ;;  %v9679_v25 = vld [vmem:[#allocation9 + $0x244] ss:$16 sps:$4 sm:$0xff]  }
 0x3ae   :  { %6757 = vmatprep.subr.bf16.mxu0 %v9643_v26  ;;  %6843 = vmatprep.subr.bf16.mxu1 %v9646_v39  ;;  %v9682_v26 = vld [vmem:[#allocation9 + $0x24c] ss:$16 sps:$4 sm:$0xff]   ;;  %v9677_v39 = vld [vmem:[#allocation9 + $0x240] ss:$16 sps:$4 sm:$0xff]  }
 0x3b1   :  { %6758 = vmatpush1.bf16.msra.mxu0 %v9641_v40  ;;  %6844 = vmatpush1.bf16.msra.mxu1 %v9644_v29  ;;  %v9680_v40 = vld [vmem:[#allocation9 + $0x248] ss:$16 sps:$4 sm:$0xff]   ;;  %v9685_v29 = vld [vmem:[#allocation9 + $0x264] ss:$16 sps:$4 sm:$0xff]  }
 0x3b2   :  { %6759 = vmatprep.subr.bf16.mxu0 %v9649_v30  ;;  %6845 = vmatprep.subr.bf16.mxu1 %v9652_v41  ;;  %v9688_v30 = vld [vmem:[#allocation9 + $0x26c] ss:$16 sps:$4 sm:$0xff]   ;;  %v9683_v41 = vld [vmem:[#allocation9 + $0x260] ss:$16 sps:$4 sm:$0xff]  }
 0x3b5   :  { %6760 = vmatpush1.bf16.msra.mxu0 %v9647_v44  ;;  %6846 = vmatpush1.bf16.msra.mxu1 %v9650_v33  ;;  %v9686_v44 = vld [vmem:[#allocation9 + $0x268] ss:$16 sps:$4 sm:$0xff]   ;;  %v9691_v33 = vld [vmem:[#allocation9 + $0x284] ss:$16 sps:$4 sm:$0xff]  }
 0x3b6   :  { %6761 = vmatprep.subr.bf16.mxu0 %v9655_v34  ;;  %6847 = vmatprep.subr.bf16.mxu1 %v9658_v45  ;;  %v9694_v34 = vld [vmem:[#allocation9 + $0x28c] ss:$16 sps:$4 sm:$0xff]   ;;  %v9689_v45 = vld [vmem:[#allocation9 + $0x280] ss:$16 sps:$4 sm:$0xff]  }
 0x3b9   :  { %6762 = vmatpush1.bf16.msra.mxu0 %v9653_v38  ;;  %6848 = vmatpush1.bf16.msra.mxu1 %v9656_v47  ;;  %v9692_v38 = vld [vmem:[#allocation9 + $0x288] ss:$16 sps:$4 sm:$0xff]   ;;  %v9697_v47 = vld [vmem:[#allocation9 + $0x2a4] ss:$16 sps:$4 sm:$0xff]  }
 0x3ba   :  { %6763 = vmatprep.subr.bf16.mxu0 %v9661_v48  ;;  %6849 = vmatprep.subr.bf16.mxu1 %v9664_v49  ;;  %v9700_v48 = vld [vmem:[#allocation9 + $0x2ac] ss:$16 sps:$4 sm:$0xff]   ;;  %v9695_v49 = vld [vmem:[#allocation9 + $0x2a0] ss:$16 sps:$4 sm:$0xff]  }
 0x3bd   :  { %6764 = vmatpush1.bf16.msra.mxu0 %v9659_v43  ;;  %6850 = vmatpush1.bf16.msra.mxu1 %v9662_v51  ;;  %v9698_v43 = vld [vmem:[#allocation9 + $0x2a8] ss:$16 sps:$4 sm:$0xff]   ;;  %v9703_v51 = vld [vmem:[#allocation9 + $0x2c4] ss:$16 sps:$4 sm:$0xff]  }
 0x3be   :  { %6776 = vmatprep.subr.bf16.mxu0 %v9667_v52  ;;  %6862 = vmatprep.subr.bf16.mxu1 %v9670_v53  ;;  %v9706_v52 = vld [vmem:[#allocation9 + $0x2cc] ss:$16 sps:$4 sm:$0xff]   ;;  %v9701_v53 = vld [vmem:[#allocation9 + $0x2c0] ss:$16 sps:$4 sm:$0xff]  }
 0x453   :  { %v5398_v61 = vpop.f32.mrb[0].mxu0  ;;  %v5914_v62 = vpop.f32.mrb[0].mxu1 }
 0x454   :  { %v8289_v63 = vadd.f32 %v5398_v61, %v914_v59  ;;  %v8293_v0 = vadd.f32 %v5914_v62, %v922_v50  ;;  %v5400_v1 = vpop.f32.mrb[1].mxu0  ;;  %v5916_v2 = vpop.f32.mrb[1].mxu1  ;;  %v9718_v61 = vld [vmem:[#allocation9 + $0x30c] ss:$16 sps:$4 sm:$0xff]   ;;  %v9713_v62 = vld [vmem:[#allocation9 + $0x300] ss:$16 sps:$4 sm:$0xff]  }
 0x455   :  { %v8290_v3 = vadd.f32 %v5400_v1, %v918_v42  ;;  %v8294_v4 = vadd.f32 %v5916_v2, %v926_v60  ;;  %v5402_v5 = vpop.f32.mrb[2].mxu0  ;;  %v5918_v6 = vpop.f32.mrb[2].mxu1  ;;  %v9724_v1 = vld [vmem:[#allocation9 + $0x32c] ss:$16 sps:$4 sm:$0xff]   ;;  %v9719_v2 = vld [vmem:[#allocation9 + $0x320] ss:$16 sps:$4 sm:$0xff]  }
 0x456   :  { %v8291_v7 = vadd.f32 %v5402_v5, %v914_v59  ;;  %v8295_v8 = vadd.f32 %v5918_v6, %v922_v50  ;;  %v5404_v9 = vpop.f32.mrb[3].mxu0  ;;  %v5920_v10 = vpop.f32.mrb[3].mxu1  ;;  %v5923_v13 = vmax.f32 %v8289_v63, 0.0  ;;  %v5925_v16 = vmax.f32 %v8293_v0, 0.0  ;;  %v9712_v59 = vld [vmem:[#allocation9 + $0x2ec] ss:$16 sps:$4 sm:$0xff]  }
 0x457   :  { %v8292_v11 = vadd.f32 %v5404_v9, %v918_v42  ;;  %v8296_v12 = vadd.f32 %v5920_v10, %v926_v60  ;;  %v5924_v22 = vmax.f32 %v8290_v3, 0.0  ;;  %v5926_v24 = vmax.f32 %v8294_v4, 0.0  ;;  %v9707_v50 = vld [vmem:[#allocation9 + $0x2e0] ss:$16 sps:$4 sm:$0xff]   ;;  %v9710_v42 = vld [vmem:[#allocation9 + $0x2e8] ss:$16 sps:$4 sm:$0xff]  }
 0x458   :  { %v5927_v17 = vmax.f32 %v8291_v7, 0.0  ;;  %v5929_v20 = vmax.f32 %v8295_v8, 0.0  ;;  %v9715_v60 = vld [vmem:[#allocation9 + $0x304] ss:$16 sps:$4 sm:$0xff]   ;;  %v9716_v63 = vld [vmem:[#allocation9 + $0x308] ss:$16 sps:$4 sm:$0xff]  }
 0x459   :  { %v5928_v14 = vmax.f32 %v8292_v11, 0.0  ;;  %v5930_v15 = vmax.f32 %v8296_v12, 0.0  ;;  %v9721_v0 = vld [vmem:[#allocation9 + $0x324] ss:$16 sps:$4 sm:$0xff]   ;;  %v9722_v3 = vld [vmem:[#allocation9 + $0x328] ss:$16 sps:$4 sm:$0xff]  }
 0x45a   :  { %v5931_v27 = vpack.c.bf16 %v5927_v17, %v5923_v13  ;;  %v10221_v28 = vpack.c.bf16 %v5929_v20, %v5925_v16  ;;  %v9727_v4 = vld [vmem:[#allocation9 + $0x344] ss:$16 sps:$4 sm:$0xff]   ;;  %v9730_v5 = vld [vmem:[#allocation9 + $0x34c] ss:$16 sps:$4 sm:$0xff]   ;;  %v9725_v6 = vld [vmem:[#allocation9 + $0x340] ss:$16 sps:$4 sm:$0xff]  }
 0x45b   :  { %v5932_v18 = vpack.c.bf16 %v5928_v14, %v5924_v22  ;;  %v5934_v19 = vpack.c.bf16 %v5930_v15, %v5926_v24  ;;  %v9728_v7 = vld [vmem:[#allocation9 + $0x348] ss:$16 sps:$4 sm:$0xff]   ;;  %v9733_v8 = vld [vmem:[#allocation9 + $0x364] ss:$16 sps:$4 sm:$0xff]   ;;  %v9736_v9 = vld [vmem:[#allocation9 + $0x36c] ss:$16 sps:$4 sm:$0xff]  }
 0x45c   :  { %v9731_v10 = vld [vmem:[#allocation9 + $0x360] ss:$16 sps:$4 sm:$0xff]   ;;  %v9734_v11 = vld [vmem:[#allocation9 + $0x368] ss:$16 sps:$4 sm:$0xff]   ;;  %v9739_v12 = vld [vmem:[#allocation9 + $0x384] ss:$16 sps:$4 sm:$0xff]  }
 0x45d   :  { %6765 = vmatprep.mubr.bf16.mxu0 %v5932_v18  ;;  %6851 = vmatprep.mubr.bf16.mxu1 %v5932_v18  ;;  %v9742_v13 = vld [vmem:[#allocation9 + $0x38c] ss:$16 sps:$4 sm:$0xff]   ;;  %v9737_v16 = vld [vmem:[#allocation9 + $0x380] ss:$16 sps:$4 sm:$0xff]   ;;  %v9740_v17 = vld [vmem:[#allocation9 + $0x388] ss:$16 sps:$4 sm:$0xff]  }
 0x45e   :  { %6766 = vmatmul.mubr.bf16.vlgmr.msra.gmra.mrb[4].mxu0 %v5931_v27  ;;  %6852 = vmatmul.mubr.bf16.vlgmr.msra.gmra.mrb[4].mxu1 %v5931_v27  ;;  %v9745_v20 = vld [vmem:[#allocation9 + $0x3a4] ss:$16 sps:$4 sm:$0xff]   ;;  %v9748_v22 = vld [vmem:[#allocation9 + $0x3ac] ss:$16 sps:$4 sm:$0xff]   ;;  %v9743_v24 = vld [vmem:[#allocation9 + $0x3a0] ss:$16 sps:$4 sm:$0xff]  }
 0x45f   :  { %6777 = vmatpush1.bf16.msra.mxu0 %v9665_v31  ;;  %6863 = vmatpush1.bf16.msra.mxu1 %v9668_v32  ;;  %v9746_v14 = vld [vmem:[#allocation9 + $0x3a8] ss:$16 sps:$4 sm:$0xff]   ;;  %v9751_v15 = vld [vmem:[#allocation9 + $0x3c4] ss:$16 sps:$4 sm:$0xff]   ;;  %v9754_v27 = vld [vmem:[#allocation9 + $0x3cc] ss:$16 sps:$4 sm:$0xff]  }
 0x460   :  { %6808 = vmatprep.mubr.bf16.mxu0 %v5934_v19  ;;  %6894 = vmatprep.mubr.bf16.mxu1 %v5934_v19  ;;  %v9749_v18 = vld [vmem:[#allocation9 + $0x3c0] ss:$16 sps:$4 sm:$0xff]   ;;  %v9752_v19 = vld [vmem:[#allocation9 + $0x3c8] ss:$16 sps:$4 sm:$0xff]   ;;  %v9757_v31 = vld [vmem:[#allocation9 + $0x3e4] ss:$16 sps:$4 sm:$0xff]  }
 0x461   :  { %6778 = vmatprep.subr.bf16.mxu0 %v9673_v21  ;;  %6864 = vmatprep.subr.bf16.mxu1 %v9676_v23  ;;  %v9760_v32 = vld [vmem:[#allocation9 + $0x3ec] ss:$16 sps:$4 sm:$0xff]   ;;  %v9755_v21 = vld [vmem:[#allocation9 + $0x3e0] ss:$16 sps:$4 sm:$0xff]   ;;  %v9758_v23 = vld [vmem:[#allocation9 + $0x3e8] ss:$16 sps:$4 sm:$0xff]  }
 0x463   :  { %6779 = vmatpush1.bf16.msra.mxu0 %v9671_v35  ;;  %6865 = vmatpush1.bf16.msra.mxu1 %v9674_v36  ;;  %v9761_v35 = vld [vmem:[#allocation12 + $0x40] sm:$0xff]  }
 0x464   :  { %6780 = vmatprep.subr.bf16.mxu0 %v9679_v25  ;;  %6866 = vmatprep.subr.bf16.mxu1 %v9682_v26  ;;  %v9762_v36 = vld [vmem:[#allocation12 + $0xc0] sm:$0xff]  }
 0x465   :  { %v9763_v25 = vld [vmem:[#allocation12] sm:$0xff]  }
 0x466   :  { %v9764_v26 = vld [vmem:[#allocation12 + $0x80] sm:$0xff]  }
 0x467   :  { %6781 = vmatpush1.bf16.msra.mxu0 %v9677_v39  ;;  %6867 = vmatpush1.bf16.msra.mxu1 %v9680_v40  ;;  %v9765_v39 = vld [vmem:[#allocation12 + $0x48] sm:$0xff]  }
 0x468   :  { %6782 = vmatprep.subr.bf16.mxu0 %v9685_v29  ;;  %6868 = vmatprep.subr.bf16.mxu1 %v9688_v30  ;;  %v9766_v40 = vld [vmem:[#allocation12 + $0xc8] sm:$0xff]  }
 0x469   :  { %v9767_v29 = vld [vmem:[#allocation12 + $0x8] sm:$0xff]  }
 0x46a   :  { %v9768_v30 = vld [vmem:[#allocation12 + $0x88] sm:$0xff]  }
 0x46b   :  { %6783 = vmatpush1.bf16.msra.mxu0 %v9683_v41  ;;  %6869 = vmatpush1.bf16.msra.mxu1 %v9686_v44  ;;  %v9769_v41 = vld [vmem:[#allocation12 + $0x50] sm:$0xff]  }
 0x46c   :  { %6784 = vmatprep.subr.bf16.mxu0 %v9691_v33  ;;  %6870 = vmatprep.subr.bf16.mxu1 %v9694_v34  ;;  %v9770_v44 = vld [vmem:[#allocation12 + $0xd0] sm:$0xff]  }
 0x46d   :  { %v9771_v33 = vld [vmem:[#allocation12 + $0x10] sm:$0xff]  }
 0x46e   :  { %v9772_v34 = vld [vmem:[#allocation12 + $0x90] sm:$0xff]  }
 0x46f   :  { %6785 = vmatpush1.bf16.msra.mxu0 %v9689_v45  ;;  %6871 = vmatpush1.bf16.msra.mxu1 %v9692_v38  ;;  %v9773_v45 = vld [vmem:[#allocation12 + $0x58] sm:$0xff]  }
 0x470   :  { %6786 = vmatprep.subr.bf16.mxu0 %v9697_v47  ;;  %6872 = vmatprep.subr.bf16.mxu1 %v9700_v48  ;;  %v9774_v38 = vld [vmem:[#allocation12 + $0xd8] sm:$0xff]   ;;  %v9777_v48 = vld [vmem:[#allocation12 + $0x60] sm:$0xff]  }
 0x471   :  { %v9775_v47 = vld [vmem:[#allocation12 + $0x18] sm:$0xff]  }
 0x473   :  { %6787 = vmatpush1.bf16.msra.mxu0 %v9695_v49  ;;  %6873 = vmatpush1.bf16.msra.mxu1 %v9698_v43  ;;  %v9778_v49 = vld [vmem:[#allocation12 + $0xe0] sm:$0xff]  }
 0x474   :  { %6788 = vmatprep.subr.bf16.mxu0 %v9703_v51  ;;  %6874 = vmatprep.subr.bf16.mxu1 %v9706_v52  ;;  %v9779_v43 = vld [vmem:[#allocation12 + $0x20] sm:$0xff]   ;;  %v9781_v52 = vld [vmem:[#allocation12 + $0x68] sm:$0xff]  }
 0x475   :  { %v9780_v51 = vld [vmem:[#allocation12 + $0xa0] sm:$0xff]  }
 0x477   :  { %6789 = vmatpush1.bf16.msra.mxu0 %v9701_v53  ;;  %6875 = vmatpush1.bf16.msra.mxu1 %v9704_v54  ;;  %v9782_v53 = vld [vmem:[#allocation12 + $0xe8] sm:$0xff]  }
 0x478   :  { %6790 = vmatprep.subr.bf16.mxu0 %v9709_v56  ;;  %6876 = vmatprep.subr.bf16.mxu1 %v9712_v59  ;;  %v9783_v54 = vld [vmem:[#allocation12 + $0x28] sm:$0xff]   ;;  %v9785_v59 = vld [vmem:[#allocation12 + $0x70] sm:$0xff]  }
 0x479   :  { %v9784_v56 = vld [vmem:[#allocation12 + $0xa8] sm:$0xff]  }
 0x47b   :  { %6791 = vmatpush1.bf16.msra.mxu0 %v9707_v50  ;;  %6877 = vmatpush1.bf16.msra.mxu1 %v9710_v42  ;;  %v9786_v50 = vld [vmem:[#allocation12 + $0xf0] sm:$0xff]  }
 0x47c   :  { %6792 = vmatprep.subr.bf16.mxu0 %v9715_v60  ;;  %6878 = vmatprep.subr.bf16.mxu1 %v9718_v61  ;;  %v9787_v42 = vld [vmem:[#allocation12 + $0x30] sm:$0xff]   ;;  %v9789_v61 = vld [vmem:[#allocation12 + $0x78] sm:$0xff]  }
 0x47d   :  { %v9788_v60 = vld [vmem:[#allocation12 + $0xb0] sm:$0xff]  }
 0x47f   :  { %6793 = vmatpush1.bf16.msra.mxu0 %v9713_v62  ;;  %6879 = vmatpush1.bf16.msra.mxu1 %v9716_v63  ;;  %v9790_v62 = vld [vmem:[#allocation12 + $0xf8] sm:$0xff]  }
 0x480   :  { %6794 = vmatprep.subr.bf16.mxu0 %v9721_v0  ;;  %6880 = vmatprep.subr.bf16.mxu1 %v9724_v1  ;;  %v9791_v63 = vld [vmem:[#allocation12 + $0x38] sm:$0xff]  }
 0x481   :  { %v9792_v0 = vld [vmem:[#allocation12 + $0xb8] sm:$0xff]  }
 0x482   :  { %v6071_v1 = vld [vmem:[#allocation11] sm:$0xf] }
 0x483   :  { %6795 = vmatpush1.bf16.msra.mxu0 %v9719_v2  ;;  %6881 = vmatpush1.bf16.msra.mxu1 %v9722_v3  ;;  %v6076_v2 = vrot.slane %v6071_v1, %v913_v37  ;;  %v6084_v3 = vrot.slane %v6071_v1, %v921_v55 }
 0x484   :  { %6796 = vmatprep.subr.bf16.mxu0 %v9727_v4  ;;  %6882 = vmatprep.subr.bf16.mxu1 %v9730_v5  ;;  %v6080_v4 = vrot.slane %v6071_v1, %v917_v57  ;;  %v6088_v5 = vrot.slane %v6071_v1, %v925_v58 }
 0x487   :  { %6797 = vmatpush1.bf16.msra.mxu0 %v9725_v6  ;;  %6883 = vmatpush1.bf16.msra.mxu1 %v9728_v7 }
 0x488   :  { %6798 = vmatprep.subr.bf16.mxu0 %v9733_v8  ;;  %6884 = vmatprep.subr.bf16.mxu1 %v9736_v9 }
 0x48b   :  { %6799 = vmatpush1.bf16.msra.mxu0 %v9731_v10  ;;  %6885 = vmatpush1.bf16.msra.mxu1 %v9734_v11 }
 0x48c   :  { %6800 = vmatprep.subr.bf16.mxu0 %v9739_v12  ;;  %6886 = vmatprep.subr.bf16.mxu1 %v9742_v13 }
 0x48f   :  { %6801 = vmatpush1.bf16.msra.mxu0 %v9737_v16  ;;  %6887 = vmatpush1.bf16.msra.mxu1 %v9740_v17 }
 0x490   :  { %6802 = vmatprep.subr.bf16.mxu0 %v9745_v20  ;;  %6888 = vmatprep.subr.bf16.mxu1 %v9748_v22 }
 0x493   :  { %6803 = vmatpush1.bf16.msra.mxu0 %v9743_v24  ;;  %6889 = vmatpush1.bf16.msra.mxu1 %v9746_v14 }
 0x494   :  { %6804 = vmatprep.subr.bf16.mxu0 %v9751_v15  ;;  %6890 = vmatprep.subr.bf16.mxu1 %v9754_v27 }
 0x497   :  { %6805 = vmatpush1.bf16.msra.mxu0 %v9749_v18  ;;  %6891 = vmatpush1.bf16.msra.mxu1 %v9752_v19 }
 0x498   :  { %6806 = vmatprep.subr.bf16.mxu0 %v9757_v31  ;;  %6892 = vmatprep.subr.bf16.mxu1 %v9760_v32 }
 0x49b   :  { %6807 = vmatpush1.bf16.msra.mxu0 %v9755_v21  ;;  %6893 = vmatpush1.bf16.msra.mxu1 %v9758_v23 }
 0x49c   :  { %8245 = vmatprep.subr.bf16.mxu0 %v9761_v35  ;;  %8267 = vmatprep.subr.bf16.mxu1 %v9762_v36 }
 0x49e   :  { %6809 = vmatmul.mubr.bf16.vlgmr.msra.gmra.mrb[4].mxu0 %v10221_v28  ;;  %6895 = vmatmul.mubr.bf16.vlgmr.msra.gmra.mrb[4].mxu1 %v10221_v28  ;;  %v9776_v28 = vld [vmem:[#allocation12 + $0x98] sm:$0xff]  }
 0x49f   :  { %8246 = vmatpush3.bf16.msra.mxu0 %v9763_v25  ;;  %8268 = vmatpush3.bf16.msra.mxu1 %v9764_v26  ;;  %v8212_v26 = vld [vmem:[#allocation14] ss:$0 sm:$0xff] }
 0x4a0   :  { %8247 = vmatprep.subr.bf16.mxu0 %v9765_v39  ;;  %8269 = vmatprep.subr.bf16.mxu1 %v9766_v40 }
 0x4a3   :  { %8248 = vmatpush3.bf16.msra.mxu0 %v9767_v29  ;;  %8270 = vmatpush3.bf16.msra.mxu1 %v9768_v30 }
 0x4a4   :  { %8249 = vmatprep.subr.bf16.mxu0 %v9769_v41  ;;  %8271 = vmatprep.subr.bf16.mxu1 %v9770_v44 }
 0x4a7   :  { %8250 = vmatpush3.bf16.msra.mxu0 %v9771_v33  ;;  %8272 = vmatpush3.bf16.msra.mxu1 %v9772_v34 }
 0x4a8   :  { %8251 = vmatprep.subr.bf16.mxu0 %v9773_v45  ;;  %8273 = vmatprep.subr.bf16.mxu1 %v9774_v38 }
 0x4ab   :  { %8252 = vmatpush3.bf16.msra.mxu0 %v9775_v47  ;;  %8274 = vmatpush3.bf16.msra.mxu1 %v9776_v28 }
 0x4ac   :  { %8253 = vmatprep.subr.bf16.mxu0 %v9777_v48  ;;  %8275 = vmatprep.subr.bf16.mxu1 %v9778_v49 }
 0x4af   :  { %8254 = vmatpush3.bf16.msra.mxu0 %v9779_v43  ;;  %8276 = vmatpush3.bf16.msra.mxu1 %v9780_v51 }
 0x4b0   :  { %8255 = vmatprep.subr.bf16.mxu0 %v9781_v52  ;;  %8277 = vmatprep.subr.bf16.mxu1 %v9782_v53 }
 0x4b3   :  { %8256 = vmatpush3.bf16.msra.mxu0 %v9783_v54  ;;  %8278 = vmatpush3.bf16.msra.mxu1 %v9784_v56 }
 0x4b4   :  { %8257 = vmatprep.subr.bf16.mxu0 %v9785_v59  ;;  %8279 = vmatprep.subr.bf16.mxu1 %v9786_v50 }
 0x4b7   :  { %8258 = vmatpush3.bf16.msra.mxu0 %v9787_v42  ;;  %8280 = vmatpush3.bf16.msra.mxu1 %v9788_v60 }
 0x4b8   :  { %8259 = vmatprep.subr.bf16.mxu0 %v9789_v61  ;;  %8281 = vmatprep.subr.bf16.mxu1 %v9790_v62 }
 0x4bb   :  { %8260 = vmatpush3.bf16.msra.mxu0 %v9791_v63  ;;  %8282 = vmatpush3.bf16.msra.mxu1 %v9792_v0 }
 0x571   :  { %v6810_v6 = vpop.f32.mrb[4].mxu0  ;;  %v6896_v7 = vpop.f32.mrb[4].mxu1 }
 0x572   :  { %v8297_v8 = vadd.f32 %v6810_v6, %v6076_v2  ;;  %v8301_v9 = vadd.f32 %v6896_v7, %v6084_v3  ;;  %v6812_v10 = vpop.f32.mrb[5].mxu0  ;;  %v6898_v11 = vpop.f32.mrb[5].mxu1 }
 0x573   :  { %v8298_v12 = vadd.f32 %v6812_v10, %v6080_v4  ;;  %v8302_v13 = vadd.f32 %v6898_v11, %v6088_v5  ;;  %v6814_v16 = vpop.f32.mrb[6].mxu0  ;;  %v6900_v17 = vpop.f32.mrb[6].mxu1 }
 0x574   :  { %v8299_v37 = vadd.f32 %v6814_v16, %v6076_v2  ;;  %v8303_v20 = vadd.f32 %v6900_v17, %v6084_v3  ;;  %v6816_v22 = vpop.f32.mrb[7].mxu0  ;;  %v6902_v55 = vpop.f32.mrb[7].mxu1  ;;  %v6905_v57 = vmax.f32 %v8297_v8, 0.0  ;;  %v6907_v15 = vmax.f32 %v8301_v9, 0.0 }
 0x575   :  { %v8300_v24 = vadd.f32 %v6816_v22, %v6080_v4  ;;  %v8304_v14 = vadd.f32 %v6902_v55, %v6088_v5  ;;  %v6906_v27 = vmax.f32 %v8298_v12, 0.0  ;;  %v6908_v18 = vmax.f32 %v8302_v13, 0.0 }
 0x576   :  { %v6909_v46 = vmax.f32 %v8299_v37, 0.0  ;;  %v6911_v58 = vmax.f32 %v8303_v20, 0.0 }
 0x577   :  { %v6910_v19 = vmax.f32 %v8300_v24, 0.0  ;;  %v6912_v31 = vmax.f32 %v8304_v14, 0.0 }
 0x578   :  { %v6913_v32 = vpack.c.bf16 %v6909_v46, %v6905_v57  ;;  %v6915_v21 = vpack.c.bf16 %v6911_v58, %v6907_v15 }
 0x579   :  { %v6914_v23 = vpack.c.bf16 %v6910_v19, %v6906_v27  ;;  %v6916_v35 = vpack.c.bf16 %v6912_v31, %v6908_v18 }
 0x57b   :  { %7220 = vmatprep.mubr.bf16.mxu0 %v6914_v23  ;;  %7261 = vmatprep.mubr.bf16.mxu1 %v6916_v35 }
 0x57c   :  { %7221 = vmatmul.mubr.bf16.vlgmr.msra.gmra.mrb[8].mxu0 %v6913_v32  ;;  %7262 = vmatmul.mubr.bf16.vlgmr.msra.gmra.mrb[8].mxu1 %v6915_v21 }
 0x64f   :  { %v8261_v36 = vpop.f32.mrb[8].mxu0  ;;  %v8283_v25 = vpop.f32.mrb[8].mxu1 }
 0x650   :  { %v8262_v39 = vpop.f32.mrb[9].mxu0  ;;  %v8284_v40 = vpop.f32.mrb[9].mxu1 }
 0x651   :  { %v8263_v29 = vadd.f32 %v8262_v39, %v8261_v36  ;;  %v8285_v30 = vadd.f32 %v8284_v40, %v8283_v25  ;;  %v8264_v41 = vpop.f32.mrb[10].mxu0  ;;  %v8286_v44 = vpop.f32.mrb[10].mxu1 }
 0x652   :  { %v8265_v33 = vpop.f32.mrb[11].mxu0  ;;  %v8287_v34 = vpop.f32.mrb[11].mxu1 }
 0x653   :  { %v7223_v45 = vadd.f32 %v8263_v29, %v8212_v26  ;;  %v8266_v38 = vadd.f32 %v8265_v33, %v8264_v41  ;;  %v8288_v47 = vadd.f32 %v8287_v34, %v8286_v44 }
 0x655   :  { %v7264_v28 = vadd.f32 %v8285_v30, %v7223_v45  ;;  %v7226_v48 = vadd.f32 %v8266_v38, %v8212_v26 }
 0x657   :  { %7270 = vst [vmem:[#allocation15] sm:$0xff] %v7264_v28  ;;  %v7267_v49 = vadd.f32 %v8288_v47, %v7226_v48 }
 0x659   :  { %7271 = vst [vmem:[#allocation15 + $0x8] sm:$0xff] %v7267_v49 }
 0x65a   :  { %9958 = shalt.err (!%p9955_p4)
}
 0x65b   :  { %s9959_s15 = scalar_lea.hbm %s10252_s7, 256 }
 0x65c   :  { %p9960_p5 = scmp.ne.s32.totalorder %s10252_s7, %s9959_s15  ;;  %p9963_p6 = scmp.lt.u32.totalorder %s9959_s15, %s10252_s7 }
 0x65e   :  { %p9965_p7 = pnand %p9963_p6, %p9960_p5 }
 0x660   :  { %9968 = shalt.err (!%p9965_p7)
}
 0x661   :  { %s9993_s21 = smov 128   ;;  %s9994_s22 = smov 8  }
 0x662   :  { %7283 = dma.vmem_to_hbm [thread:$0]  %s7278_s3, 256, %s10252_s7, [#allocation5], %s9993_s21, %s9993_s21, %s9994_s22  }
 0x663   :  { %9977 = dma.done.wait [#allocation5], 256  }
 0x664   :  { %9978 = vsyncadd [#allocation5], 4294967040 }
 0x665   :  { %7287 = vsyncpa [#allocation4], 1 }
 0x666   :  { %7288 = vsyncpa [#allocation7], 1 }
 0x667   :  { %7289 = vsyncpa [#allocation10], 1 }
 0x668   :  { %7290 = vsyncpa [#allocation13], 1 }
 0x669   :  { %7291 = vsyncpa [#allocation5], 1 }

</bundles_post_ra>
